<compile_context>
chip_gen: v7x
topology: tpu7x:2x2x1
jax: 0.10.0
libtpu: 0.0.40
codegen_flags: <defaults>
</compile_context>

<pallas_src>
import functools

import jax
import jax.numpy as jnp
from jax.experimental import pallas as pl
from jax.experimental.pallas import tpu as pltpu

_EPS = 1e-5          # LayerNorm eps (matches torch module)
_NEG = -1e30         # "-inf" sentinel (masking / max-pool padding)
_SQRT_2_OVER_PI = 0.7978845608028654


# ----------------------------------------------------------------------------
# in-kernel math helpers
# ----------------------------------------------------------------------------
def _gelu_tanh(x):
    # tanh-form GELU (EUP); tiny drift vs torch's exact erf GELU.
    return 0.5 * x * (1.0 + jnp.tanh(_SQRT_2_OVER_PI * (x + 0.044715 * x * x * x)))


def _chan_ln(x, g, b):
    # torch custom LayerNorm over the channel dim (unbiased=False variance).
    mean = jnp.mean(x, axis=-1, keepdims=True)
    var = jnp.mean((x - mean) ** 2, axis=-1, keepdims=True)
    return (x - mean) * jax.lax.rsqrt(var + _EPS) * g + b


# ----------------------------------------------------------------------------
# generic row-tiled matmul + bias (patch embedding)
# ----------------------------------------------------------------------------
def _matmul_bias_kernel(x_ref, w_ref, b_ref, o_ref):
    o_ref[...] = (jnp.dot(x_ref[...], w_ref[...],
                          preferred_element_type=jnp.float32)
                  + b_ref[...]).astype(o_ref.dtype)


def _pick_row_tile(m, cap=512):
    # largest multiple-of-16 divisor of m, preferring >=2 grid steps.
    cands = [t for t in range(16, min(m, cap) + 1, 16) if m % t == 0]
    for pred in (lambda t: m // t >= 2, lambda t: True):
        sel = [t for t in cands if pred(t)]
        if sel:
            return max(sel)
    return m


def matmul_bias(x, w, b):
    """y = x @ w + b (bf16 operands, f32 accumulate, bf16 output)."""
    M, K = x.shape
    N = w.shape[1]
    tm = _pick_row_tile(M)
    return pl.pallas_call(
        _matmul_bias_kernel,
        grid=(M // tm,),
        out_shape=jax.ShapeDtypeStruct((M, N), jnp.bfloat16),
        in_specs=[pl.BlockSpec((tm, K), lambda i: (i, 0)),
                  pl.BlockSpec((K, N), lambda i: (0, 0)),
                  pl.BlockSpec((1, N), lambda i: (0, 0))],
        out_specs=pl.BlockSpec((tm, N), lambda i: (i, 0)),
        compiler_params=pltpu.CompilerParams(dimension_semantics=("parallel",)),
    )(x, w, b.reshape(1, N))


# ----------------------------------------------------------------------------
# fused per-level transformer: pos-emb + depth x (PreNorm Attn + PreNorm FF)
# ----------------------------------------------------------------------------
def _level_kernel(x_ref, pos_ref, mask_ref,
                  ln1g_ref, ln1b_ref, wqkv_ref, wo_ref, bo_ref,
                  ln2g_ref, ln2b_ref, w1_ref, b1_ref, w2_ref, b2_ref,
                  o_ref, *, depth, heads, dim_head):
    C = heads * dim_head
    x = x_ref[...].astype(jnp.float32) + pos_ref[...]        # (rt, C) f32
    mask = mask_ref[...]                                      # (rt, rt) additive

    for d in range(depth):
        # ---- PreNorm + multi-head attention --------------------------------
        # Scale is pre-folded into the q columns of w_qkv.  Scores are taken
        # over the whole row tile with a block-diagonal mask so the MXU sees
        # (rt x rt) tiles; each head's output is projected immediately through
        # its slice of w_o (no lane-masked scratch writes, no concat).
        xn = _chan_ln(x, ln1g_ref[d], ln1b_ref[d]).astype(jnp.bfloat16)
        qkv = jnp.dot(xn, wqkv_ref[d], preferred_element_type=jnp.float32)
        wo_d = wo_ref[d]
        attn = None
        for h in range(heads):
            c0 = h * dim_head
            q = qkv[:, c0:c0 + dim_head].astype(jnp.bfloat16)
            k = qkv[:, C + c0:C + c0 + dim_head].astype(jnp.bfloat16)
            v = qkv[:, 2 * C + c0:2 * C + c0 + dim_head].astype(jnp.bfloat16)
            s = jax.lax.dot_general(q, k, (((1,), (1,)), ((), ())),
                                    preferred_element_type=jnp.float32)
            s = s + mask
            s = s - jnp.max(s, axis=-1, keepdims=True)
            e = jnp.exp(s)
            p = e * pl.reciprocal(jnp.sum(e, axis=-1, keepdims=True), approx=True)
            o_h = jnp.dot(p.astype(jnp.bfloat16), v,
                          preferred_element_type=jnp.float32)
            proj = jnp.dot(o_h.astype(jnp.bfloat16), wo_d[c0:c0 + dim_head, :],
                           preferred_element_type=jnp.float32)
            attn = proj if attn is None else attn + proj
        x = x + attn + bo_ref[d]                               # residual (f32)

        # ---- PreNorm + GELU MLP --------------------------------------------
        xn2 = _chan_ln(x, ln2g_ref[d], ln2b_ref[d]).astype(jnp.bfloat16)
        h1 = jnp.dot(xn2, w1_ref[d], preferred_element_type=jnp.float32) + b1_ref[d]
        h1 = _gelu_tanh(h1).astype(jnp.bfloat16)
        ff = jnp.dot(h1, w2_ref[d], preferred_element_type=jnp.float32) + b2_ref[d]
        x = x + ff

    o_ref[...] = x.astype(o_ref.dtype)


def _pick_row_tile_level(R, band, cap=256):
    """Largest multiple of `band` (block-row band) dividing R, preferring
    multiples of 16 rows, <= cap, and >= 2 grid steps (megacore/pipelining)."""
    cands = [m * band for m in range(1, R // band + 1) if R % (m * band) == 0]
    legal = [rt for rt in cands if rt % 16 == 0 or rt == R]
    for pred in (lambda rt: rt <= cap and R // rt >= 2,
                 lambda rt: rt <= cap):
        sel = [rt for rt in legal if pred(rt)]
        if sel:
            return max(sel)
    return min(legal)


def transformer_level(x2d, lp, *, heads, hb, wb, wc, row_cap=256):
    """All `depth` transformer blocks of one hierarchy level in one call.

    x2d is the natural (B*hc*wc, C) raster layout (no block rearrange); the
    spatial-block structure is expressed by an additive block-diagonal mask
    and a per-row positional vector, both constant across grid steps."""
    R, C = x2d.shape
    dim_head = C // heads
    bp = lp["blocks"]
    depth = bp["w_qkv"].shape[0]
    hid = bp["w1"].shape[-1]
    band = hb * wc                      # rows per band of complete blocks
    bs_w = wc // wb
    rt = _pick_row_tile_level(R, band, row_cap)

    # per-row within-block position and block id (tile start aligned to band,
    # so the pattern is identical for every tile).
    idx = jnp.arange(rt)
    pos_idx = ((idx // wc) % hb) * wb + (idx % wc) % wb
    pos_row = lp["pos_emb"][pos_idx].astype(jnp.float32).reshape(rt, 1)
    bid = (idx // band) * bs_w + (idx % wc) // wb
    mask = jnp.where(bid[:, None] == bid[None, :], 0.0, _NEG).astype(jnp.float32)

    kern = functools.partial(_level_kernel, depth=depth, heads=heads,
                             dim_head=dim_head)

    def cs(shape):                      # constant (resident) block spec
        n = len(shape)
        return pl.BlockSpec(shape, lambda i, _n=n: (0,) * _n)

    in_specs = [
        pl.BlockSpec((rt, C), lambda i: (i, 0)),     # x rows
        cs((rt, 1)), cs((rt, rt)),                   # pos, mask
        cs((depth, 1, C)), cs((depth, 1, C)),        # ln1 g, b
        cs((depth, C, 3 * C)),                       # w_qkv
        cs((depth, C, C)), cs((depth, 1, C)),        # w_o, b_o
        cs((depth, 1, C)), cs((depth, 1, C)),        # ln2 g, b
        cs((depth, C, hid)), cs((depth, 1, hid)),    # ff w1, b1
        cs((depth, hid, C)), cs((depth, 1, C)),      # ff w2, b2
    ]
    args = [x2d, pos_row, mask,
            bp["ln1_g"], bp["ln1_b"], bp["w_qkv"], bp["w_o"], bp["b_o"],
            bp["ln2_g"], bp["ln2_b"], bp["w1"], bp["b1"], bp["w2"], bp["b2"]]

    return pl.pallas_call(
        kern,
        grid=(R // rt,),
        out_shape=jax.ShapeDtypeStruct((R, C), jnp.bfloat16),
        in_specs=in_specs,
        out_specs=pl.BlockSpec((rt, C), lambda i: (i, 0)),
        compiler_params=pltpu.CompilerParams(dimension_semantics=("parallel",)),
    )(*args)


# ----------------------------------------------------------------------------
# fused Aggregate: Conv2d(3x3, pad 1) -> LayerNorm -> MaxPool2d(3, 2, 1)
# ----------------------------------------------------------------------------
def _aggregate_kernel(x_ref, w_ref, b_ref, g_ref, bb_ref, cm_ref, o_ref,
                      pad_ref, *, hc, wc):
    wp2 = wc + 2
    L = hc * wp2
    x = x_ref[0]                                        # ((hc+3)*wp2, Cin) bf16

    # 3x3 conv as 9 shifted-row-slice matmuls on the flattened padded layout.
    acc = None
    for k in range(9):
        ki, kj = divmod(k, 3)
        off = ki * wp2 + kj
        term = jnp.dot(x[off:off + L, :], w_ref[k],
                       preferred_element_type=jnp.float32)
        acc = term if acc is None else acc + term
    y = _chan_ln(acc + b_ref[...], g_ref[...], bb_ref[...])      # (L, Cout) f32

    # kill the 2 wrap-around garbage columns of each flattened row
    y = y + cm_ref[...]

    # max-pool 3x3 against a sentinel-padded VMEM scratch.  Only the border
    # bands need the sentinel; the interior is fully overwritten each step.
    cout = y.shape[1]
    pad_ref[pl.ds(0, wp2 + 1), :] = jnp.full((wp2 + 1, cout), _NEG, jnp.float32)
    pad_ref[pl.ds(wp2 + 1 + L, wp2 + 1), :] = jnp.full((wp2 + 1, cout), _NEG,
                                                       jnp.float32)
    pad_ref[pl.ds(wp2 + 1, L), :] = y
    pool = pad_ref[pl.ds(0, L), :]
    for t in range(1, 9):
        di, dj = divmod(t, 3)
        pool = jnp.maximum(pool, pad_ref[pl.ds(di * wp2 + dj, L), :])
    o_ref[0] = pool.astype(o_ref.dtype)


def aggregate(x2d, B, hc, wc, ap):
    cin = x2d.shape[-1]
    cout = ap["conv_w"].shape[2]
    wp2 = wc + 2
    L = hc * wp2
    # zero-pad (H by (1,2), W by (1,1)) and flatten spatial -> rows (bf16).
    xi = x2d.reshape(B, hc, wc, cin)
    xp = jnp.pad(xi, ((0, 0), (1, 2), (1, 1), (0, 0)))
    x_flat = xp.reshape(B, (hc + 3) * wp2, cin)
    # additive mask flagging the 2 garbage columns per flattened row
    col_ok = jnp.tile(jnp.arange(wp2) < wc, (hc,))
    cmask = jnp.where(col_ok, 0.0, _NEG).astype(jnp.float32).reshape(L, 1)

    kern = functools.partial(_aggregate_kernel, hc=hc, wc=wc)
    pooled_full = pl.pallas_call(
        kern,
        grid=(B,),
        out_shape=jax.ShapeDtypeStruct((B, L, cout), jnp.bfloat16),
        in_specs=[pl.BlockSpec((1, (hc + 3) * wp2, cin), lambda i: (i, 0, 0)),
                  pl.BlockSpec((9, cin, cout), lambda i: (0, 0, 0)),
                  pl.BlockSpec((1, cout), lambda i: (0, 0)),
                  pl.BlockSpec((1, cout), lambda i: (0, 0)),
                  pl.BlockSpec((1, cout), lambda i: (0, 0)),
                  pl.BlockSpec((L, 1), lambda i: (0, 0))],
        out_specs=pl.BlockSpec((1, L, cout), lambda i: (i, 0, 0)),
        scratch_shapes=[pltpu.VMEM(((hc + 2) * wp2 + 2, cout), jnp.float32)],
        compiler_params=pltpu.CompilerParams(dimension_semantics=("parallel",)),
    )(x_flat, ap["conv_w"], ap["conv_b"].reshape(1, cout),
      ap["ln_g"].reshape(1, cout), ap["ln_b"].reshape(1, cout), cmask)

    ho = (hc - 1) // 2 + 1
    wo = (wc - 1) // 2 + 1
    # TODO(synk): fold this stride-2 pick into the kernel (strided ref reads)
    # so only ho*wo rows are written to HBM for large feature maps.
    out = pooled_full.reshape(B, hc, wp2, cout)[:, 0:hc:2, 0:wc:2, :]
    return out.reshape(B * ho * wo, cout), ho, wo


# ----------------------------------------------------------------------------
# classifier head: LayerNorm -> mean over (h w) -> Linear
# ----------------------------------------------------------------------------
def _head_kernel(x_ref, g_ref, b_ref, w_ref, bias_ref, o_ref):
    x = x_ref[...].astype(jnp.float32)
    xn = _chan_ln(x, g_ref[...], b_ref[...])             # (B, S, C)
    pooled = jnp.mean(xn, axis=1)                        # (B, C)
    o_ref[...] = (jnp.dot(pooled.astype(jnp.bfloat16), w_ref[...],
                          preferred_element_type=jnp.float32) + bias_ref[...])


def mlp_head(x, hp):
    B, S, C = x.shape
    N = hp["w"].shape[1]
    return pl.pallas_call(
        _head_kernel,
        out_shape=jax.ShapeDtypeStruct((B, N), jnp.float32),
    )(x, hp["ln_g"].reshape(1, C), hp["ln_b"].reshape(1, C),
      hp["w"], hp["b"].reshape(1, N))


# ----------------------------------------------------------------------------
# glue: patch embedding + level loop
# ----------------------------------------------------------------------------
def patch_embed(img, w, b, patch_size):
    B, C, H, W = img.shape
    p = patch_size
    hp, wp = H // p, W // p
    x = img.reshape(B, C, hp, p, wp, p)
    x = jnp.transpose(x, (0, 2, 4, 3, 5, 1))             # (B, hp, wp, p1, p2, C)
    x = x.reshape(B * hp * wp, p * p * C).astype(jnp.bfloat16)
    y = matmul_bias(x, w, b)                              # (B*hp*wp, dim0) bf16
    return y, hp, wp


def htnet_forward(img, params, cfg):
    B = img.shape[0]
    num_h = cfg["num_hierarchies"]
    layer_heads = [(2 ** i) * cfg["heads"] for i in range(num_h)]
    x2d, hc, wc = patch_embed(img, params["w_pe"], params["b_pe"],
                              cfg["patch_size"])
    for idx, level in enumerate(reversed(range(num_h))):
        lp = params["levels"][idx]
        heads = layer_heads[idx]
        bs = 2 ** level
        hb, wb = hc // bs, wc // bs
        x2d = transformer_level(x2d, lp, heads=heads, hb=hb, wb=wb, wc=wc)
        if lp["agg"] is not None:
            x2d, hc, wc = aggregate(x2d, B, hc, wc, lp["agg"])
    C = x2d.shape[-1]
    return mlp_head(x2d.reshape(B, hc * wc, C), params["head"])


# ----------------------------------------------------------------------------
# deterministic parameter construction (shapes follow HTNet.__init__);
# per-block weights stacked along a leading `depth` axis, matmul weights bf16,
# attention scale folded into the q-columns of w_qkv.
# ----------------------------------------------------------------------------
def init_params(key, cfg):
    patch_size, num_classes = cfg["patch_size"], cfg["num_classes"]
    dim, heads, num_h = cfg["dim"], cfg["heads"], cfg["num_hierarchies"]
    mlp_mult, channels = cfg["mlp_mult"], cfg["channels"]
    block_repeats = cfg["block_repeats"]
    if not isinstance(block_repeats, tuple):
        block_repeats = (block_repeats,) * num_h

    patch_dim = channels * patch_size ** 2
    fmap_size = cfg["image_size"] // patch_size
    blocks = 2 ** (num_h - 1)
    seq_len = (fmap_size // blocks) ** 2
    hierarchies = list(reversed(range(num_h)))
    mults = [2 ** i for i in reversed(hierarchies)]
    layer_heads = [m * heads for m in mults]
    layer_dims = [m * dim for m in mults]
    last_dim = layer_dims[-1]
    layer_dims = layer_dims + [layer_dims[-1]]
    dim_pairs = list(zip(layer_dims[:-1], layer_dims[1:]))

    keys = iter(jax.random.split(key, 1024))
    nrm = lambda shape, s=0.02: (s * jax.random.normal(next(keys), shape)
                                 ).astype(jnp.float32)
    bf = lambda a: a.astype(jnp.bfloat16)
    zeros = lambda shape: jnp.zeros(shape, jnp.float32)
    ones = lambda shape: jnp.ones(shape, jnp.float32)

    params = {"w_pe": bf(nrm((patch_dim, layer_dims[0]))),
              "b_pe": zeros((layer_dims[0],)),
              "levels": []}
    for level, hds, (dim_in, dim_out), depth in zip(
            hierarchies, layer_heads, dim_pairs, block_repeats):
        dim_head = dim_in // hds
        scale = dim_head ** -0.5
        hid = dim_in * mlp_mult
        wqkv = []
        for _ in range(depth):
            w = nrm((dim_in, 3 * dim_in))
            wqkv.append(w.at[:, :dim_in].multiply(scale))   # fold attn scale
        blocks_p = dict(
            ln1_g=ones((depth, 1, dim_in)), ln1_b=zeros((depth, 1, dim_in)),
            w_qkv=bf(jnp.stack(wqkv)),
            w_o=bf(jnp.stack([nrm((dim_in, dim_in)) for _ in range(depth)])),
            b_o=zeros((depth, 1, dim_in)),
            ln2_g=ones((depth, 1, dim_in)), ln2_b=zeros((depth, 1, dim_in)),
            w1=bf(jnp.stack([nrm((dim_in, hid)) for _ in range(depth)])),
            b1=zeros((depth, 1, hid)),
            w2=bf(jnp.stack([nrm((hid, dim_in)) for _ in range(depth)])),
            b2=zeros((depth, 1, dim_in)),
        )
        agg = None
        if level != 0:
            agg = dict(conv_w=bf(nrm((9, dim_in, dim_out))),   # (tap, Cin, Cout)
                       conv_b=zeros((dim_out,)),
                       ln_g=ones((dim_out,)), ln_b=zeros((dim_out,)))
        params["levels"].append(dict(
            pos_emb=jax.random.normal(next(keys), (seq_len,)).astype(jnp.float32),
            blocks=blocks_p, agg=agg))
    params["head"] = dict(ln_g=ones((last_dim,)), ln_b=zeros((last_dim,)),
                          w=bf(nrm((last_dim, num_classes))),
                          b=zeros((num_classes,)))
    return params


if __name__ == "__main__":
    cfg = dict(image_size=16, patch_size=4, num_classes=5, dim=32, heads=2,
               num_hierarchies=2, block_repeats=(2, 1), mlp_mult=2, channels=3)
    key = jax.random.PRNGKey(0)
    kp, kx = jax.random.split(key)
    params = init_params(kp, cfg)
    img = jax.random.normal(
        kx, (2, cfg["channels"], cfg["image_size"], cfg["image_size"]),
        dtype=jnp.float32)

    fwd = jax.jit(functools.partial(htnet_forward, cfg=cfg))
    out = jax.block_until_ready(fwd(img, params))
    assert out.shape == (2, cfg["num_classes"])
    assert bool(jnp.all(jnp.isfinite(out)))
    print("KERNEL_OK")
</pallas_src>

<mosaic_0001>
module attributes {stable_mosaic.version = 11 : i64} {
  func.func @_matmul_bias_kernel(%arg0: i32, %arg1: memref<16x48xbf16, #tpu.memory_space<vmem>>, %arg2: memref<48x32xbf16, #tpu.memory_space<vmem>>, %arg3: memref<1x32xf32, #tpu.memory_space<vmem>>, %arg4: memref<16x32xbf16, #tpu.memory_space<vmem>>) attributes {dimension_semantics = [#tpu.dimension_semantics<parallel>], iteration_bounds = array<i64: 2>, scalar_prefetch = 0 : i64, scratch_operands = 0 : i64, tpu.core_type = #tpu.core_type<tc>, window_params = [{transform_indices = @transform_0, window_bounds = array<i64: 16, 48>}, {pipeline_mode = #tpu.pipeline_mode<synchronous>, transform_indices = @transform_1, window_bounds = array<i64: 48, 32>}, {pipeline_mode = #tpu.pipeline_mode<synchronous>, transform_indices = @transform_2, window_bounds = array<i64: 1, 32>}, {transform_indices = @transform_3, window_bounds = array<i64: 16, 32>}]} {
    %c0 = arith.constant 0 : index
    %c0_0 = arith.constant 0 : index
    %0 = vector.load %arg1[%c0, %c0_0] : memref<16x48xbf16, #tpu.memory_space<vmem>>, vector<16x48xbf16>
    %c0_1 = arith.constant 0 : index
    %c0_2 = arith.constant 0 : index
    %1 = vector.load %arg2[%c0_1, %c0_2] : memref<48x32xbf16, #tpu.memory_space<vmem>>, vector<48x32xbf16>
    %cst = arith.constant dense<0.000000e+00> : vector<16x32xf32>
    %2 = tpu.matmul %0, %1, %cst {dimension_numbers = #tpu.dot_dimension_numbers<[1], [0], [0], [1], [0, 0, 1, 1], [], []>} : vector<16x48xbf16>, vector<48x32xbf16>, vector<16x32xf32> -> vector<16x32xf32>
    %c0_3 = arith.constant 0 : index
    %c0_4 = arith.constant 0 : index
    %3 = vector.load %arg3[%c0_3, %c0_4] : memref<1x32xf32, #tpu.memory_space<vmem>>, vector<1x32xf32>
    %4 = vector.broadcast %3 : vector<1x32xf32> to vector<16x32xf32>
    %5 = arith.addf %2, %4 : vector<16x32xf32>
    %6 = arith.truncf %5 : vector<16x32xf32> to vector<16x32xbf16>
    %c0_5 = arith.constant 0 : index
    %c0_6 = arith.constant 0 : index
    %7 = vector.load %arg4[%c0_5, %c0_6] : memref<16x32xbf16, #tpu.memory_space<vmem>>, vector<16x32xbf16>
    tpu.vector_store %arg4[%c0_5, %c0_6], %6 {strides = array<i32>} : memref<16x32xbf16, #tpu.memory_space<vmem>>, vector<16x32xbf16>,
    return
  }
  func.func @transform_0(%arg0: i32) -> (i32, i32) {
    %c0_i32 = arith.constant 0 : i32
    %c0_i32_0 = arith.constant 0 : i32
    return %arg0, %c0_i32 : i32, i32
  }
  func.func @transform_1(%arg0: i32) -> (i32, i32) {
    %c0_i32 = arith.constant 0 : i32
    %c0_i32_0 = arith.constant 0 : i32
    %c0_i32_1 = arith.constant 0 : i32
    return %c0_i32, %c0_i32_0 : i32, i32
  }
  func.func @transform_2(%arg0: i32) -> (i32, i32) {
    %c0_i32 = arith.constant 0 : i32
    %c0_i32_0 = arith.constant 0 : i32
    %c0_i32_1 = arith.constant 0 : i32
    return %c0_i32, %c0_i32_0 : i32, i32
  }
  func.func @transform_3(%arg0: i32) -> (i32, i32) {
    %c0_i32 = arith.constant 0 : i32
    %c0_i32_0 = arith.constant 0 : i32
    return %arg0, %c0_i32 : i32, i32
  }
}

module attributes {stable_mosaic.version = 11 : i64} {
  func.func @_aggregate_kernel(%arg0: i32, %arg1: memref<1x42x32xbf16, #tpu.memory_space<vmem>>, %arg2: memref<9x32x64xbf16, #tpu.memory_space<vmem>>, %arg3: memref<1x64xf32, #tpu.memory_space<vmem>>, %arg4: memref<1x64xf32, #tpu.memory_space<vmem>>, %arg5: memref<1x64xf32, #tpu.memory_space<vmem>>, %arg6: memref<24x1xf32, #tpu.memory_space<vmem>>, %arg7: memref<1x24x64xbf16, #tpu.memory_space<vmem>>, %arg8: memref<38x64xf32, #tpu.memory_space<vmem>>) attributes {dimension_semantics = [#tpu.dimension_semantics<parallel>], iteration_bounds = array<i64: 2>, scalar_prefetch = 0 : i64, scratch_operands = 1 : i64, tpu.core_type = #tpu.core_type<tc>, window_params = [{transform_indices = @transform_0, window_bounds = array<i64: 1, 42, 32>}, {pipeline_mode = #tpu.pipeline_mode<synchronous>, transform_indices = @transform_1, window_bounds = array<i64: 9, 32, 64>}, {pipeline_mode = #tpu.pipeline_mode<synchronous>, transform_indices = @transform_2, window_bounds = array<i64: 1, 64>}, {pipeline_mode = #tpu.pipeline_mode<synchronous>, transform_indices = @transform_3, window_bounds = array<i64: 1, 64>}, {pipeline_mode = #tpu.pipeline_mode<synchronous>, transform_indices = @transform_4, window_bounds = array<i64: 1, 64>}, {pipeline_mode = #tpu.pipeline_mode<synchronous>, transform_indices = @transform_5, window_bounds = array<i64: 24, 1>}, {transform_indices = @transform_6, window_bounds = array<i64: 1, 24, 64>}]} {
    %c0 = arith.constant 0 : index
    %c0_0 = arith.constant 0 : index
    %c0_1 = arith.constant 0 : index
    %0 = vector.load %arg1[%c0, %c0_0, %c0_1] : memref<1x42x32xbf16, #tpu.memory_space<vmem>>, vector<1x42x32xbf16>
    %1 = vector.shape_cast %0 : vector<1x42x32xbf16> to vector<42x32xbf16>
    %2 = vector.extract_strided_slice %1 {offsets = [0, 0], sizes = [24, 32], strides = [1, 1]} : vector<42x32xbf16> to vector<24x32xbf16>
    %c0_2 = arith.constant 0 : index
    %c0_3 = arith.constant 0 : index
    %c0_4 = arith.constant 0 : index
    %3 = vector.load %arg2[%c0_2, %c0_3, %c0_4] : memref<9x32x64xbf16, #tpu.memory_space<vmem>>, vector<1x32x64xbf16>
    %4 = vector.shape_cast %3 : vector<1x32x64xbf16> to vector<32x64xbf16>
    %cst = arith.constant dense<0.000000e+00> : vector<24x64xf32>
    %5 = tpu.matmul %2, %4, %cst {dimension_numbers = #tpu.dot_dimension_numbers<[1], [0], [0], [1], [0, 0, 1, 1], [], []>} : vector<24x32xbf16>, vector<32x64xbf16>, vector<24x64xf32> -> vector<24x64xf32>
    %6 = vector.extract_strided_slice %1 {offsets = [1, 0], sizes = [24, 32], strides = [1, 1]} : vector<42x32xbf16> to vector<24x32xbf16>
    %c1 = arith.constant 1 : index
    %c0_5 = arith.constant 0 : index
    %c0_6 = arith.constant 0 : index
    %7 = vector.load %arg2[%c1, %c0_5, %c0_6] : memref<9x32x64xbf16, #tpu.memory_space<vmem>>, vector<1x32x64xbf16>
    %8 = vector.shape_cast %7 : vector<1x32x64xbf16> to vector<32x64xbf16>
    %cst_7 = arith.constant dense<0.000000e+00> : vector<24x64xf32>
    %9 = tpu.matmul %6, %8, %cst_7 {dimension_numbers = #tpu.dot_dimension_numbers<[1], [0], [0], [1], [0, 0, 1, 1], [], []>} : vector<24x32xbf16>, vector<32x64xbf16>, vector<24x64xf32> -> vector<24x64xf32>
    %10 = arith.addf %5, %9 : vector<24x64xf32>
    %11 = vector.extract_strided_slice %1 {offsets = [2, 0], sizes = [24, 32], strides = [1, 1]} : vector<42x32xbf16> to vector<24x32xbf16>
    %c2 = arith.constant 2 : index
    %c0_8 = arith.constant 0 : index
    %c0_9 = arith.constant 0 : index
    %12 = vector.load %arg2[%c2, %c0_8, %c0_9] : memref<9x32x64xbf16, #tpu.memory_space<vmem>>, vector<1x32x64xbf16>
    %13 = vector.shape_cast %12 : vector<1x32x64xbf16> to vector<32x64xbf16>
    %cst_10 = arith.constant dense<0.000000e+00> : vector<24x64xf32>
    %14 = tpu.matmul %11, %13, %cst_10 {dimension_numbers = #tpu.dot_dimension_numbers<[1], [0], [0], [1], [0, 0, 1, 1], [], []>} : vector<24x32xbf16>, vector<32x64xbf16>, vector<24x64xf32> -> vector<24x64xf32>
    %15 = arith.addf %10, %14 : vector<24x64xf32>
    %16 = vector.extract_strided_slice %1 {offsets = [6, 0], sizes = [24, 32], strides = [1, 1]} : vector<42x32xbf16> to vector<24x32xbf16>
    %c3 = arith.constant 3 : index
    %c0_11 = arith.constant 0 : index
    %c0_12 = arith.constant 0 : index
    %17 = vector.load %arg2[%c3, %c0_11, %c0_12] : memref<9x32x64xbf16, #tpu.memory_space<vmem>>, vector<1x32x64xbf16>
    %18 = vector.shape_cast %17 : vector<1x32x64xbf16> to vector<32x64xbf16>
    %cst_13 = arith.constant dense<0.000000e+00> : vector<24x64xf32>
    %19 = tpu.matmul %16, %18, %cst_13 {dimension_numbers = #tpu.dot_dimension_numbers<[1], [0], [0], [1], [0, 0, 1, 1], [], []>} : vector<24x32xbf16>, vector<32x64xbf16>, vector<24x64xf32> -> vector<24x64xf32>
    %20 = arith.addf %15, %19 : vector<24x64xf32>
    %21 = vector.extract_strided_slice %1 {offsets = [7, 0], sizes = [24, 32], strides = [1, 1]} : vector<42x32xbf16> to vector<24x32xbf16>
    %c4 = arith.constant 4 : index
    %c0_14 = arith.constant 0 : index
    %c0_15 = arith.constant 0 : index
    %22 = vector.load %arg2[%c4, %c0_14, %c0_15] : memref<9x32x64xbf16, #tpu.memory_space<vmem>>, vector<1x32x64xbf16>
    %23 = vector.shape_cast %22 : vector<1x32x64xbf16> to vector<32x64xbf16>
    %cst_16 = arith.constant dense<0.000000e+00> : vector<24x64xf32>
    %24 = tpu.matmul %21, %23, %cst_16 {dimension_numbers = #tpu.dot_dimension_numbers<[1], [0], [0], [1], [0, 0, 1, 1], [], []>} : vector<24x32xbf16>, vector<32x64xbf16>, vector<24x64xf32> -> vector<24x64xf32>
    %25 = arith.addf %20, %24 : vector<24x64xf32>
    %26 = vector.extract_strided_slice %1 {offsets = [8, 0], sizes = [24, 32], strides = [1, 1]} : vector<42x32xbf16> to vector<24x32xbf16>
    %c5 = arith.constant 5 : index
    %c0_17 = arith.constant 0 : index
    %c0_18 = arith.constant 0 : index
    %27 = vector.load %arg2[%c5, %c0_17, %c0_18] : memref<9x32x64xbf16, #tpu.memory_space<vmem>>, vector<1x32x64xbf16>
    %28 = vector.shape_cast %27 : vector<1x32x64xbf16> to vector<32x64xbf16>
    %cst_19 = arith.constant dense<0.000000e+00> : vector<24x64xf32>
    %29 = tpu.matmul %26, %28, %cst_19 {dimension_numbers = #tpu.dot_dimension_numbers<[1], [0], [0], [1], [0, 0, 1, 1], [], []>} : vector<24x32xbf16>, vector<32x64xbf16>, vector<24x64xf32> -> vector<24x64xf32>
    %30 = arith.addf %25, %29 : vector<24x64xf32>
    %31 = vector.extract_strided_slice %1 {offsets = [12, 0], sizes = [24, 32], strides = [1, 1]} : vector<42x32xbf16> to vector<24x32xbf16>
    %c6 = arith.constant 6 : index
    %c0_20 = arith.constant 0 : index
    %c0_21 = arith.constant 0 : index
    %32 = vector.load %arg2[%c6, %c0_20, %c0_21] : memref<9x32x64xbf16, #tpu.memory_space<vmem>>, vector<1x32x64xbf16>
    %33 = vector.shape_cast %32 : vector<1x32x64xbf16> to vector<32x64xbf16>
    %cst_22 = arith.constant dense<0.000000e+00> : vector<24x64xf32>
    %34 = tpu.matmul %31, %33, %cst_22 {dimension_numbers = #tpu.dot_dimension_numbers<[1], [0], [0], [1], [0, 0, 1, 1], [], []>} : vector<24x32xbf16>, vector<32x64xbf16>, vector<24x64xf32> -> vector<24x64xf32>
    %35 = arith.addf %30, %34 : vector<24x64xf32>
    %36 = vector.extract_strided_slice %1 {offsets = [13, 0], sizes = [24, 32], strides = [1, 1]} : vector<42x32xbf16> to vector<24x32xbf16>
    %c7 = arith.constant 7 : index
    %c0_23 = arith.constant 0 : index
    %c0_24 = arith.constant 0 : index
    %37 = vector.load %arg2[%c7, %c0_23, %c0_24] : memref<9x32x64xbf16, #tpu.memory_space<vmem>>, vector<1x32x64xbf16>
    %38 = vector.shape_cast %37 : vector<1x32x64xbf16> to vector<32x64xbf16>
    %cst_25 = arith.constant dense<0.000000e+00> : vector<24x64xf32>
    %39 = tpu.matmul %36, %38, %cst_25 {dimension_numbers = #tpu.dot_dimension_numbers<[1], [0], [0], [1], [0, 0, 1, 1], [], []>} : vector<24x32xbf16>, vector<32x64xbf16>, vector<24x64xf32> -> vector<24x64xf32>
    %40 = arith.addf %35, %39 : vector<24x64xf32>
    %41 = vector.extract_strided_slice %1 {offsets = [14, 0], sizes = [24, 32], strides = [1, 1]} : vector<42x32xbf16> to vector<24x32xbf16>
    %c8 = arith.constant 8 : index
    %c0_26 = arith.constant 0 : index
    %c0_27 = arith.constant 0 : index
    %42 = vector.load %arg2[%c8, %c0_26, %c0_27] : memref<9x32x64xbf16, #tpu.memory_space<vmem>>, vector<1x32x64xbf16>
    %43 = vector.shape_cast %42 : vector<1x32x64xbf16> to vector<32x64xbf16>
    %cst_28 = arith.constant dense<0.000000e+00> : vector<24x64xf32>
    %44 = tpu.matmul %41, %43, %cst_28 {dimension_numbers = #tpu.dot_dimension_numbers<[1], [0], [0], [1], [0, 0, 1, 1], [], []>} : vector<24x32xbf16>, vector<32x64xbf16>, vector<24x64xf32> -> vector<24x64xf32>
    %45 = arith.addf %40, %44 : vector<24x64xf32>
    %c0_29 = arith.constant 0 : index
    %c0_30 = arith.constant 0 : index
    %46 = vector.load %arg3[%c0_29, %c0_30] : memref<1x64xf32, #tpu.memory_space<vmem>>, vector<1x64xf32>
    %47 = vector.broadcast %46 : vector<1x64xf32> to vector<24x64xf32>
    %48 = arith.addf %45, %47 : vector<24x64xf32>
    %c0_31 = arith.constant 0 : index
    %c0_32 = arith.constant 0 : index
    %49 = vector.load %arg4[%c0_31, %c0_32] : memref<1x64xf32, #tpu.memory_space<vmem>>, vector<1x64xf32>
    %c0_33 = arith.constant 0 : index
    %c0_34 = arith.constant 0 : index
    %50 = vector.load %arg5[%c0_33, %c0_34] : memref<1x64xf32, #tpu.memory_space<vmem>>, vector<1x64xf32>
    %cst_35 = arith.constant dense<0.000000e+00> : vector<24xf32>
    %51 = vector.multi_reduction <add>, %48, %cst_35 [1] : vector<24x64xf32> to vector<24xf32>
    %52 = vector.shape_cast %51 : vector<24xf32> to vector<24x1xf32>
    %cst_36 = arith.constant 6.400000e+01 : f32
    %53 = vector.broadcast %cst_36 : f32 to vector<24x1xf32>
    %54 = arith.divf %52, %53 : vector<24x1xf32>
    %55 = vector.broadcast %54 : vector<24x1xf32> to vector<24x64xf32>
    %56 = arith.subf %48, %55 : vector<24x64xf32>
    %57 = arith.mulf %56, %56 : vector<24x64xf32>
    %cst_37 = arith.constant dense<0.000000e+00> : vector<24xf32>
    %58 = vector.multi_reduction <add>, %57, %cst_37 [1] : vector<24x64xf32> to vector<24xf32>
    %59 = vector.shape_cast %58 : vector<24xf32> to vector<24x1xf32>
    %cst_38 = arith.constant 6.400000e+01 : f32
    %60 = vector.broadcast %cst_38 : f32 to vector<24x1xf32>
    %61 = arith.divf %59, %60 : vector<24x1xf32>
    %62 = vector.broadcast %54 : vector<24x1xf32> to vector<24x64xf32>
    %63 = arith.subf %48, %62 : vector<24x64xf32>
    %cst_39 = arith.constant 9.99999974E-6 : f32
    %64 = vector.broadcast %cst_39 : f32 to vector<24x1xf32>
    %65 = arith.addf %61, %64 : vector<24x1xf32>
    %66 = math.rsqrt %65 : vector<24x1xf32>
    %67 = vector.broadcast %66 : vector<24x1xf32> to vector<24x64xf32>
    %68 = arith.mulf %63, %67 : vector<24x64xf32>
    %69 = vector.broadcast %49 : vector<1x64xf32> to vector<24x64xf32>
    %70 = arith.mulf %68, %69 : vector<24x64xf32>
    %71 = vector.broadcast %50 : vector<1x64xf32> to vector<24x64xf32>
    %72 = arith.addf %70, %71 : vector<24x64xf32>
    %c0_40 = arith.constant 0 : index
    %c0_41 = arith.constant 0 : index
    %73 = vector.load %arg6[%c0_40, %c0_41] : memref<24x1xf32, #tpu.memory_space<vmem>>, vector<24x1xf32>
    %74 = vector.broadcast %73 : vector<24x1xf32> to vector<24x64xf32>
    %75 = arith.addf %72, %74 : vector<24x64xf32>
    %cst_42 = arith.constant -1.000000e+30 : f32
    %76 = vector.broadcast %cst_42 : f32 to vector<7x64xf32>
    %c0_43 = arith.constant 0 : index
    %c0_44 = arith.constant 0 : index
    %77 = vector.load %arg8[%c0_43, %c0_44] : memref<38x64xf32, #tpu.memory_space<vmem>>, vector<7x64xf32>
    tpu.vector_store %arg8[%c0_43, %c0_44], %76 {strides = array<i32>} : memref<38x64xf32, #tpu.memory_space<vmem>>, vector<7x64xf32>,
    %cst_45 = arith.constant -1.000000e+30 : f32
    %78 = vector.broadcast %cst_45 : f32 to vector<7x64xf32>
    %c31 = arith.constant 31 : index
    %c0_46 = arith.constant 0 : index
    %79 = vector.load %arg8[%c31, %c0_46] : memref<38x64xf32, #tpu.memory_space<vmem>>, vector<7x64xf32>
    tpu.vector_store %arg8[%c31, %c0_46], %78 {strides = array<i32>} : memref<38x64xf32, #tpu.memory_space<vmem>>, vector<7x64xf32>,
    %c7_47 = arith.constant 7 : index
    %c0_48 = arith.constant 0 : index
    %80 = vector.load %arg8[%c7_47, %c0_48] : memref<38x64xf32, #tpu.memory_space<vmem>>, vector<24x64xf32>
    tpu.vector_store %arg8[%c7_47, %c0_48], %75 {strides = array<i32>} : memref<38x64xf32, #tpu.memory_space<vmem>>, vector<24x64xf32>,
    %c0_49 = arith.constant 0 : index
    %c0_50 = arith.constant 0 : index
    %81 = vector.load %arg8[%c0_49, %c0_50] : memref<38x64xf32, #tpu.memory_space<vmem>>, vector<24x64xf32>
    %c1_51 = arith.constant 1 : index
    %c0_52 = arith.constant 0 : index
    %82 = vector.load %arg8[%c1_51, %c0_52] : memref<38x64xf32, #tpu.memory_space<vmem>>, vector<24x64xf32>
    %83 = arith.maximumf %81, %82 : vector<24x64xf32>
    %c2_53 = arith.constant 2 : index
    %c0_54 = arith.constant 0 : index
    %84 = vector.load %arg8[%c2_53, %c0_54] : memref<38x64xf32, #tpu.memory_space<vmem>>, vector<24x64xf32>
    %85 = arith.maximumf %83, %84 : vector<24x64xf32>
    %c6_55 = arith.constant 6 : index
    %c0_56 = arith.constant 0 : index
    %86 = vector.load %arg8[%c6_55, %c0_56] : memref<38x64xf32, #tpu.memory_space<vmem>>, vector<24x64xf32>
    %87 = arith.maximumf %85, %86 : vector<24x64xf32>
    %c7_57 = arith.constant 7 : index
    %c0_58 = arith.constant 0 : index
    %88 = vector.load %arg8[%c7_57, %c0_58] : memref<38x64xf32, #tpu.memory_space<vmem>>, vector<24x64xf32>
    %89 = arith.maximumf %87, %88 : vector<24x64xf32>
    %c8_59 = arith.constant 8 : index
    %c0_60 = arith.constant 0 : index
    %90 = vector.load %arg8[%c8_59, %c0_60] : memref<38x64xf32, #tpu.memory_space<vmem>>, vector<24x64xf32>
    %91 = arith.maximumf %89, %90 : vector<24x64xf32>
    %c12 = arith.constant 12 : index
    %c0_61 = arith.constant 0 : index
    %92 = vector.load %arg8[%c12, %c0_61] : memref<38x64xf32, #tpu.memory_space<vmem>>, vector<24x64xf32>
    %93 = arith.maximumf %91, %92 : vector<24x64xf32>
    %c13 = arith.constant 13 : index
    %c0_62 = arith.constant 0 : index
    %94 = vector.load %arg8[%c13, %c0_62] : memref<38x64xf32, #tpu.memory_space<vmem>>, vector<24x64xf32>
    %95 = arith.maximumf %93, %94 : vector<24x64xf32>
    %c14 = arith.constant 14 : index
    %c0_63 = arith.constant 0 : index
    %96 = vector.load %arg8[%c14, %c0_63] : memref<38x64xf32, #tpu.memory_space<vmem>>, vector<24x64xf32>
    %97 = arith.maximumf %95, %96 : vector<24x64xf32>
    %98 = arith.truncf %97 : vector<24x64xf32> to vector<24x64xbf16>
    %c0_64 = arith.constant 0 : index
    %c0_65 = arith.constant 0 : index
    %c0_66 = arith.constant 0 : index
    %99 = vector.load %arg7[%c0_64, %c0_65, %c0_66] : memref<1x24x64xbf16, #tpu.memory_space<vmem>>, vector<1x24x64xbf16>
    %100 = vector.shape_cast %99 : vector<1x24x64xbf16> to vector<24x64xbf16>
    %101 = vector.shape_cast %98 : vector<24x64xbf16> to vector<1x24x64xbf16>
    tpu.vector_store %arg7[%c0_64, %c0_65, %c0_66], %101 {strides = array<i32>} : memref<1x24x64xbf16, #tpu.memory_space<vmem>>, vector<1x24x64xbf16>,
    return
  }
  func.func @transform_0(%arg0: i32) -> (i32, i32, i32) {
    %c0_i32 = arith.constant 0 : i32
    %c0_i32_0 = arith.constant 0 : i32
    %c0_i32_1 = arith.constant 0 : i32
    return %arg0, %c0_i32, %c0_i32_0 : i32, i32, i32
  }
  func.func @transform_1(%arg0: i32) -> (i32, i32, i32) {
    %c0_i32 = arith.constant 0 : i32
    %c0_i32_0 = arith.constant 0 : i32
    %c0_i32_1 = arith.constant 0 : i32
    %c0_i32_2 = arith.constant 0 : i32
    return %c0_i32, %c0_i32_0, %c0_i32_1 : i32, i32, i32
  }
  func.func @transform_2(%arg0: i32) -> (i32, i32) {
    %c0_i32 = arith.constant 0 : i32
    %c0_i32_0 = arith.constant 0 : i32
    %c0_i32_1 = arith.constant 0 : i32
    return %c0_i32, %c0_i32_0 : i32, i32
  }
  func.func @transform_3(%arg0: i32) -> (i32, i32) {
    %c0_i32 = arith.constant 0 : i32
    %c0_i32_0 = arith.constant 0 : i32
    %c0_i32_1 = arith.constant 0 : i32
    return %c0_i32, %c0_i32_0 : i32, i32
  }
  func.func @transform_4(%arg0: i32) -> (i32, i32) {
    %c0_i32 = arith.constant 0 : i32
    %c0_i32_0 = arith.constant 0 : i32
    %c0_i32_1 = arith.constant 0 : i32
    return %c0_i32, %c0_i32_0 : i32, i32
  }
  func.func @transform_5(%arg0: i32) -> (i32, i32) {
    %c0_i32 = arith.constant 0 : i32
    %c0_i32_0 = arith.constant 0 : i32
    %c0_i32_1 = arith.constant 0 : i32
    return %c0_i32, %c0_i32_0 : i32, i32
  }
  func.func @transform_6(%arg0: i32) -> (i32, i32, i32) {
    %c0_i32 = arith.constant 0 : i32
    %c0_i32_0 = arith.constant 0 : i32
    %c0_i32_1 = arith.constant 0 : i32
    return %arg0, %c0_i32, %c0_i32_0 : i32, i32, i32
  }
}

module attributes {stable_mosaic.version = 11 : i64} {
  func.func @_level_kernel(%arg0: i32, %arg1: memref<16x32xbf16, #tpu.memory_space<vmem>>, %arg2: memref<16x1xf32, #tpu.memory_space<vmem>>, %arg3: memref<16x16xf32, #tpu.memory_space<vmem>>, %arg4: memref<2x1x32xf32, #tpu.memory_space<vmem>>, %arg5: memref<2x1x32xf32, #tpu.memory_space<vmem>>, %arg6: memref<2x32x96xbf16, #tpu.memory_space<vmem>>, %arg7: memref<2x32x32xbf16, #tpu.memory_space<vmem>>, %arg8: memref<2x1x32xf32, #tpu.memory_space<vmem>>, %arg9: memref<2x1x32xf32, #tpu.memory_space<vmem>>, %arg10: memref<2x1x32xf32, #tpu.memory_space<vmem>>, %arg11: memref<2x32x64xbf16, #tpu.memory_space<vmem>>, %arg12: memref<2x1x64xf32, #tpu.memory_space<vmem>>, %arg13: memref<2x64x32xbf16, #tpu.memory_space<vmem>>, %arg14: memref<2x1x32xf32, #tpu.memory_space<vmem>>, %arg15: memref<16x32xbf16, #tpu.memory_space<vmem>>) attributes {dimension_semantics = [#tpu.dimension_semantics<parallel>], iteration_bounds = array<i64: 2>, scalar_prefetch = 0 : i64, scratch_operands = 0 : i64, tpu.core_type = #tpu.core_type<tc>, window_params = [{transform_indices = @transform_0, window_bounds = array<i64: 16, 32>}, {pipeline_mode = #tpu.pipeline_mode<synchronous>, transform_indices = @transform_1, window_bounds = array<i64: 16, 1>}, {pipeline_mode = #tpu.pipeline_mode<synchronous>, transform_indices = @transform_2, window_bounds = array<i64: 16, 16>}, {pipeline_mode = #tpu.pipeline_mode<synchronous>, transform_indices = @transform_3, window_bounds = array<i64: 2, 1, 32>}, {pipeline_mode = #tpu.pipeline_mode<synchronous>, transform_indices = @transform_4, window_bounds = array<i64: 2, 1, 32>}, {pipeline_mode = #tpu.pipeline_mode<synchronous>, transform_indices = @transform_5, window_bounds = array<i64: 2, 32, 96>}, {pipeline_mode = #tpu.pipeline_mode<synchronous>, transform_indices = @transform_6, window_bounds = array<i64: 2, 32, 32>}, {pipeline_mode = #tpu.pipeline_mode<synchronous>, transform_indices = @transform_7, window_bounds = array<i64: 2, 1, 32>}, {pipeline_mode = #tpu.pipeline_mode<synchronous>, transform_indices = @transform_8, window_bounds = array<i64: 2, 1, 32>}, {pipeline_mode = #tpu.pipeline_mode<synchronous>, transform_indices = @transform_9, window_bounds = array<i64: 2, 1, 32>}, {pipeline_mode = #tpu.pipeline_mode<synchronous>, transform_indices = @transform_10, window_bounds = array<i64: 2, 32, 64>}, {pipeline_mode = #tpu.pipeline_mode<synchronous>, transform_indices = @transform_11, window_bounds = array<i64: 2, 1, 64>}, {pipeline_mode = #tpu.pipeline_mode<synchronous>, transform_indices = @transform_12, window_bounds = array<i64: 2, 64, 32>}, {pipeline_mode = #tpu.pipeline_mode<synchronous>, transform_indices = @transform_13, window_bounds = array<i64: 2, 1, 32>}, {transform_indices = @transform_14, window_bounds = array<i64: 16, 32>}]} {
    %c0 = arith.constant 0 : index
    %c0_0 = arith.constant 0 : index
    %0 = vector.load %arg1[%c0, %c0_0] : memref<16x32xbf16, #tpu.memory_space<vmem>>, vector<16x32xbf16>
    %1 = arith.extf %0 : vector<16x32xbf16> to vector<16x32xf32>
    %c0_1 = arith.constant 0 : index
    %c0_2 = arith.constant 0 : index
    %2 = vector.load %arg2[%c0_1, %c0_2] : memref<16x1xf32, #tpu.memory_space<vmem>>, vector<16x1xf32>
    %3 = vector.broadcast %2 : vector<16x1xf32> to vector<16x32xf32>
    %4 = arith.addf %1, %3 : vector<16x32xf32>
    %c0_3 = arith.constant 0 : index
    %c0_4 = arith.constant 0 : index
    %5 = vector.load %arg3[%c0_3, %c0_4] : memref<16x16xf32, #tpu.memory_space<vmem>>, vector<16x16xf32>
    %c0_5 = arith.constant 0 : index
    %c0_6 = arith.constant 0 : index
    %c0_7 = arith.constant 0 : index
    %6 = vector.load %arg4[%c0_5, %c0_6, %c0_7] : memref<2x1x32xf32, #tpu.memory_space<vmem>>, vector<1x1x32xf32>
    %7 = vector.shape_cast %6 : vector<1x1x32xf32> to vector<1x32xf32>
    %c0_8 = arith.constant 0 : index
    %c0_9 = arith.constant 0 : index
    %c0_10 = arith.constant 0 : index
    %8 = vector.load %arg5[%c0_8, %c0_9, %c0_10] : memref<2x1x32xf32, #tpu.memory_space<vmem>>, vector<1x1x32xf32>
    %9 = vector.shape_cast %8 : vector<1x1x32xf32> to vector<1x32xf32>
    %cst = arith.constant dense<0.000000e+00> : vector<16xf32>
    %10 = vector.multi_reduction <add>, %4, %cst [1] : vector<16x32xf32> to vector<16xf32>
    %11 = vector.shape_cast %10 : vector<16xf32> to vector<16x1xf32>
    %cst_11 = arith.constant 3.200000e+01 : f32
    %12 = vector.broadcast %cst_11 : f32 to vector<16x1xf32>
    %13 = arith.divf %11, %12 : vector<16x1xf32>
    %14 = vector.broadcast %13 : vector<16x1xf32> to vector<16x32xf32>
    %15 = arith.subf %4, %14 : vector<16x32xf32>
    %16 = arith.mulf %15, %15 : vector<16x32xf32>
    %cst_12 = arith.constant dense<0.000000e+00> : vector<16xf32>
    %17 = vector.multi_reduction <add>, %16, %cst_12 [1] : vector<16x32xf32> to vector<16xf32>
    %18 = vector.shape_cast %17 : vector<16xf32> to vector<16x1xf32>
    %cst_13 = arith.constant 3.200000e+01 : f32
    %19 = vector.broadcast %cst_13 : f32 to vector<16x1xf32>
    %20 = arith.divf %18, %19 : vector<16x1xf32>
    %21 = vector.broadcast %13 : vector<16x1xf32> to vector<16x32xf32>
    %22 = arith.subf %4, %21 : vector<16x32xf32>
    %cst_14 = arith.constant 9.99999974E-6 : f32
    %23 = vector.broadcast %cst_14 : f32 to vector<16x1xf32>
    %24 = arith.addf %20, %23 : vector<16x1xf32>
    %25 = math.rsqrt %24 : vector<16x1xf32>
    %26 = vector.broadcast %25 : vector<16x1xf32> to vector<16x32xf32>
    %27 = arith.mulf %22, %26 : vector<16x32xf32>
    %28 = vector.broadcast %7 : vector<1x32xf32> to vector<16x32xf32>
    %29 = arith.mulf %27, %28 : vector<16x32xf32>
    %30 = vector.broadcast %9 : vector<1x32xf32> to vector<16x32xf32>
    %31 = arith.addf %29, %30 : vector<16x32xf32>
    %32 = arith.truncf %31 : vector<16x32xf32> to vector<16x32xbf16>
    %c0_15 = arith.constant 0 : index
    %c0_16 = arith.constant 0 : index
    %c0_17 = arith.constant 0 : index
    %33 = vector.load %arg6[%c0_15, %c0_16, %c0_17] : memref<2x32x96xbf16, #tpu.memory_space<vmem>>, vector<1x32x96xbf16>
    %34 = vector.shape_cast %33 : vector<1x32x96xbf16> to vector<32x96xbf16>
    %cst_18 = arith.constant dense<0.000000e+00> : vector<16x96xf32>
    %35 = tpu.matmul %32, %34, %cst_18 {dimension_numbers = #tpu.dot_dimension_numbers<[1], [0], [0], [1], [0, 0, 1, 1], [], []>} : vector<16x32xbf16>, vector<32x96xbf16>, vector<16x96xf32> -> vector<16x96xf32>
    %c0_19 = arith.constant 0 : index
    %c0_20 = arith.constant 0 : index
    %c0_21 = arith.constant 0 : index
    %36 = vector.load %arg7[%c0_19, %c0_20, %c0_21] : memref<2x32x32xbf16, #tpu.memory_space<vmem>>, vector<1x32x32xbf16>
    %37 = vector.shape_cast %36 : vector<1x32x32xbf16> to vector<32x32xbf16>
    %38 = vector.extract_strided_slice %35 {offsets = [0, 0], sizes = [16, 16], strides = [1, 1]} : vector<16x96xf32> to vector<16x16xf32>
    %39 = arith.truncf %38 : vector<16x16xf32> to vector<16x16xbf16>
    %40 = vector.extract_strided_slice %35 {offsets = [0, 32], sizes = [16, 16], strides = [1, 1]} : vector<16x96xf32> to vector<16x16xf32>
    %41 = arith.truncf %40 : vector<16x16xf32> to vector<16x16xbf16>
    %42 = vector.extract_strided_slice %35 {offsets = [0, 64], sizes = [16, 16], strides = [1, 1]} : vector<16x96xf32> to vector<16x16xf32>
    %43 = arith.truncf %42 : vector<16x16xf32> to vector<16x16xbf16>
    %cst_22 = arith.constant dense<0.000000e+00> : vector<16x16xf32>
    %44 = tpu.matmul %39, %41, %cst_22 {dimension_numbers = #tpu.dot_dimension_numbers<[1], [1], [0], [0], [0, 0, 1, 0], [], []>} : vector<16x16xbf16>, vector<16x16xbf16>, vector<16x16xf32> -> vector<16x16xf32>
    %45 = arith.addf %44, %5 : vector<16x16xf32>
    %cst_23 = arith.constant dense<0xFF800000> : vector<16xf32>
    %46 = vector.multi_reduction <maximumf>, %45, %cst_23 [1] : vector<16x16xf32> to vector<16xf32>
    %47 = vector.shape_cast %46 : vector<16xf32> to vector<16x1xf32>
    %48 = vector.broadcast %47 : vector<16x1xf32> to vector<16x16xf32>
    %49 = arith.subf %45, %48 : vector<16x16xf32>
    %50 = math.exp %49 : vector<16x16xf32>
    %cst_24 = arith.constant dense<0.000000e+00> : vector<16xf32>
    %51 = vector.multi_reduction <add>, %50, %cst_24 [1] : vector<16x16xf32> to vector<16xf32>
    %52 = vector.shape_cast %51 : vector<16xf32> to vector<16x1xf32>
    %53 = tpu.reciprocal %52 {approx = true} : vector<16x1xf32> -> vector<16x1xf32>
    %54 = vector.broadcast %53 : vector<16x1xf32> to vector<16x16xf32>
    %55 = arith.mulf %50, %54 : vector<16x16xf32>
    %56 = arith.truncf %55 : vector<16x16xf32> to vector<16x16xbf16>
    %cst_25 = arith.constant dense<0.000000e+00> : vector<16x16xf32>
    %57 = tpu.matmul %56, %43, %cst_25 {dimension_numbers = #tpu.dot_dimension_numbers<[1], [0], [0], [1], [0, 0, 1, 1], [], []>} : vector<16x16xbf16>, vector<16x16xbf16>, vector<16x16xf32> -> vector<16x16xf32>
    %58 = arith.truncf %57 : vector<16x16xf32> to vector<16x16xbf16>
    %59 = vector.extract_strided_slice %37 {offsets = [0, 0], sizes = [16, 32], strides = [1, 1]} : vector<32x32xbf16> to vector<16x32xbf16>
    %cst_26 = arith.constant dense<0.000000e+00> : vector<16x32xf32>
    %60 = tpu.matmul %58, %59, %cst_26 {dimension_numbers = #tpu.dot_dimension_numbers<[1], [0], [0], [1], [0, 0, 1, 1], [], []>} : vector<16x16xbf16>, vector<16x32xbf16>, vector<16x32xf32> -> vector<16x32xf32>
    %61 = vector.extract_strided_slice %35 {offsets = [0, 16], sizes = [16, 16], strides = [1, 1]} : vector<16x96xf32> to vector<16x16xf32>
    %62 = arith.truncf %61 : vector<16x16xf32> to vector<16x16xbf16>
    %63 = vector.extract_strided_slice %35 {offsets = [0, 48], sizes = [16, 16], strides = [1, 1]} : vector<16x96xf32> to vector<16x16xf32>
    %64 = arith.truncf %63 : vector<16x16xf32> to vector<16x16xbf16>
    %65 = vector.extract_strided_slice %35 {offsets = [0, 80], sizes = [16, 16], strides = [1, 1]} : vector<16x96xf32> to vector<16x16xf32>
    %66 = arith.truncf %65 : vector<16x16xf32> to vector<16x16xbf16>
    %cst_27 = arith.constant dense<0.000000e+00> : vector<16x16xf32>
    %67 = tpu.matmul %62, %64, %cst_27 {dimension_numbers = #tpu.dot_dimension_numbers<[1], [1], [0], [0], [0, 0, 1, 0], [], []>} : vector<16x16xbf16>, vector<16x16xbf16>, vector<16x16xf32> -> vector<16x16xf32>
    %68 = arith.addf %67, %5 : vector<16x16xf32>
    %cst_28 = arith.constant dense<0xFF800000> : vector<16xf32>
    %69 = vector.multi_reduction <maximumf>, %68, %cst_28 [1] : vector<16x16xf32> to vector<16xf32>
    %70 = vector.shape_cast %69 : vector<16xf32> to vector<16x1xf32>
    %71 = vector.broadcast %70 : vector<16x1xf32> to vector<16x16xf32>
    %72 = arith.subf %68, %71 : vector<16x16xf32>
    %73 = math.exp %72 : vector<16x16xf32>
    %cst_29 = arith.constant dense<0.000000e+00> : vector<16xf32>
    %74 = vector.multi_reduction <add>, %73, %cst_29 [1] : vector<16x16xf32> to vector<16xf32>
    %75 = vector.shape_cast %74 : vector<16xf32> to vector<16x1xf32>
    %76 = tpu.reciprocal %75 {approx = true} : vector<16x1xf32> -> vector<16x1xf32>
    %77 = vector.broadcast %76 : vector<16x1xf32> to vector<16x16xf32>
    %78 = arith.mulf %73, %77 : vector<16x16xf32>
    %79 = arith.truncf %78 : vector<16x16xf32> to vector<16x16xbf16>
    %cst_30 = arith.constant dense<0.000000e+00> : vector<16x16xf32>
    %80 = tpu.matmul %79, %66, %cst_30 {dimension_numbers = #tpu.dot_dimension_numbers<[1], [0], [0], [1], [0, 0, 1, 1], [], []>} : vector<16x16xbf16>, vector<16x16xbf16>, vector<16x16xf32> -> vector<16x16xf32>
    %81 = arith.truncf %80 : vector<16x16xf32> to vector<16x16xbf16>
    %82 = vector.extract_strided_slice %37 {offsets = [16, 0], sizes = [16, 32], strides = [1, 1]} : vector<32x32xbf16> to vector<16x32xbf16>
    %cst_31 = arith.constant dense<0.000000e+00> : vector<16x32xf32>
    %83 = tpu.matmul %81, %82, %cst_31 {dimension_numbers = #tpu.dot_dimension_numbers<[1], [0], [0], [1], [0, 0, 1, 1], [], []>} : vector<16x16xbf16>, vector<16x32xbf16>, vector<16x32xf32> -> vector<16x32xf32>
    %84 = arith.addf %60, %83 : vector<16x32xf32>
    %85 = arith.addf %4, %84 : vector<16x32xf32>
    %c0_32 = arith.constant 0 : index
    %c0_33 = arith.constant 0 : index
    %c0_34 = arith.constant 0 : index
    %86 = vector.load %arg8[%c0_32, %c0_33, %c0_34] : memref<2x1x32xf32, #tpu.memory_space<vmem>>, vector<1x1x32xf32>
    %87 = vector.shape_cast %86 : vector<1x1x32xf32> to vector<1x32xf32>
    %88 = vector.broadcast %87 : vector<1x32xf32> to vector<16x32xf32>
    %89 = arith.addf %85, %88 : vector<16x32xf32>
    %c0_35 = arith.constant 0 : index
    %c0_36 = arith.constant 0 : index
    %c0_37 = arith.constant 0 : index
    %90 = vector.load %arg9[%c0_35, %c0_36, %c0_37] : memref<2x1x32xf32, #tpu.memory_space<vmem>>, vector<1x1x32xf32>
    %91 = vector.shape_cast %90 : vector<1x1x32xf32> to vector<1x32xf32>
    %c0_38 = arith.constant 0 : index
    %c0_39 = arith.constant 0 : index
    %c0_40 = arith.constant 0 : index
    %92 = vector.load %arg10[%c0_38, %c0_39, %c0_40] : memref<2x1x32xf32, #tpu.memory_space<vmem>>, vector<1x1x32xf32>
    %93 = vector.shape_cast %92 : vector<1x1x32xf32> to vector<1x32xf32>
    %cst_41 = arith.constant dense<0.000000e+00> : vector<16xf32>
    %94 = vector.multi_reduction <add>, %89, %cst_41 [1] : vector<16x32xf32> to vector<16xf32>
    %95 = vector.shape_cast %94 : vector<16xf32> to vector<16x1xf32>
    %cst_42 = arith.constant 3.200000e+01 : f32
    %96 = vector.broadcast %cst_42 : f32 to vector<16x1xf32>
    %97 = arith.divf %95, %96 : vector<16x1xf32>
    %98 = vector.broadcast %97 : vector<16x1xf32> to vector<16x32xf32>
    %99 = arith.subf %89, %98 : vector<16x32xf32>
    %100 = arith.mulf %99, %99 : vector<16x32xf32>
    %cst_43 = arith.constant dense<0.000000e+00> : vector<16xf32>
    %101 = vector.multi_reduction <add>, %100, %cst_43 [1] : vector<16x32xf32> to vector<16xf32>
    %102 = vector.shape_cast %101 : vector<16xf32> to vector<16x1xf32>
    %cst_44 = arith.constant 3.200000e+01 : f32
    %103 = vector.broadcast %cst_44 : f32 to vector<16x1xf32>
    %104 = arith.divf %102, %103 : vector<16x1xf32>
    %105 = vector.broadcast %97 : vector<16x1xf32> to vector<16x32xf32>
    %106 = arith.subf %89, %105 : vector<16x32xf32>
    %cst_45 = arith.constant 9.99999974E-6 : f32
    %107 = vector.broadcast %cst_45 : f32 to vector<16x1xf32>
    %108 = arith.addf %104, %107 : vector<16x1xf32>
    %109 = math.rsqrt %108 : vector<16x1xf32>
    %110 = vector.broadcast %109 : vector<16x1xf32> to vector<16x32xf32>
    %111 = arith.mulf %106, %110 : vector<16x32xf32>
    %112 = vector.broadcast %91 : vector<1x32xf32> to vector<16x32xf32>
    %113 = arith.mulf %111, %112 : vector<16x32xf32>
    %114 = vector.broadcast %93 : vector<1x32xf32> to vector<16x32xf32>
    %115 = arith.addf %113, %114 : vector<16x32xf32>
    %116 = arith.truncf %115 : vector<16x32xf32> to vector<16x32xbf16>
    %c0_46 = arith.constant 0 : index
    %c0_47 = arith.constant 0 : index
    %c0_48 = arith.constant 0 : index
    %117 = vector.load %arg11[%c0_46, %c0_47, %c0_48] : memref<2x32x64xbf16, #tpu.memory_space<vmem>>, vector<1x32x64xbf16>
    %118 = vector.shape_cast %117 : vector<1x32x64xbf16> to vector<32x64xbf16>
    %cst_49 = arith.constant dense<0.000000e+00> : vector<16x64xf32>
    %119 = tpu.matmul %116, %118, %cst_49 {dimension_numbers = #tpu.dot_dimension_numbers<[1], [0], [0], [1], [0, 0, 1, 1], [], []>} : vector<16x32xbf16>, vector<32x64xbf16>, vector<16x64xf32> -> vector<16x64xf32>
    %c0_50 = arith.constant 0 : index
    %c0_51 = arith.constant 0 : index
    %c0_52 = arith.constant 0 : index
    %120 = vector.load %arg12[%c0_50, %c0_51, %c0_52] : memref<2x1x64xf32, #tpu.memory_space<vmem>>, vector<1x1x64xf32>
    %121 = vector.shape_cast %120 : vector<1x1x64xf32> to vector<1x64xf32>
    %122 = vector.broadcast %121 : vector<1x64xf32> to vector<16x64xf32>
    %123 = arith.addf %119, %122 : vector<16x64xf32>
    %cst_53 = arith.constant 5.000000e-01 : f32
    %124 = vector.broadcast %cst_53 : f32 to vector<16x64xf32>
    %125 = arith.mulf %124, %123 : vector<16x64xf32>
    %cst_54 = arith.constant 4.471500e-02 : f32
    %126 = vector.broadcast %cst_54 : f32 to vector<16x64xf32>
    %127 = arith.mulf %126, %123 : vector<16x64xf32>
    %128 = arith.mulf %127, %123 : vector<16x64xf32>
    %129 = arith.mulf %128, %123 : vector<16x64xf32>
    %130 = arith.addf %123, %129 : vector<16x64xf32>
    %cst_55 = arith.constant 0.797884583 : f32
    %131 = vector.broadcast %cst_55 : f32 to vector<16x64xf32>
    %132 = arith.mulf %131, %130 : vector<16x64xf32>
    %133 = math.tanh %132 : vector<16x64xf32>
    %cst_56 = arith.constant 1.000000e+00 : f32
    %134 = vector.broadcast %cst_56 : f32 to vector<16x64xf32>
    %135 = arith.addf %134, %133 : vector<16x64xf32>
    %136 = arith.mulf %125, %135 : vector<16x64xf32>
    %137 = arith.truncf %136 : vector<16x64xf32> to vector<16x64xbf16>
    %c0_57 = arith.constant 0 : index
    %c0_58 = arith.constant 0 : index
    %c0_59 = arith.constant 0 : index
    %138 = vector.load %arg13[%c0_57, %c0_58, %c0_59] : memref<2x64x32xbf16, #tpu.memory_space<vmem>>, vector<1x64x32xbf16>
    %139 = vector.shape_cast %138 : vector<1x64x32xbf16> to vector<64x32xbf16>
    %cst_60 = arith.constant dense<0.000000e+00> : vector<16x32xf32>
    %140 = tpu.matmul %137, %139, %cst_60 {dimension_numbers = #tpu.dot_dimension_numbers<[1], [0], [0], [1], [0, 0, 1, 1], [], []>} : vector<16x64xbf16>, vector<64x32xbf16>, vector<16x32xf32> -> vector<16x32xf32>
    %c0_61 = arith.constant 0 : index
    %c0_62 = arith.constant 0 : index
    %c0_63 = arith.constant 0 : index
    %141 = vector.load %arg14[%c0_61, %c0_62, %c0_63] : memref<2x1x32xf32, #tpu.memory_space<vmem>>, vector<1x1x32xf32>
    %142 = vector.shape_cast %141 : vector<1x1x32xf32> to vector<1x32xf32>
    %143 = vector.broadcast %142 : vector<1x32xf32> to vector<16x32xf32>
    %144 = arith.addf %140, %143 : vector<16x32xf32>
    %145 = arith.addf %89, %144 : vector<16x32xf32>
    %c1 = arith.constant 1 : index
    %c0_64 = arith.constant 0 : index
    %c0_65 = arith.constant 0 : index
    %146 = vector.load %arg4[%c1, %c0_64, %c0_65] : memref<2x1x32xf32, #tpu.memory_space<vmem>>, vector<1x1x32xf32>
    %147 = vector.shape_cast %146 : vector<1x1x32xf32> to vector<1x32xf32>
    %c1_66 = arith.constant 1 : index
    %c0_67 = arith.constant 0 : index
    %c0_68 = arith.constant 0 : index
    %148 = vector.load %arg5[%c1_66, %c0_67, %c0_68] : memref<2x1x32xf32, #tpu.memory_space<vmem>>, vector<1x1x32xf32>
    %149 = vector.shape_cast %148 : vector<1x1x32xf32> to vector<1x32xf32>
    %cst_69 = arith.constant dense<0.000000e+00> : vector<16xf32>
    %150 = vector.multi_reduction <add>, %145, %cst_69 [1] : vector<16x32xf32> to vector<16xf32>
    %151 = vector.shape_cast %150 : vector<16xf32> to vector<16x1xf32>
    %cst_70 = arith.constant 3.200000e+01 : f32
    %152 = vector.broadcast %cst_70 : f32 to vector<16x1xf32>
    %153 = arith.divf %151, %152 : vector<16x1xf32>
    %154 = vector.broadcast %153 : vector<16x1xf32> to vector<16x32xf32>
    %155 = arith.subf %145, %154 : vector<16x32xf32>
    %156 = arith.mulf %155, %155 : vector<16x32xf32>
    %cst_71 = arith.constant dense<0.000000e+00> : vector<16xf32>
    %157 = vector.multi_reduction <add>, %156, %cst_71 [1] : vector<16x32xf32> to vector<16xf32>
    %158 = vector.shape_cast %157 : vector<16xf32> to vector<16x1xf32>
    %cst_72 = arith.constant 3.200000e+01 : f32
    %159 = vector.broadcast %cst_72 : f32 to vector<16x1xf32>
    %160 = arith.divf %158, %159 : vector<16x1xf32>
    %161 = vector.broadcast %153 : vector<16x1xf32> to vector<16x32xf32>
    %162 = arith.subf %145, %161 : vector<16x32xf32>
    %cst_73 = arith.constant 9.99999974E-6 : f32
    %163 = vector.broadcast %cst_73 : f32 to vector<16x1xf32>
    %164 = arith.addf %160, %163 : vector<16x1xf32>
    %165 = math.rsqrt %164 : vector<16x1xf32>
    %166 = vector.broadcast %165 : vector<16x1xf32> to vector<16x32xf32>
    %167 = arith.mulf %162, %166 : vector<16x32xf32>
    %168 = vector.broadcast %147 : vector<1x32xf32> to vector<16x32xf32>
    %169 = arith.mulf %167, %168 : vector<16x32xf32>
    %170 = vector.broadcast %149 : vector<1x32xf32> to vector<16x32xf32>
    %171 = arith.addf %169, %170 : vector<16x32xf32>
    %172 = arith.truncf %171 : vector<16x32xf32> to vector<16x32xbf16>
    %c1_74 = arith.constant 1 : index
    %c0_75 = arith.constant 0 : index
    %c0_76 = arith.constant 0 : index
    %173 = vector.load %arg6[%c1_74, %c0_75, %c0_76] : memref<2x32x96xbf16, #tpu.memory_space<vmem>>, vector<1x32x96xbf16>
    %174 = vector.shape_cast %173 : vector<1x32x96xbf16> to vector<32x96xbf16>
    %cst_77 = arith.constant dense<0.000000e+00> : vector<16x96xf32>
    %175 = tpu.matmul %172, %174, %cst_77 {dimension_numbers = #tpu.dot_dimension_numbers<[1], [0], [0], [1], [0, 0, 1, 1], [], []>} : vector<16x32xbf16>, vector<32x96xbf16>, vector<16x96xf32> -> vector<16x96xf32>
    %c1_78 = arith.constant 1 : index
    %c0_79 = arith.constant 0 : index
    %c0_80 = arith.constant 0 : index
    %176 = vector.load %arg7[%c1_78, %c0_79, %c0_80] : memref<2x32x32xbf16, #tpu.memory_space<vmem>>, vector<1x32x32xbf16>
    %177 = vector.shape_cast %176 : vector<1x32x32xbf16> to vector<32x32xbf16>
    %178 = vector.extract_strided_slice %175 {offsets = [0, 0], sizes = [16, 16], strides = [1, 1]} : vector<16x96xf32> to vector<16x16xf32>
    %179 = arith.truncf %178 : vector<16x16xf32> to vector<16x16xbf16>
    %180 = vector.extract_strided_slice %175 {offsets = [0, 32], sizes = [16, 16], strides = [1, 1]} : vector<16x96xf32> to vector<16x16xf32>
    %181 = arith.truncf %180 : vector<16x16xf32> to vector<16x16xbf16>
    %182 = vector.extract_strided_slice %175 {offsets = [0, 64], sizes = [16, 16], strides = [1, 1]} : vector<16x96xf32> to vector<16x16xf32>
    %183 = arith.truncf %182 : vector<16x16xf32> to vector<16x16xbf16>
    %cst_81 = arith.constant dense<0.000000e+00> : vector<16x16xf32>
    %184 = tpu.matmul %179, %181, %cst_81 {dimension_numbers = #tpu.dot_dimension_numbers<[1], [1], [0], [0], [0, 0, 1, 0], [], []>} : vector<16x16xbf16>, vector<16x16xbf16>, vector<16x16xf32> -> vector<16x16xf32>
    %185 = arith.addf %184, %5 : vector<16x16xf32>
    %cst_82 = arith.constant dense<0xFF800000> : vector<16xf32>
    %186 = vector.multi_reduction <maximumf>, %185, %cst_82 [1] : vector<16x16xf32> to vector<16xf32>
    %187 = vector.shape_cast %186 : vector<16xf32> to vector<16x1xf32>
    %188 = vector.broadcast %187 : vector<16x1xf32> to vector<16x16xf32>
    %189 = arith.subf %185, %188 : vector<16x16xf32>
    %190 = math.exp %189 : vector<16x16xf32>
    %cst_83 = arith.constant dense<0.000000e+00> : vector<16xf32>
    %191 = vector.multi_reduction <add>, %190, %cst_83 [1] : vector<16x16xf32> to vector<16xf32>
    %192 = vector.shape_cast %191 : vector<16xf32> to vector<16x1xf32>
    %193 = tpu.reciprocal %192 {approx = true} : vector<16x1xf32> -> vector<16x1xf32>
    %194 = vector.broadcast %193 : vector<16x1xf32> to vector<16x16xf32>
    %195 = arith.mulf %190, %194 : vector<16x16xf32>
    %196 = arith.truncf %195 : vector<16x16xf32> to vector<16x16xbf16>
    %cst_84 = arith.constant dense<0.000000e+00> : vector<16x16xf32>
    %197 = tpu.matmul %196, %183, %cst_84 {dimension_numbers = #tpu.dot_dimension_numbers<[1], [0], [0], [1], [0, 0, 1, 1], [], []>} : vector<16x16xbf16>, vector<16x16xbf16>, vector<16x16xf32> -> vector<16x16xf32>
    %198 = arith.truncf %197 : vector<16x16xf32> to vector<16x16xbf16>
    %199 = vector.extract_strided_slice %177 {offsets = [0, 0], sizes = [16, 32], strides = [1, 1]} : vector<32x32xbf16> to vector<16x32xbf16>
    %cst_85 = arith.constant dense<0.000000e+00> : vector<16x32xf32>
    %200 = tpu.matmul %198, %199, %cst_85 {dimension_numbers = #tpu.dot_dimension_numbers<[1], [0], [0], [1], [0, 0, 1, 1], [], []>} : vector<16x16xbf16>, vector<16x32xbf16>, vector<16x32xf32> -> vector<16x32xf32>
    %201 = vector.extract_strided_slice %175 {offsets = [0, 16], sizes = [16, 16], strides = [1, 1]} : vector<16x96xf32> to vector<16x16xf32>
    %202 = arith.truncf %201 : vector<16x16xf32> to vector<16x16xbf16>
    %203 = vector.extract_strided_slice %175 {offsets = [0, 48], sizes = [16, 16], strides = [1, 1]} : vector<16x96xf32> to vector<16x16xf32>
    %204 = arith.truncf %203 : vector<16x16xf32> to vector<16x16xbf16>
    %205 = vector.extract_strided_slice %175 {offsets = [0, 80], sizes = [16, 16], strides = [1, 1]} : vector<16x96xf32> to vector<16x16xf32>
    %206 = arith.truncf %205 : vector<16x16xf32> to vector<16x16xbf16>
    %cst_86 = arith.constant dense<0.000000e+00> : vector<16x16xf32>
    %207 = tpu.matmul %202, %204, %cst_86 {dimension_numbers = #tpu.dot_dimension_numbers<[1], [1], [0], [0], [0, 0, 1, 0], [], []>} : vector<16x16xbf16>, vector<16x16xbf16>, vector<16x16xf32> -> vector<16x16xf32>
    %208 = arith.addf %207, %5 : vector<16x16xf32>
    %cst_87 = arith.constant dense<0xFF800000> : vector<16xf32>
    %209 = vector.multi_reduction <maximumf>, %208, %cst_87 [1] : vector<16x16xf32> to vector<16xf32>
    %210 = vector.shape_cast %209 : vector<16xf32> to vector<16x1xf32>
    %211 = vector.broadcast %210 : vector<16x1xf32> to vector<16x16xf32>
    %212 = arith.subf %208, %211 : vector<16x16xf32>
    %213 = math.exp %212 : vector<16x16xf32>
    %cst_88 = arith.constant dense<0.000000e+00> : vector<16xf32>
    %214 = vector.multi_reduction <add>, %213, %cst_88 [1] : vector<16x16xf32> to vector<16xf32>
    %215 = vector.shape_cast %214 : vector<16xf32> to vector<16x1xf32>
    %216 = tpu.reciprocal %215 {approx = true} : vector<16x1xf32> -> vector<16x1xf32>
    %217 = vector.broadcast %216 : vector<16x1xf32> to vector<16x16xf32>
    %218 = arith.mulf %213, %217 : vector<16x16xf32>
    %219 = arith.truncf %218 : vector<16x16xf32> to vector<16x16xbf16>
    %cst_89 = arith.constant dense<0.000000e+00> : vector<16x16xf32>
    %220 = tpu.matmul %219, %206, %cst_89 {dimension_numbers = #tpu.dot_dimension_numbers<[1], [0], [0], [1], [0, 0, 1, 1], [], []>} : vector<16x16xbf16>, vector<16x16xbf16>, vector<16x16xf32> -> vector<16x16xf32>
    %221 = arith.truncf %220 : vector<16x16xf32> to vector<16x16xbf16>
    %222 = vector.extract_strided_slice %177 {offsets = [16, 0], sizes = [16, 32], strides = [1, 1]} : vector<32x32xbf16> to vector<16x32xbf16>
    %cst_90 = arith.constant dense<0.000000e+00> : vector<16x32xf32>
    %223 = tpu.matmul %221, %222, %cst_90 {dimension_numbers = #tpu.dot_dimension_numbers<[1], [0], [0], [1], [0, 0, 1, 1], [], []>} : vector<16x16xbf16>, vector<16x32xbf16>, vector<16x32xf32> -> vector<16x32xf32>
    %224 = arith.addf %200, %223 : vector<16x32xf32>
    %225 = arith.addf %145, %224 : vector<16x32xf32>
    %c1_91 = arith.constant 1 : index
    %c0_92 = arith.constant 0 : index
    %c0_93 = arith.constant 0 : index
    %226 = vector.load %arg8[%c1_91, %c0_92, %c0_93] : memref<2x1x32xf32, #tpu.memory_space<vmem>>, vector<1x1x32xf32>
    %227 = vector.shape_cast %226 : vector<1x1x32xf32> to vector<1x32xf32>
    %228 = vector.broadcast %227 : vector<1x32xf32> to vector<16x32xf32>
    %229 = arith.addf %225, %228 : vector<16x32xf32>
    %c1_94 = arith.constant 1 : index
    %c0_95 = arith.constant 0 : index
    %c0_96 = arith.constant 0 : index
    %230 = vector.load %arg9[%c1_94, %c0_95, %c0_96] : memref<2x1x32xf32, #tpu.memory_space<vmem>>, vector<1x1x32xf32>
    %231 = vector.shape_cast %230 : vector<1x1x32xf32> to vector<1x32xf32>
    %c1_97 = arith.constant 1 : index
    %c0_98 = arith.constant 0 : index
    %c0_99 = arith.constant 0 : index
    %232 = vector.load %arg10[%c1_97, %c0_98, %c0_99] : memref<2x1x32xf32, #tpu.memory_space<vmem>>, vector<1x1x32xf32>
    %233 = vector.shape_cast %232 : vector<1x1x32xf32> to vector<1x32xf32>
    %cst_100 = arith.constant dense<0.000000e+00> : vector<16xf32>
    %234 = vector.multi_reduction <add>, %229, %cst_100 [1] : vector<16x32xf32> to vector<16xf32>
    %235 = vector.shape_cast %234 : vector<16xf32> to vector<16x1xf32>
    %cst_101 = arith.constant 3.200000e+01 : f32
    %236 = vector.broadcast %cst_101 : f32 to vector<16x1xf32>
    %237 = arith.divf %235, %236 : vector<16x1xf32>
    %238 = vector.broadcast %237 : vector<16x1xf32> to vector<16x32xf32>
    %239 = arith.subf %229, %238 : vector<16x32xf32>
    %240 = arith.mulf %239, %239 : vector<16x32xf32>
    %cst_102 = arith.constant dense<0.000000e+00> : vector<16xf32>
    %241 = vector.multi_reduction <add>, %240, %cst_102 [1] : vector<16x32xf32> to vector<16xf32>
    %242 = vector.shape_cast %241 : vector<16xf32> to vector<16x1xf32>
    %cst_103 = arith.constant 3.200000e+01 : f32
    %243 = vector.broadcast %cst_103 : f32 to vector<16x1xf32>
    %244 = arith.divf %242, %243 : vector<16x1xf32>
    %245 = vector.broadcast %237 : vector<16x1xf32> to vector<16x32xf32>
    %246 = arith.subf %229, %245 : vector<16x32xf32>
    %cst_104 = arith.constant 9.99999974E-6 : f32
    %247 = vector.broadcast %cst_104 : f32 to vector<16x1xf32>
    %248 = arith.addf %244, %247 : vector<16x1xf32>
    %249 = math.rsqrt %248 : vector<16x1xf32>
    %250 = vector.broadcast %249 : vector<16x1xf32> to vector<16x32xf32>
    %251 = arith.mulf %246, %250 : vector<16x32xf32>
    %252 = vector.broadcast %231 : vector<1x32xf32> to vector<16x32xf32>
    %253 = arith.mulf %251, %252 : vector<16x32xf32>
    %254 = vector.broadcast %233 : vector<1x32xf32> to vector<16x32xf32>
    %255 = arith.addf %253, %254 : vector<16x32xf32>
    %256 = arith.truncf %255 : vector<16x32xf32> to vector<16x32xbf16>
    %c1_105 = arith.constant 1 : index
    %c0_106 = arith.constant 0 : index
    %c0_107 = arith.constant 0 : index
    %257 = vector.load %arg11[%c1_105, %c0_106, %c0_107] : memref<2x32x64xbf16, #tpu.memory_space<vmem>>, vector<1x32x64xbf16>
    %258 = vector.shape_cast %257 : vector<1x32x64xbf16> to vector<32x64xbf16>
    %cst_108 = arith.constant dense<0.000000e+00> : vector<16x64xf32>
    %259 = tpu.matmul %256, %258, %cst_108 {dimension_numbers = #tpu.dot_dimension_numbers<[1], [0], [0], [1], [0, 0, 1, 1], [], []>} : vector<16x32xbf16>, vector<32x64xbf16>, vector<16x64xf32> -> vector<16x64xf32>
    %c1_109 = arith.constant 1 : index
    %c0_110 = arith.constant 0 : index
    %c0_111 = arith.constant 0 : index
    %260 = vector.load %arg12[%c1_109, %c0_110, %c0_111] : memref<2x1x64xf32, #tpu.memory_space<vmem>>, vector<1x1x64xf32>
    %261 = vector.shape_cast %260 : vector<1x1x64xf32> to vector<1x64xf32>
    %262 = vector.broadcast %261 : vector<1x64xf32> to vector<16x64xf32>
    %263 = arith.addf %259, %262 : vector<16x64xf32>
    %cst_112 = arith.constant 5.000000e-01 : f32
    %264 = vector.broadcast %cst_112 : f32 to vector<16x64xf32>
    %265 = arith.mulf %264, %263 : vector<16x64xf32>
    %cst_113 = arith.constant 4.471500e-02 : f32
    %266 = vector.broadcast %cst_113 : f32 to vector<16x64xf32>
    %267 = arith.mulf %266, %263 : vector<16x64xf32>
    %268 = arith.mulf %267, %263 : vector<16x64xf32>
    %269 = arith.mulf %268, %263 : vector<16x64xf32>
    %270 = arith.addf %263, %269 : vector<16x64xf32>
    %cst_114 = arith.constant 0.797884583 : f32
    %271 = vector.broadcast %cst_114 : f32 to vector<16x64xf32>
    %272 = arith.mulf %271, %270 : vector<16x64xf32>
    %273 = math.tanh %272 : vector<16x64xf32>
    %cst_115 = arith.constant 1.000000e+00 : f32
    %274 = vector.broadcast %cst_115 : f32 to vector<16x64xf32>
    %275 = arith.addf %274, %273 : vector<16x64xf32>
    %276 = arith.mulf %265, %275 : vector<16x64xf32>
    %277 = arith.truncf %276 : vector<16x64xf32> to vector<16x64xbf16>
    %c1_116 = arith.constant 1 : index
    %c0_117 = arith.constant 0 : index
    %c0_118 = arith.constant 0 : index
    %278 = vector.load %arg13[%c1_116, %c0_117, %c0_118] : memref<2x64x32xbf16, #tpu.memory_space<vmem>>, vector<1x64x32xbf16>
    %279 = vector.shape_cast %278 : vector<1x64x32xbf16> to vector<64x32xbf16>
    %cst_119 = arith.constant dense<0.000000e+00> : vector<16x32xf32>
    %280 = tpu.matmul %277, %279, %cst_119 {dimension_numbers = #tpu.dot_dimension_numbers<[1], [0], [0], [1], [0, 0, 1, 1], [], []>} : vector<16x64xbf16>, vector<64x32xbf16>, vector<16x32xf32> -> vector<16x32xf32>
    %c1_120 = arith.constant 1 : index
    %c0_121 = arith.constant 0 : index
    %c0_122 = arith.constant 0 : index
    %281 = vector.load %arg14[%c1_120, %c0_121, %c0_122] : memref<2x1x32xf32, #tpu.memory_space<vmem>>, vector<1x1x32xf32>
    %282 = vector.shape_cast %281 : vector<1x1x32xf32> to vector<1x32xf32>
    %283 = vector.broadcast %282 : vector<1x32xf32> to vector<16x32xf32>
    %284 = arith.addf %280, %283 : vector<16x32xf32>
    %285 = arith.addf %229, %284 : vector<16x32xf32>
    %286 = arith.truncf %285 : vector<16x32xf32> to vector<16x32xbf16>
    %c0_123 = arith.constant 0 : index
    %c0_124 = arith.constant 0 : index
    %287 = vector.load %arg15[%c0_123, %c0_124] : memref<16x32xbf16, #tpu.memory_space<vmem>>, vector<16x32xbf16>
    tpu.vector_store %arg15[%c0_123, %c0_124], %286 {strides = array<i32>} : memref<16x32xbf16, #tpu.memory_space<vmem>>, vector<16x32xbf16>,
    return
  }
  func.func @transform_0(%arg0: i32) -> (i32, i32) {
    %c0_i32 = arith.constant 0 : i32
    %c0_i32_0 = arith.constant 0 : i32
    return %arg0, %c0_i32 : i32, i32
  }
  func.func @transform_1(%arg0: i32) -> (i32, i32) {
    %c0_i32 = arith.constant 0 : i32
    %c0_i32_0 = arith.constant 0 : i32
    %c0_i32_1 = arith.constant 0 : i32
    return %c0_i32, %c0_i32_0 : i32, i32
  }
  func.func @transform_2(%arg0: i32) -> (i32, i32) {
    %c0_i32 = arith.constant 0 : i32
    %c0_i32_0 = arith.constant 0 : i32
    %c0_i32_1 = arith.constant 0 : i32
    return %c0_i32, %c0_i32_0 : i32, i32
  }
  func.func @transform_3(%arg0: i32) -> (i32, i32, i32) {
    %c0_i32 = arith.constant 0 : i32
    %c0_i32_0 = arith.constant 0 : i32
    %c0_i32_1 = arith.constant 0 : i32
    %c0_i32_2 = arith.constant 0 : i32
    return %c0_i32, %c0_i32_0, %c0_i32_1 : i32, i32, i32
  }
  func.func @transform_4(%arg0: i32) -> (i32, i32, i32) {
    %c0_i32 = arith.constant 0 : i32
    %c0_i32_0 = arith.constant 0 : i32
    %c0_i32_1 = arith.constant 0 : i32
    %c0_i32_2 = arith.constant 0 : i32
    return %c0_i32, %c0_i32_0, %c0_i32_1 : i32, i32, i32
  }
  func.func @transform_5(%arg0: i32) -> (i32, i32, i32) {
    %c0_i32 = arith.constant 0 : i32
    %c0_i32_0 = arith.constant 0 : i32
    %c0_i32_1 = arith.constant 0 : i32
    %c0_i32_2 = arith.constant 0 : i32
    return %c0_i32, %c0_i32_0, %c0_i32_1 : i32, i32, i32
  }
  func.func @transform_6(%arg0: i32) -> (i32, i32, i32) {
    %c0_i32 = arith.constant 0 : i32
    %c0_i32_0 = arith.constant 0 : i32
    %c0_i32_1 = arith.constant 0 : i32
    %c0_i32_2 = arith.constant 0 : i32
    return %c0_i32, %c0_i32_0, %c0_i32_1 : i32, i32, i32
  }
  func.func @transform_7(%arg0: i32) -> (i32, i32, i32) {
    %c0_i32 = arith.constant 0 : i32
    %c0_i32_0 = arith.constant 0 : i32
    %c0_i32_1 = arith.constant 0 : i32
    %c0_i32_2 = arith.constant 0 : i32
    return %c0_i32, %c0_i32_0, %c0_i32_1 : i32, i32, i32
  }
  func.func @transform_8(%arg0: i32) -> (i32, i32, i32) {
    %c0_i32 = arith.constant 0 : i32
    %c0_i32_0 = arith.constant 0 : i32
    %c0_i32_1 = arith.constant 0 : i32
    %c0_i32_2 = arith.constant 0 : i32
    return %c0_i32, %c0_i32_0, %c0_i32_1 : i32, i32, i32
  }
  func.func @transform_9(%arg0: i32) -> (i32, i32, i32) {
    %c0_i32 = arith.constant 0 : i32
    %c0_i32_0 = arith.constant 0 : i32
    %c0_i32_1 = arith.constant 0 : i32
    %c0_i32_2 = arith.constant 0 : i32
    return %c0_i32, %c0_i32_0, %c0_i32_1 : i32, i32, i32
  }
  func.func @transform_10(%arg0: i32) -> (i32, i32, i32) {
    %c0_i32 = arith.constant 0 : i32
    %c0_i32_0 = arith.constant 0 : i32
    %c0_i32_1 = arith.constant 0 : i32
    %c0_i32_2 = arith.constant 0 : i32
    return %c0_i32, %c0_i32_0, %c0_i32_1 : i32, i32, i32
  }
  func.func @transform_11(%arg0: i32) -> (i32, i32, i32) {
    %c0_i32 = arith.constant 0 : i32
    %c0_i32_0 = arith.constant 0 : i32
    %c0_i32_1 = arith.constant 0 : i32
    %c0_i32_2 = arith.constant 0 : i32
    return %c0_i32, %c0_i32_0, %c0_i32_1 : i32, i32, i32
  }
  func.func @transform_12(%arg0: i32) -> (i32, i32, i32) {
    %c0_i32 = arith.constant 0 : i32
    %c0_i32_0 = arith.constant 0 : i32
    %c0_i32_1 = arith.constant 0 : i32
    %c0_i32_2 = arith.constant 0 : i32
    return %c0_i32, %c0_i32_0, %c0_i32_1 : i32, i32, i32
  }
  func.func @transform_13(%arg0: i32) -> (i32, i32, i32) {
    %c0_i32 = arith.constant 0 : i32
    %c0_i32_0 = arith.constant 0 : i32
    %c0_i32_1 = arith.constant 0 : i32
    %c0_i32_2 = arith.constant 0 : i32
    return %c0_i32, %c0_i32_0, %c0_i32_1 : i32, i32, i32
  }
  func.func @transform_14(%arg0: i32) -> (i32, i32) {
    %c0_i32 = arith.constant 0 : i32
    %c0_i32_0 = arith.constant 0 : i32
    return %arg0, %c0_i32 : i32, i32
  }
}

module attributes {stable_mosaic.version = 11 : i64} {
  func.func @_level_kernel(%arg0: i32, %arg1: memref<8x64xbf16, #tpu.memory_space<vmem>>, %arg2: memref<8x1xf32, #tpu.memory_space<vmem>>, %arg3: memref<8x8xf32, #tpu.memory_space<vmem>>, %arg4: memref<1x1x64xf32, #tpu.memory_space<vmem>>, %arg5: memref<1x1x64xf32, #tpu.memory_space<vmem>>, %arg6: memref<1x64x192xbf16, #tpu.memory_space<vmem>>, %arg7: memref<1x64x64xbf16, #tpu.memory_space<vmem>>, %arg8: memref<1x1x64xf32, #tpu.memory_space<vmem>>, %arg9: memref<1x1x64xf32, #tpu.memory_space<vmem>>, %arg10: memref<1x1x64xf32, #tpu.memory_space<vmem>>, %arg11: memref<1x64x128xbf16, #tpu.memory_space<vmem>>, %arg12: memref<1x1x128xf32, #tpu.memory_space<vmem>>, %arg13: memref<1x128x64xbf16, #tpu.memory_space<vmem>>, %arg14: memref<1x1x64xf32, #tpu.memory_space<vmem>>, %arg15: memref<8x64xbf16, #tpu.memory_space<vmem>>) attributes {dimension_semantics = [#tpu.dimension_semantics<parallel>], iteration_bounds = array<i64: 1>, scalar_prefetch = 0 : i64, scratch_operands = 0 : i64, tpu.core_type = #tpu.core_type<tc>, window_params = [{transform_indices = @transform_0, window_bounds = array<i64: 8, 64>}, {pipeline_mode = #tpu.pipeline_mode<synchronous>, transform_indices = @transform_1, window_bounds = array<i64: 8, 1>}, {pipeline_mode = #tpu.pipeline_mode<synchronous>, transform_indices = @transform_2, window_bounds = array<i64: 8, 8>}, {pipeline_mode = #tpu.pipeline_mode<synchronous>, transform_indices = @transform_3, window_bounds = array<i64: 1, 1, 64>}, {pipeline_mode = #tpu.pipeline_mode<synchronous>, transform_indices = @transform_4, window_bounds = array<i64: 1, 1, 64>}, {pipeline_mode = #tpu.pipeline_mode<synchronous>, transform_indices = @transform_5, window_bounds = array<i64: 1, 64, 192>}, {pipeline_mode = #tpu.pipeline_mode<synchronous>, transform_indices = @transform_6, window_bounds = array<i64: 1, 64, 64>}, {pipeline_mode = #tpu.pipeline_mode<synchronous>, transform_indices = @transform_7, window_bounds = array<i64: 1, 1, 64>}, {pipeline_mode = #tpu.pipeline_mode<synchronous>, transform_indices = @transform_8, window_bounds = array<i64: 1, 1, 64>}, {pipeline_mode = #tpu.pipeline_mode<synchronous>, transform_indices = @transform_9, window_bounds = array<i64: 1, 1, 64>}, {pipeline_mode = #tpu.pipeline_mode<synchronous>, transform_indices = @transform_10, window_bounds = array<i64: 1, 64, 128>}, {pipeline_mode = #tpu.pipeline_mode<synchronous>, transform_indices = @transform_11, window_bounds = array<i64: 1, 1, 128>}, {pipeline_mode = #tpu.pipeline_mode<synchronous>, transform_indices = @transform_12, window_bounds = array<i64: 1, 128, 64>}, {pipeline_mode = #tpu.pipeline_mode<synchronous>, transform_indices = @transform_13, window_bounds = array<i64: 1, 1, 64>}, {transform_indices = @transform_14, window_bounds = array<i64: 8, 64>}]} {
    %c0 = arith.constant 0 : index
    %c0_0 = arith.constant 0 : index
    %0 = vector.load %arg1[%c0, %c0_0] : memref<8x64xbf16, #tpu.memory_space<vmem>>, vector<8x64xbf16>
    %1 = arith.extf %0 : vector<8x64xbf16> to vector<8x64xf32>
    %c0_1 = arith.constant 0 : index
    %c0_2 = arith.constant 0 : index
    %2 = vector.load %arg2[%c0_1, %c0_2] : memref<8x1xf32, #tpu.memory_space<vmem>>, vector<8x1xf32>
    %3 = vector.broadcast %2 : vector<8x1xf32> to vector<8x64xf32>
    %4 = arith.addf %1, %3 : vector<8x64xf32>
    %c0_3 = arith.constant 0 : index
    %c0_4 = arith.constant 0 : index
    %5 = vector.load %arg3[%c0_3, %c0_4] : memref<8x8xf32, #tpu.memory_space<vmem>>, vector<8x8xf32>
    %c0_5 = arith.constant 0 : index
    %c0_6 = arith.constant 0 : index
    %c0_7 = arith.constant 0 : index
    %6 = vector.load %arg4[%c0_5, %c0_6, %c0_7] : memref<1x1x64xf32, #tpu.memory_space<vmem>>, vector<1x1x64xf32>
    %7 = vector.shape_cast %6 : vector<1x1x64xf32> to vector<1x64xf32>
    %c0_8 = arith.constant 0 : index
    %c0_9 = arith.constant 0 : index
    %c0_10 = arith.constant 0 : index
    %8 = vector.load %arg5[%c0_8, %c0_9, %c0_10] : memref<1x1x64xf32, #tpu.memory_space<vmem>>, vector<1x1x64xf32>
    %9 = vector.shape_cast %8 : vector<1x1x64xf32> to vector<1x64xf32>
    %cst = arith.constant dense<0.000000e+00> : vector<8xf32>
    %10 = vector.multi_reduction <add>, %4, %cst [1] : vector<8x64xf32> to vector<8xf32>
    %11 = vector.shape_cast %10 : vector<8xf32> to vector<8x1xf32>
    %cst_11 = arith.constant 6.400000e+01 : f32
    %12 = vector.broadcast %cst_11 : f32 to vector<8x1xf32>
    %13 = arith.divf %11, %12 : vector<8x1xf32>
    %14 = vector.broadcast %13 : vector<8x1xf32> to vector<8x64xf32>
    %15 = arith.subf %4, %14 : vector<8x64xf32>
    %16 = arith.mulf %15, %15 : vector<8x64xf32>
    %cst_12 = arith.constant dense<0.000000e+00> : vector<8xf32>
    %17 = vector.multi_reduction <add>, %16, %cst_12 [1] : vector<8x64xf32> to vector<8xf32>
    %18 = vector.shape_cast %17 : vector<8xf32> to vector<8x1xf32>
    %cst_13 = arith.constant 6.400000e+01 : f32
    %19 = vector.broadcast %cst_13 : f32 to vector<8x1xf32>
    %20 = arith.divf %18, %19 : vector<8x1xf32>
    %21 = vector.broadcast %13 : vector<8x1xf32> to vector<8x64xf32>
    %22 = arith.subf %4, %21 : vector<8x64xf32>
    %cst_14 = arith.constant 9.99999974E-6 : f32
    %23 = vector.broadcast %cst_14 : f32 to vector<8x1xf32>
    %24 = arith.addf %20, %23 : vector<8x1xf32>
    %25 = math.rsqrt %24 : vector<8x1xf32>
    %26 = vector.broadcast %25 : vector<8x1xf32> to vector<8x64xf32>
    %27 = arith.mulf %22, %26 : vector<8x64xf32>
    %28 = vector.broadcast %7 : vector<1x64xf32> to vector<8x64xf32>
    %29 = arith.mulf %27, %28 : vector<8x64xf32>
    %30 = vector.broadcast %9 : vector<1x64xf32> to vector<8x64xf32>
    %31 = arith.addf %29, %30 : vector<8x64xf32>
    %32 = arith.truncf %31 : vector<8x64xf32> to vector<8x64xbf16>
    %c0_15 = arith.constant 0 : index
    %c0_16 = arith.constant 0 : index
    %c0_17 = arith.constant 0 : index
    %33 = vector.load %arg6[%c0_15, %c0_16, %c0_17] : memref<1x64x192xbf16, #tpu.memory_space<vmem>>, vector<1x64x192xbf16>
    %34 = vector.shape_cast %33 : vector<1x64x192xbf16> to vector<64x192xbf16>
    %cst_18 = arith.constant dense<0.000000e+00> : vector<8x192xf32>
    %35 = tpu.matmul %32, %34, %cst_18 {dimension_numbers = #tpu.dot_dimension_numbers<[1], [0], [0], [1], [0, 0, 1, 1], [], []>} : vector<8x64xbf16>, vector<64x192xbf16>, vector<8x192xf32> -> vector<8x192xf32>
    %c0_19 = arith.constant 0 : index
    %c0_20 = arith.constant 0 : index
    %c0_21 = arith.constant 0 : index
    %36 = vector.load %arg7[%c0_19, %c0_20, %c0_21] : memref<1x64x64xbf16, #tpu.memory_space<vmem>>, vector<1x64x64xbf16>
    %37 = vector.shape_cast %36 : vector<1x64x64xbf16> to vector<64x64xbf16>
    %38 = vector.extract_strided_slice %35 {offsets = [0, 0], sizes = [8, 16], strides = [1, 1]} : vector<8x192xf32> to vector<8x16xf32>
    %39 = arith.truncf %38 : vector<8x16xf32> to vector<8x16xbf16>
    %40 = vector.extract_strided_slice %35 {offsets = [0, 64], sizes = [8, 16], strides = [1, 1]} : vector<8x192xf32> to vector<8x16xf32>
    %41 = arith.truncf %40 : vector<8x16xf32> to vector<8x16xbf16>
    %42 = vector.extract_strided_slice %35 {offsets = [0, 128], sizes = [8, 16], strides = [1, 1]} : vector<8x192xf32> to vector<8x16xf32>
    %43 = arith.truncf %42 : vector<8x16xf32> to vector<8x16xbf16>
    %cst_22 = arith.constant dense<0.000000e+00> : vector<8x8xf32>
    %44 = tpu.matmul %39, %41, %cst_22 {dimension_numbers = #tpu.dot_dimension_numbers<[1], [1], [0], [0], [0, 0, 1, 0], [], []>} : vector<8x16xbf16>, vector<8x16xbf16>, vector<8x8xf32> -> vector<8x8xf32>
    %45 = arith.addf %44, %5 : vector<8x8xf32>
    %cst_23 = arith.constant dense<0xFF800000> : vector<8xf32>
    %46 = vector.multi_reduction <maximumf>, %45, %cst_23 [1] : vector<8x8xf32> to vector<8xf32>
    %47 = vector.shape_cast %46 : vector<8xf32> to vector<8x1xf32>
    %48 = vector.broadcast %47 : vector<8x1xf32> to vector<8x8xf32>
    %49 = arith.subf %45, %48 : vector<8x8xf32>
    %50 = math.exp %49 : vector<8x8xf32>
    %cst_24 = arith.constant dense<0.000000e+00> : vector<8xf32>
    %51 = vector.multi_reduction <add>, %50, %cst_24 [1] : vector<8x8xf32> to vector<8xf32>
    %52 = vector.shape_cast %51 : vector<8xf32> to vector<8x1xf32>
    %53 = tpu.reciprocal %52 {approx = true} : vector<8x1xf32> -> vector<8x1xf32>
    %54 = vector.broadcast %53 : vector<8x1xf32> to vector<8x8xf32>
    %55 = arith.mulf %50, %54 : vector<8x8xf32>
    %56 = arith.truncf %55 : vector<8x8xf32> to vector<8x8xbf16>
    %cst_25 = arith.constant dense<0.000000e+00> : vector<8x16xf32>
    %57 = tpu.matmul %56, %43, %cst_25 {dimension_numbers = #tpu.dot_dimension_numbers<[1], [0], [0], [1], [0, 0, 1, 1], [], []>} : vector<8x8xbf16>, vector<8x16xbf16>, vector<8x16xf32> -> vector<8x16xf32>
    %58 = arith.truncf %57 : vector<8x16xf32> to vector<8x16xbf16>
    %59 = vector.extract_strided_slice %37 {offsets = [0, 0], sizes = [16, 64], strides = [1, 1]} : vector<64x64xbf16> to vector<16x64xbf16>
    %cst_26 = arith.constant dense<0.000000e+00> : vector<8x64xf32>
    %60 = tpu.matmul %58, %59, %cst_26 {dimension_numbers = #tpu.dot_dimension_numbers<[1], [0], [0], [1], [0, 0, 1, 1], [], []>} : vector<8x16xbf16>, vector<16x64xbf16>, vector<8x64xf32> -> vector<8x64xf32>
    %61 = vector.extract_strided_slice %35 {offsets = [0, 16], sizes = [8, 16], strides = [1, 1]} : vector<8x192xf32> to vector<8x16xf32>
    %62 = arith.truncf %61 : vector<8x16xf32> to vector<8x16xbf16>
    %63 = vector.extract_strided_slice %35 {offsets = [0, 80], sizes = [8, 16], strides = [1, 1]} : vector<8x192xf32> to vector<8x16xf32>
    %64 = arith.truncf %63 : vector<8x16xf32> to vector<8x16xbf16>
    %65 = vector.extract_strided_slice %35 {offsets = [0, 144], sizes = [8, 16], strides = [1, 1]} : vector<8x192xf32> to vector<8x16xf32>
    %66 = arith.truncf %65 : vector<8x16xf32> to vector<8x16xbf16>
    %cst_27 = arith.constant dense<0.000000e+00> : vector<8x8xf32>
    %67 = tpu.matmul %62, %64, %cst_27 {dimension_numbers = #tpu.dot_dimension_numbers<[1], [1], [0], [0], [0, 0, 1, 0], [], []>} : vector<8x16xbf16>, vector<8x16xbf16>, vector<8x8xf32> -> vector<8x8xf32>
    %68 = arith.addf %67, %5 : vector<8x8xf32>
    %cst_28 = arith.constant dense<0xFF800000> : vector<8xf32>
    %69 = vector.multi_reduction <maximumf>, %68, %cst_28 [1] : vector<8x8xf32> to vector<8xf32>
    %70 = vector.shape_cast %69 : vector<8xf32> to vector<8x1xf32>
    %71 = vector.broadcast %70 : vector<8x1xf32> to vector<8x8xf32>
    %72 = arith.subf %68, %71 : vector<8x8xf32>
    %73 = math.exp %72 : vector<8x8xf32>
    %cst_29 = arith.constant dense<0.000000e+00> : vector<8xf32>
    %74 = vector.multi_reduction <add>, %73, %cst_29 [1] : vector<8x8xf32> to vector<8xf32>
    %75 = vector.shape_cast %74 : vector<8xf32> to vector<8x1xf32>
    %76 = tpu.reciprocal %75 {approx = true} : vector<8x1xf32> -> vector<8x1xf32>
    %77 = vector.broadcast %76 : vector<8x1xf32> to vector<8x8xf32>
    %78 = arith.mulf %73, %77 : vector<8x8xf32>
    %79 = arith.truncf %78 : vector<8x8xf32> to vector<8x8xbf16>
    %cst_30 = arith.constant dense<0.000000e+00> : vector<8x16xf32>
    %80 = tpu.matmul %79, %66, %cst_30 {dimension_numbers = #tpu.dot_dimension_numbers<[1], [0], [0], [1], [0, 0, 1, 1], [], []>} : vector<8x8xbf16>, vector<8x16xbf16>, vector<8x16xf32> -> vector<8x16xf32>
    %81 = arith.truncf %80 : vector<8x16xf32> to vector<8x16xbf16>
    %82 = vector.extract_strided_slice %37 {offsets = [16, 0], sizes = [16, 64], strides = [1, 1]} : vector<64x64xbf16> to vector<16x64xbf16>
    %cst_31 = arith.constant dense<0.000000e+00> : vector<8x64xf32>
    %83 = tpu.matmul %81, %82, %cst_31 {dimension_numbers = #tpu.dot_dimension_numbers<[1], [0], [0], [1], [0, 0, 1, 1], [], []>} : vector<8x16xbf16>, vector<16x64xbf16>, vector<8x64xf32> -> vector<8x64xf32>
    %84 = arith.addf %60, %83 : vector<8x64xf32>
    %85 = vector.extract_strided_slice %35 {offsets = [0, 32], sizes = [8, 16], strides = [1, 1]} : vector<8x192xf32> to vector<8x16xf32>
    %86 = arith.truncf %85 : vector<8x16xf32> to vector<8x16xbf16>
    %87 = vector.extract_strided_slice %35 {offsets = [0, 96], sizes = [8, 16], strides = [1, 1]} : vector<8x192xf32> to vector<8x16xf32>
    %88 = arith.truncf %87 : vector<8x16xf32> to vector<8x16xbf16>
    %89 = vector.extract_strided_slice %35 {offsets = [0, 160], sizes = [8, 16], strides = [1, 1]} : vector<8x192xf32> to vector<8x16xf32>
    %90 = arith.truncf %89 : vector<8x16xf32> to vector<8x16xbf16>
    %cst_32 = arith.constant dense<0.000000e+00> : vector<8x8xf32>
    %91 = tpu.matmul %86, %88, %cst_32 {dimension_numbers = #tpu.dot_dimension_numbers<[1], [1], [0], [0], [0, 0, 1, 0], [], []>} : vector<8x16xbf16>, vector<8x16xbf16>, vector<8x8xf32> -> vector<8x8xf32>
    %92 = arith.addf %91, %5 : vector<8x8xf32>
    %cst_33 = arith.constant dense<0xFF800000> : vector<8xf32>
    %93 = vector.multi_reduction <maximumf>, %92, %cst_33 [1] : vector<8x8xf32> to vector<8xf32>
    %94 = vector.shape_cast %93 : vector<8xf32> to vector<8x1xf32>
    %95 = vector.broadcast %94 : vector<8x1xf32> to vector<8x8xf32>
    %96 = arith.subf %92, %95 : vector<8x8xf32>
    %97 = math.exp %96 : vector<8x8xf32>
    %cst_34 = arith.constant dense<0.000000e+00> : vector<8xf32>
    %98 = vector.multi_reduction <add>, %97, %cst_34 [1] : vector<8x8xf32> to vector<8xf32>
    %99 = vector.shape_cast %98 : vector<8xf32> to vector<8x1xf32>
    %100 = tpu.reciprocal %99 {approx = true} : vector<8x1xf32> -> vector<8x1xf32>
    %101 = vector.broadcast %100 : vector<8x1xf32> to vector<8x8xf32>
    %102 = arith.mulf %97, %101 : vector<8x8xf32>
    %103 = arith.truncf %102 : vector<8x8xf32> to vector<8x8xbf16>
    %cst_35 = arith.constant dense<0.000000e+00> : vector<8x16xf32>
    %104 = tpu.matmul %103, %90, %cst_35 {dimension_numbers = #tpu.dot_dimension_numbers<[1], [0], [0], [1], [0, 0, 1, 1], [], []>} : vector<8x8xbf16>, vector<8x16xbf16>, vector<8x16xf32> -> vector<8x16xf32>
    %105 = arith.truncf %104 : vector<8x16xf32> to vector<8x16xbf16>
    %106 = vector.extract_strided_slice %37 {offsets = [32, 0], sizes = [16, 64], strides = [1, 1]} : vector<64x64xbf16> to vector<16x64xbf16>
    %cst_36 = arith.constant dense<0.000000e+00> : vector<8x64xf32>
    %107 = tpu.matmul %105, %106, %cst_36 {dimension_numbers = #tpu.dot_dimension_numbers<[1], [0], [0], [1], [0, 0, 1, 1], [], []>} : vector<8x16xbf16>, vector<16x64xbf16>, vector<8x64xf32> -> vector<8x64xf32>
    %108 = arith.addf %84, %107 : vector<8x64xf32>
    %109 = vector.extract_strided_slice %35 {offsets = [0, 48], sizes = [8, 16], strides = [1, 1]} : vector<8x192xf32> to vector<8x16xf32>
    %110 = arith.truncf %109 : vector<8x16xf32> to vector<8x16xbf16>
    %111 = vector.extract_strided_slice %35 {offsets = [0, 112], sizes = [8, 16], strides = [1, 1]} : vector<8x192xf32> to vector<8x16xf32>
    %112 = arith.truncf %111 : vector<8x16xf32> to vector<8x16xbf16>
    %113 = vector.extract_strided_slice %35 {offsets = [0, 176], sizes = [8, 16], strides = [1, 1]} : vector<8x192xf32> to vector<8x16xf32>
    %114 = arith.truncf %113 : vector<8x16xf32> to vector<8x16xbf16>
    %cst_37 = arith.constant dense<0.000000e+00> : vector<8x8xf32>
    %115 = tpu.matmul %110, %112, %cst_37 {dimension_numbers = #tpu.dot_dimension_numbers<[1], [1], [0], [0], [0, 0, 1, 0], [], []>} : vector<8x16xbf16>, vector<8x16xbf16>, vector<8x8xf32> -> vector<8x8xf32>
    %116 = arith.addf %115, %5 : vector<8x8xf32>
    %cst_38 = arith.constant dense<0xFF800000> : vector<8xf32>
    %117 = vector.multi_reduction <maximumf>, %116, %cst_38 [1] : vector<8x8xf32> to vector<8xf32>
    %118 = vector.shape_cast %117 : vector<8xf32> to vector<8x1xf32>
    %119 = vector.broadcast %118 : vector<8x1xf32> to vector<8x8xf32>
    %120 = arith.subf %116, %119 : vector<8x8xf32>
    %121 = math.exp %120 : vector<8x8xf32>
    %cst_39 = arith.constant dense<0.000000e+00> : vector<8xf32>
    %122 = vector.multi_reduction <add>, %121, %cst_39 [1] : vector<8x8xf32> to vector<8xf32>
    %123 = vector.shape_cast %122 : vector<8xf32> to vector<8x1xf32>
    %124 = tpu.reciprocal %123 {approx = true} : vector<8x1xf32> -> vector<8x1xf32>
    %125 = vector.broadcast %124 : vector<8x1xf32> to vector<8x8xf32>
    %126 = arith.mulf %121, %125 : vector<8x8xf32>
    %127 = arith.truncf %126 : vector<8x8xf32> to vector<8x8xbf16>
    %cst_40 = arith.constant dense<0.000000e+00> : vector<8x16xf32>
    %128 = tpu.matmul %127, %114, %cst_40 {dimension_numbers = #tpu.dot_dimension_numbers<[1], [0], [0], [1], [0, 0, 1, 1], [], []>} : vector<8x8xbf16>, vector<8x16xbf16>, vector<8x16xf32> -> vector<8x16xf32>
    %129 = arith.truncf %128 : vector<8x16xf32> to vector<8x16xbf16>
    %130 = vector.extract_strided_slice %37 {offsets = [48, 0], sizes = [16, 64], strides = [1, 1]} : vector<64x64xbf16> to vector<16x64xbf16>
    %cst_41 = arith.constant dense<0.000000e+00> : vector<8x64xf32>
    %131 = tpu.matmul %129, %130, %cst_41 {dimension_numbers = #tpu.dot_dimension_numbers<[1], [0], [0], [1], [0, 0, 1, 1], [], []>} : vector<8x16xbf16>, vector<16x64xbf16>, vector<8x64xf32> -> vector<8x64xf32>
    %132 = arith.addf %108, %131 : vector<8x64xf32>
    %133 = arith.addf %4, %132 : vector<8x64xf32>
    %c0_42 = arith.constant 0 : index
    %c0_43 = arith.constant 0 : index
    %c0_44 = arith.constant 0 : index
    %134 = vector.load %arg8[%c0_42, %c0_43, %c0_44] : memref<1x1x64xf32, #tpu.memory_space<vmem>>, vector<1x1x64xf32>
    %135 = vector.shape_cast %134 : vector<1x1x64xf32> to vector<1x64xf32>
    %136 = vector.broadcast %135 : vector<1x64xf32> to vector<8x64xf32>
    %137 = arith.addf %133, %136 : vector<8x64xf32>
    %c0_45 = arith.constant 0 : index
    %c0_46 = arith.constant 0 : index
    %c0_47 = arith.constant 0 : index
    %138 = vector.load %arg9[%c0_45, %c0_46, %c0_47] : memref<1x1x64xf32, #tpu.memory_space<vmem>>, vector<1x1x64xf32>
    %139 = vector.shape_cast %138 : vector<1x1x64xf32> to vector<1x64xf32>
    %c0_48 = arith.constant 0 : index
    %c0_49 = arith.constant 0 : index
    %c0_50 = arith.constant 0 : index
    %140 = vector.load %arg10[%c0_48, %c0_49, %c0_50] : memref<1x1x64xf32, #tpu.memory_space<vmem>>, vector<1x1x64xf32>
    %141 = vector.shape_cast %140 : vector<1x1x64xf32> to vector<1x64xf32>
    %cst_51 = arith.constant dense<0.000000e+00> : vector<8xf32>
    %142 = vector.multi_reduction <add>, %137, %cst_51 [1] : vector<8x64xf32> to vector<8xf32>
    %143 = vector.shape_cast %142 : vector<8xf32> to vector<8x1xf32>
    %cst_52 = arith.constant 6.400000e+01 : f32
    %144 = vector.broadcast %cst_52 : f32 to vector<8x1xf32>
    %145 = arith.divf %143, %144 : vector<8x1xf32>
    %146 = vector.broadcast %145 : vector<8x1xf32> to vector<8x64xf32>
    %147 = arith.subf %137, %146 : vector<8x64xf32>
    %148 = arith.mulf %147, %147 : vector<8x64xf32>
    %cst_53 = arith.constant dense<0.000000e+00> : vector<8xf32>
    %149 = vector.multi_reduction <add>, %148, %cst_53 [1] : vector<8x64xf32> to vector<8xf32>
    %150 = vector.shape_cast %149 : vector<8xf32> to vector<8x1xf32>
    %cst_54 = arith.constant 6.400000e+01 : f32
    %151 = vector.broadcast %cst_54 : f32 to vector<8x1xf32>
    %152 = arith.divf %150, %151 : vector<8x1xf32>
    %153 = vector.broadcast %145 : vector<8x1xf32> to vector<8x64xf32>
    %154 = arith.subf %137, %153 : vector<8x64xf32>
    %cst_55 = arith.constant 9.99999974E-6 : f32
    %155 = vector.broadcast %cst_55 : f32 to vector<8x1xf32>
    %156 = arith.addf %152, %155 : vector<8x1xf32>
    %157 = math.rsqrt %156 : vector<8x1xf32>
    %158 = vector.broadcast %157 : vector<8x1xf32> to vector<8x64xf32>
    %159 = arith.mulf %154, %158 : vector<8x64xf32>
    %160 = vector.broadcast %139 : vector<1x64xf32> to vector<8x64xf32>
    %161 = arith.mulf %159, %160 : vector<8x64xf32>
    %162 = vector.broadcast %141 : vector<1x64xf32> to vector<8x64xf32>
    %163 = arith.addf %161, %162 : vector<8x64xf32>
    %164 = arith.truncf %163 : vector<8x64xf32> to vector<8x64xbf16>
    %c0_56 = arith.constant 0 : index
    %c0_57 = arith.constant 0 : index
    %c0_58 = arith.constant 0 : index
    %165 = vector.load %arg11[%c0_56, %c0_57, %c0_58] : memref<1x64x128xbf16, #tpu.memory_space<vmem>>, vector<1x64x128xbf16>
    %166 = vector.shape_cast %165 : vector<1x64x128xbf16> to vector<64x128xbf16>
    %cst_59 = arith.constant dense<0.000000e+00> : vector<8x128xf32>
    %167 = tpu.matmul %164, %166, %cst_59 {dimension_numbers = #tpu.dot_dimension_numbers<[1], [0], [0], [1], [0, 0, 1, 1], [], []>} : vector<8x64xbf16>, vector<64x128xbf16>, vector<8x128xf32> -> vector<8x128xf32>
    %c0_60 = arith.constant 0 : index
    %c0_61 = arith.constant 0 : index
    %c0_62 = arith.constant 0 : index
    %168 = vector.load %arg12[%c0_60, %c0_61, %c0_62] : memref<1x1x128xf32, #tpu.memory_space<vmem>>, vector<1x1x128xf32>
    %169 = vector.shape_cast %168 : vector<1x1x128xf32> to vector<1x128xf32>
    %170 = vector.broadcast %169 : vector<1x128xf32> to vector<8x128xf32>
    %171 = arith.addf %167, %170 : vector<8x128xf32>
    %cst_63 = arith.constant 5.000000e-01 : f32
    %172 = vector.broadcast %cst_63 : f32 to vector<8x128xf32>
    %173 = arith.mulf %172, %171 : vector<8x128xf32>
    %cst_64 = arith.constant 4.471500e-02 : f32
    %174 = vector.broadcast %cst_64 : f32 to vector<8x128xf32>
    %175 = arith.mulf %174, %171 : vector<8x128xf32>
    %176 = arith.mulf %175, %171 : vector<8x128xf32>
    %177 = arith.mulf %176, %171 : vector<8x128xf32>
    %178 = arith.addf %171, %177 : vector<8x128xf32>
    %cst_65 = arith.constant 0.797884583 : f32
    %179 = vector.broadcast %cst_65 : f32 to vector<8x128xf32>
    %180 = arith.mulf %179, %178 : vector<8x128xf32>
    %181 = math.tanh %180 : vector<8x128xf32>
    %cst_66 = arith.constant 1.000000e+00 : f32
    %182 = vector.broadcast %cst_66 : f32 to vector<8x128xf32>
    %183 = arith.addf %182, %181 : vector<8x128xf32>
    %184 = arith.mulf %173, %183 : vector<8x128xf32>
    %185 = arith.truncf %184 : vector<8x128xf32> to vector<8x128xbf16>
    %c0_67 = arith.constant 0 : index
    %c0_68 = arith.constant 0 : index
    %c0_69 = arith.constant 0 : index
    %186 = vector.load %arg13[%c0_67, %c0_68, %c0_69] : memref<1x128x64xbf16, #tpu.memory_space<vmem>>, vector<1x128x64xbf16>
    %187 = vector.shape_cast %186 : vector<1x128x64xbf16> to vector<128x64xbf16>
    %cst_70 = arith.constant dense<0.000000e+00> : vector<8x64xf32>
    %188 = tpu.matmul %185, %187, %cst_70 {dimension_numbers = #tpu.dot_dimension_numbers<[1], [0], [0], [1], [0, 0, 1, 1], [], []>} : vector<8x128xbf16>, vector<128x64xbf16>, vector<8x64xf32> -> vector<8x64xf32>
    %c0_71 = arith.constant 0 : index
    %c0_72 = arith.constant 0 : index
    %c0_73 = arith.constant 0 : index
    %189 = vector.load %arg14[%c0_71, %c0_72, %c0_73] : memref<1x1x64xf32, #tpu.memory_space<vmem>>, vector<1x1x64xf32>
    %190 = vector.shape_cast %189 : vector<1x1x64xf32> to vector<1x64xf32>
    %191 = vector.broadcast %190 : vector<1x64xf32> to vector<8x64xf32>
    %192 = arith.addf %188, %191 : vector<8x64xf32>
    %193 = arith.addf %137, %192 : vector<8x64xf32>
    %194 = arith.truncf %193 : vector<8x64xf32> to vector<8x64xbf16>
    %c0_74 = arith.constant 0 : index
    %c0_75 = arith.constant 0 : index
    %195 = vector.load %arg15[%c0_74, %c0_75] : memref<8x64xbf16, #tpu.memory_space<vmem>>, vector<8x64xbf16>
    tpu.vector_store %arg15[%c0_74, %c0_75], %194 {strides = array<i32>} : memref<8x64xbf16, #tpu.memory_space<vmem>>, vector<8x64xbf16>,
    return
  }
  func.func @transform_0(%arg0: i32) -> (i32, i32) {
    %c0_i32 = arith.constant 0 : i32
    %c0_i32_0 = arith.constant 0 : i32
    return %arg0, %c0_i32 : i32, i32
  }
  func.func @transform_1(%arg0: i32) -> (i32, i32) {
    %c0_i32 = arith.constant 0 : i32
    %c0_i32_0 = arith.constant 0 : i32
    %c0_i32_1 = arith.constant 0 : i32
    return %c0_i32, %c0_i32_0 : i32, i32
  }
  func.func @transform_2(%arg0: i32) -> (i32, i32) {
    %c0_i32 = arith.constant 0 : i32
    %c0_i32_0 = arith.constant 0 : i32
    %c0_i32_1 = arith.constant 0 : i32
    return %c0_i32, %c0_i32_0 : i32, i32
  }
  func.func @transform_3(%arg0: i32) -> (i32, i32, i32) {
    %c0_i32 = arith.constant 0 : i32
    %c0_i32_0 = arith.constant 0 : i32
    %c0_i32_1 = arith.constant 0 : i32
    %c0_i32_2 = arith.constant 0 : i32
    return %c0_i32, %c0_i32_0, %c0_i32_1 : i32, i32, i32
  }
  func.func @transform_4(%arg0: i32) -> (i32, i32, i32) {
    %c0_i32 = arith.constant 0 : i32
    %c0_i32_0 = arith.constant 0 : i32
    %c0_i32_1 = arith.constant 0 : i32
    %c0_i32_2 = arith.constant 0 : i32
    return %c0_i32, %c0_i32_0, %c0_i32_1 : i32, i32, i32
  }
  func.func @transform_5(%arg0: i32) -> (i32, i32, i32) {
    %c0_i32 = arith.constant 0 : i32
    %c0_i32_0 = arith.constant 0 : i32
    %c0_i32_1 = arith.constant 0 : i32
    %c0_i32_2 = arith.constant 0 : i32
    return %c0_i32, %c0_i32_0, %c0_i32_1 : i32, i32, i32
  }
  func.func @transform_6(%arg0: i32) -> (i32, i32, i32) {
    %c0_i32 = arith.constant 0 : i32
    %c0_i32_0 = arith.constant 0 : i32
    %c0_i32_1 = arith.constant 0 : i32
    %c0_i32_2 = arith.constant 0 : i32
    return %c0_i32, %c0_i32_0, %c0_i32_1 : i32, i32, i32
  }
  func.func @transform_7(%arg0: i32) -> (i32, i32, i32) {
    %c0_i32 = arith.constant 0 : i32
    %c0_i32_0 = arith.constant 0 : i32
    %c0_i32_1 = arith.constant 0 : i32
    %c0_i32_2 = arith.constant 0 : i32
    return %c0_i32, %c0_i32_0, %c0_i32_1 : i32, i32, i32
  }
  func.func @transform_8(%arg0: i32) -> (i32, i32, i32) {
    %c0_i32 = arith.constant 0 : i32
    %c0_i32_0 = arith.constant 0 : i32
    %c0_i32_1 = arith.constant 0 : i32
    %c0_i32_2 = arith.constant 0 : i32
    return %c0_i32, %c0_i32_0, %c0_i32_1 : i32, i32, i32
  }
  func.func @transform_9(%arg0: i32) -> (i32, i32, i32) {
    %c0_i32 = arith.constant 0 : i32
    %c0_i32_0 = arith.constant 0 : i32
    %c0_i32_1 = arith.constant 0 : i32
    %c0_i32_2 = arith.constant 0 : i32
    return %c0_i32, %c0_i32_0, %c0_i32_1 : i32, i32, i32
  }
  func.func @transform_10(%arg0: i32) -> (i32, i32, i32) {
    %c0_i32 = arith.constant 0 : i32
    %c0_i32_0 = arith.constant 0 : i32
    %c0_i32_1 = arith.constant 0 : i32
    %c0_i32_2 = arith.constant 0 : i32
    return %c0_i32, %c0_i32_0, %c0_i32_1 : i32, i32, i32
  }
  func.func @transform_11(%arg0: i32) -> (i32, i32, i32) {
    %c0_i32 = arith.constant 0 : i32
    %c0_i32_0 = arith.constant 0 : i32
    %c0_i32_1 = arith.constant 0 : i32
    %c0_i32_2 = arith.constant 0 : i32
    return %c0_i32, %c0_i32_0, %c0_i32_1 : i32, i32, i32
  }
  func.func @transform_12(%arg0: i32) -> (i32, i32, i32) {
    %c0_i32 = arith.constant 0 : i32
    %c0_i32_0 = arith.constant 0 : i32
    %c0_i32_1 = arith.constant 0 : i32
    %c0_i32_2 = arith.constant 0 : i32
    return %c0_i32, %c0_i32_0, %c0_i32_1 : i32, i32, i32
  }
  func.func @transform_13(%arg0: i32) -> (i32, i32, i32) {
    %c0_i32 = arith.constant 0 : i32
    %c0_i32_0 = arith.constant 0 : i32
    %c0_i32_1 = arith.constant 0 : i32
    %c0_i32_2 = arith.constant 0 : i32
    return %c0_i32, %c0_i32_0, %c0_i32_1 : i32, i32, i32
  }
  func.func @transform_14(%arg0: i32) -> (i32, i32) {
    %c0_i32 = arith.constant 0 : i32
    %c0_i32_0 = arith.constant 0 : i32
    return %arg0, %c0_i32 : i32, i32
  }
}

module attributes {stable_mosaic.version = 11 : i64} {
  func.func @_head_kernel(%arg0: memref<2x4x64xbf16, #tpu.memory_space<vmem>>, %arg1: memref<1x64xf32, #tpu.memory_space<vmem>>, %arg2: memref<1x64xf32, #tpu.memory_space<vmem>>, %arg3: memref<64x5xbf16, #tpu.memory_space<vmem>>, %arg4: memref<1x5xf32, #tpu.memory_space<vmem>>, %arg5: memref<2x5xf32, #tpu.memory_space<vmem>>) attributes {dimension_semantics = [], scalar_prefetch = 0 : i64, scratch_operands = 0 : i64, tpu.core_type = #tpu.core_type<tc>} {
    %c0 = arith.constant 0 : index
    %c0_0 = arith.constant 0 : index
    %c0_1 = arith.constant 0 : index
    %0 = vector.load %arg0[%c0, %c0_0, %c0_1] : memref<2x4x64xbf16, #tpu.memory_space<vmem>>, vector<2x4x64xbf16>
    %1 = arith.extf %0 : vector<2x4x64xbf16> to vector<2x4x64xf32>
    %c0_2 = arith.constant 0 : index
    %c0_3 = arith.constant 0 : index
    %2 = vector.load %arg1[%c0_2, %c0_3] : memref<1x64xf32, #tpu.memory_space<vmem>>, vector<1x64xf32>
    %c0_4 = arith.constant 0 : index
    %c0_5 = arith.constant 0 : index
    %3 = vector.load %arg2[%c0_4, %c0_5] : memref<1x64xf32, #tpu.memory_space<vmem>>, vector<1x64xf32>
    %cst = arith.constant dense<0.000000e+00> : vector<2x4xf32>
    %4 = vector.multi_reduction <add>, %1, %cst [2] : vector<2x4x64xf32> to vector<2x4xf32>
    %5 = vector.shape_cast %4 : vector<2x4xf32> to vector<2x4x1xf32>
    %cst_6 = arith.constant 6.400000e+01 : f32
    %6 = vector.broadcast %cst_6 : f32 to vector<2x4x1xf32>
    %7 = arith.divf %5, %6 : vector<2x4x1xf32>
    %8 = vector.broadcast %7 : vector<2x4x1xf32> to vector<2x4x64xf32>
    %9 = arith.subf %1, %8 : vector<2x4x64xf32>
    %10 = arith.mulf %9, %9 : vector<2x4x64xf32>
    %cst_7 = arith.constant dense<0.000000e+00> : vector<2x4xf32>
    %11 = vector.multi_reduction <add>, %10, %cst_7 [2] : vector<2x4x64xf32> to vector<2x4xf32>
    %12 = vector.shape_cast %11 : vector<2x4xf32> to vector<2x4x1xf32>
    %cst_8 = arith.constant 6.400000e+01 : f32
    %13 = vector.broadcast %cst_8 : f32 to vector<2x4x1xf32>
    %14 = arith.divf %12, %13 : vector<2x4x1xf32>
    %15 = vector.broadcast %7 : vector<2x4x1xf32> to vector<2x4x64xf32>
    %16 = arith.subf %1, %15 : vector<2x4x64xf32>
    %cst_9 = arith.constant 9.99999974E-6 : f32
    %17 = vector.broadcast %cst_9 : f32 to vector<2x4x1xf32>
    %18 = arith.addf %14, %17 : vector<2x4x1xf32>
    %19 = math.rsqrt %18 : vector<2x4x1xf32>
    %20 = vector.broadcast %19 : vector<2x4x1xf32> to vector<2x4x64xf32>
    %21 = arith.mulf %16, %20 : vector<2x4x64xf32>
    %22 = vector.shape_cast %2 : vector<1x64xf32> to vector<1x1x64xf32>
    %23 = vector.broadcast %22 : vector<1x1x64xf32> to vector<2x4x64xf32>
    %24 = arith.mulf %21, %23 : vector<2x4x64xf32>
    %25 = vector.shape_cast %3 : vector<1x64xf32> to vector<1x1x64xf32>
    %26 = vector.broadcast %25 : vector<1x1x64xf32> to vector<2x4x64xf32>
    %27 = arith.addf %24, %26 : vector<2x4x64xf32>
    %cst_10 = arith.constant dense<0.000000e+00> : vector<2x64xf32>
    %28 = vector.multi_reduction <add>, %27, %cst_10 [1] : vector<2x4x64xf32> to vector<2x64xf32>
    %cst_11 = arith.constant 4.000000e+00 : f32
    %29 = vector.broadcast %cst_11 : f32 to vector<2x64xf32>
    %30 = arith.divf %28, %29 : vector<2x64xf32>
    %31 = arith.truncf %30 : vector<2x64xf32> to vector<2x64xbf16>
    %c0_12 = arith.constant 0 : index
    %c0_13 = arith.constant 0 : index
    %32 = vector.load %arg3[%c0_12, %c0_13] : memref<64x5xbf16, #tpu.memory_space<vmem>>, vector<64x5xbf16>
    %cst_14 = arith.constant dense<0.000000e+00> : vector<2x5xf32>
    %33 = tpu.matmul %31, %32, %cst_14 {dimension_numbers = #tpu.dot_dimension_numbers<[1], [0], [0], [1], [0, 0, 1, 1], [], []>} : vector<2x64xbf16>, vector<64x5xbf16>, vector<2x5xf32> -> vector<2x5xf32>
    %c0_15 = arith.constant 0 : index
    %c0_16 = arith.constant 0 : index
    %34 = vector.load %arg4[%c0_15, %c0_16] : memref<1x5xf32, #tpu.memory_space<vmem>>, vector<1x5xf32>
    %35 = vector.broadcast %34 : vector<1x5xf32> to vector<2x5xf32>
    %36 = arith.addf %33, %35 : vector<2x5xf32>
    %c0_17 = arith.constant 0 : index
    %c0_18 = arith.constant 0 : index
    %37 = vector.load %arg5[%c0_17, %c0_18] : memref<2x5xf32, #tpu.memory_space<vmem>>, vector<2x5xf32>
    tpu.vector_store %arg5[%c0_17, %c0_18], %36 {strides = array<i32>} : memref<2x5xf32, #tpu.memory_space<vmem>>, vector<2x5xf32>,
    return
  }
}

</mosaic_0001>

<bundles_post_ra>
// kernel: htnet_forward.5
= control target key start
LH: loop header
LB: loop body
LE: loop exit
PB: predicated region body
PF: predicated region fallthrough
CT: control target
= control target key end

     0   :  { %s404_s12 = smov 0   ;;  %s433_s0 = inlined_call_operand.vmem [shape: bf16[32,48], index: 0, kind: input, shape index: {}]   ;;  %s434_s1 = inlined_call_operand.vmem [shape: bf16[48,32], index: 1, kind: input, shape index: {}]   ;;  %s435_s2 = inlined_call_operand.vmem [shape: f32[1,32], index: 2, kind: input, shape index: {}]   ;;  %s436_s3 = inlined_call_operand.vmem [shape: bf16[32,32], index: 3, kind: output, shape index: {}]  }
   0x1 LB: > { %s325_s13 = sadd.s32 4294967295, %s380_s12   ;;  %p329_p0 = scmp.ge.s32.totalorder %s380_s12, 1  ;;  %s380_s12 = sphi %s404_s12, %s13_s12  }
   0x2   : > { %p138_p1 = scmp.lt.s32.totalorder %s380_s12, 3 }
   0x4   : > { %p139_p2 = pnand %p329_p0, %p138_p1 }
   0x5   : > { %v370_v0 = vld [vmem:[%s434_s1] sm:$0xff] (!%p139_p2)   ;;  %v382_v1 = vmov (!%p139_p2), 0.0   ;;  %v371_v2 = vld [vmem:[%s434_s1 + $0x8] sm:$0xff] (!%p139_p2)   ;;  %vm383_vm0 = vmmov (!%p139_p2), 0   ;;  %s330_s18 = sshll.u32 (!%p139_p2), %s325_s13, 1  ;;  %v372_v3 = vld [vmem:[%s434_s1 + $0x10] sm:$0xff] (!%p139_p2)  }
   0x6   : > { %142 = sbr.rel (%p139_p2) target bundleno = 237 (0xed), region = 32  ;;  %350 = vmatprep.subr.bf16.mxu0 (!%p139_p2), %v382_v1  ;;  %356 = vmatprep.mubr.msk.bf16.mxu0 (!%p139_p2), %vm383_vm0, %v382_v1  ;;  %p163_p3 = scmp.lt.s32.totalorder (!%p139_p2), %s330_s18, 3  ;;  %vm213_vm1 = vcmask (!%p139_p2), 392192   ;;  %v334_v5 = vld [vmem:[%s435_s2] ss:$0 sm:$0xff] (!%p139_p2)  ;;  %vm266_vm2 = vcmask (!%p139_p2), 257024  }
   0x7   : > { %351 = vmatpush3.bf16.msra.mxu0 (!%p139_p2), %v370_v0 }
   0x8   : > { %352 = vmatprep.subr.bf16.mxu0 (!%p139_p2), %v382_v1 }
   0xb   : > { %353 = vmatpush3.bf16.msra.mxu0 (!%p139_p2), %v371_v2 }
   0xc   : > { %354 = vmatprep.subr.bf16.mxu0 (!%p139_p2), %v382_v1 }
   0xd   : > { %s438_s18 = smov (!%p163_p3, %s330_s18), 3 }
   0xe   : > { %s331_s21 = sshll.u32 %s438_s18, 2 }
   0xf   : > { %s166_s24 = scalar_lea.vmem %s433_s0, %s331_s21  ;;  %355 = vmatpush3.bf16.msra.mxu0 %v372_v3  ;;  %s172_s29 = scalar_lea.vmem %s436_s3, %s331_s21 }
  0x10   : > { %v373_v4 = vld [vmem:[%s166_s24] sm:$0xff]  }
  0x12   : > { %357 = vmatmul.mubr.msk.bf16.vlgmr.msra.gmra.mrb[0].mxu0 %vm213_vm1, %v373_v4 }
  0xe5   : > { %v251_v6 = vpop.f32.mrb[0].mxu0 }
  0xe6   : > { %v252_v7 = vadd.f32 %v334_v5, %v251_v6  ;;  %v358_v8 = vpop.f32.mrb[1].mxu0 }
  0xe7   : > { %v254_v9 = vpop.f32.mrb[2].mxu0 }
  0xe8   : > { %v344_v10 = vpack.c.bf16 %v252_v7, %v252_v7  ;;  %v255_v11 = vadd.f32 %v334_v5, %v254_v9  ;;  %v359_v12 = vpop.f32.mrb[3].mxu0 }
  0xea   : > { %267 = vst.msk [vmem:[%s172_s29] sm:$0xf] %vm266_vm2, %v344_v10  ;;  %v345_v13 = vpack.c.bf16 %v255_v11, %v255_v11 }
  0xec   : > { %268 = vst.msk [vmem:[%s172_s29 + $0x4] sm:$0xf] %vm266_vm2, %v345_v13 }
  0xed PF: > { %s13_s12 = sadd.s32 1, %s380_s12  }
  0xee   : > { %p10_p4 = scmp.ge.s32.totalorder %s13_s12, 4  }
  0xf0   :  { %12 = sbr.rel (!%p10_p4) target bundleno = 1 (0x1), region = 62 }

// kernel: htnet_forward.7
= control target key start
LH: loop header
LB: loop body
LE: loop exit
PB: predicated region body
PF: predicated region fallthrough
CT: control target
= control target key end

     0   :  { %s1495_s21 = smov 0   ;;  %s1645_s0 = inlined_call_operand.vmem [shape: bf16[2,42,32], index: 0, kind: input, shape index: {}]   ;;  %s1646_s1 = inlined_call_operand.vmem [shape: bf16[9,32,64], index: 1, kind: input, shape index: {}]   ;;  %s1647_s2 = inlined_call_operand.vmem [shape: f32[1,64], index: 2, kind: input, shape index: {}]   ;;  %s1648_s3 = inlined_call_operand.vmem [shape: f32[1,64], index: 3, kind: input, shape index: {}]   ;;  %s1649_s4 = inlined_call_operand.vmem [shape: f32[1,64], index: 4, kind: input, shape index: {}]   ;;  %s1650_s5 = inlined_call_operand.vmem [shape: f32[24,1], index: 5, kind: input, shape index: {}]   ;;  %s1651_s6 = inlined_call_operand.vmem [shape: bf16[2,24,64], index: 6, kind: output, shape index: {}]  }
   0x1 LB: > { %s1206_s22 = sadd.s32 4294967295, %s1456_s21   ;;  %p1210_p0 = scmp.ge.s32.totalorder %s1456_s21, 1  ;;  %s1456_s21 = sphi %s1495_s21, %s16_s21  }
   0x2   : > { %p212_p1 = scmp.lt.s32.totalorder %s1456_s21, 3 }
   0x4   : > { %p213_p2 = pnand %p1210_p0, %p212_p1 }
   0x5   : > { %v1420_v0 = vld [vmem:[%s1646_s1 + $0x10] sm:$0xff] (!%p213_p2)   ;;  %p242_p3 = scmp.lt.s32.totalorder (!%p213_p2), %s1206_s22, 1  ;;  %v1421_v1 = vld [vmem:[%s1646_s1] sm:$0xff] (!%p213_p2)   ;;  %v1422_v2 = vld [vmem:[%s1646_s1 + $0x18] sm:$0xff] (!%p213_p2)   ;;  %vm305_vm0 = vcmask (!%p213_p2), 261120   ;;  %vm431_vm1 = vcmask (!%p213_p2), 1046528  }
   0x6   : > { %216 = sbr.rel (%p213_p2) target bundleno = 626 (0x272), region = 44  ;;  %1334 = vmatprep.subr.bf16.mxu0 (!%p213_p2), %v1420_v0  ;;  %1342 = vmatprep.subr.bf16.mxu1 (!%p213_p2), %v1421_v1  ;;  %v1423_v3 = vld [vmem:[%s1646_s1 + $0x8] sm:$0xff] (!%p213_p2)   ;;  %v1426_v4 = vld [vmem:[%s1646_s1 + $0x20] sm:$0xff] (!%p213_p2)   ;;  %v1428_v5 = vld [vmem:[%s1646_s1 + $0x30] sm:$0xff] (!%p213_p2)   ;;  %vm277_vm2 = vsmask.f32 (!%p213_p2), 7424 }
   0x7   : > { %1335 = vmatpush3.bf16.msra.mxu0 (!%p213_p2), %v1420_v0  ;;  %1343 = vmatpush3.bf16.msra.mxu1 (!%p213_p2), %v1421_v1  ;;  %v1430_v13 = vld [vmem:[%s1646_s1 + $0x38] sm:$0xff] (!%p213_p2)   ;;  %vm509_vm3 = vcmask (!%p213_p2), 1044480   ;;  %v1432_v24 = vld [vmem:[%s1646_s1 + $0x50] sm:$0xff] (!%p213_p2)   ;;  %v1429_v30 = vld [vmem:[%s1646_s1 + $0x28] sm:$0xff] (!%p213_p2)   ;;  %vm587_vm4 = vsmask.f32 (!%p213_p2), 4352 }
   0x8   : > { %1336 = vmatprep.subr.bf16.mxu0 (!%p213_p2), %v1422_v2  ;;  %1344 = vmatprep.subr.bf16.mxu1 (!%p213_p2), %v1423_v3  ;;  %v1434_v37 = vld [vmem:[%s1646_s1 + $0x58] sm:$0xff] (!%p213_p2)   ;;  %v1431_v39 = vld [vmem:[%s1646_s1 + $0x40] sm:$0xff] (!%p213_p2)   ;;  %v1438_v46 = vld [vmem:[%s1646_s1 + $0x70] sm:$0xff] (!%p213_p2)   ;;  %vm826_vm5 = vsmask.f32 (!%p213_p2), 5376  ;;  %vm748_vm6 = vcmask (!%p213_p2), 1045504  }
   0x9   : > { %v1433_v50 = vld [vmem:[%s1646_s1 + $0x48] sm:$0xff] (!%p213_p2)   ;;  %v1440_v55 = vld [vmem:[%s1646_s1 + $0x78] sm:$0xff] (!%p213_p2)   ;;  %v1435_v57 = vld [vmem:[%s1646_s1 + $0x60] sm:$0xff] (!%p213_p2)   ;;  %vm1001_vm7 = vcmask (!%p213_p2), 523264   ;;  %vm1081_vm8 = vcmask (!%p213_p2), 522240   ;;  %vm1147_vm9 = vcmask (!%p213_p2), 519168  }
   0xa   : > { %v1439_v61 = vld [vmem:[%s1646_s1 + $0x68] sm:$0xff] (!%p213_p2)   ;;  %v1442_v63 = vld [vmem:[%s1646_s1 + $0x80] sm:$0xff] (!%p213_p2)  }
   0xb   : > { %1337 = vmatpush3.bf16.msra.mxu0 (!%p213_p2), %v1422_v2  ;;  %1345 = vmatpush3.bf16.msra.mxu1 (!%p213_p2), %v1423_v3  ;;  %v1443_v2 = vld [vmem:[%s1646_s1 + $0x88] sm:$0xff] (!%p213_p2)  }
   0xc   : > { %1350 = vmatprep.subr.bf16.mxu0 (!%p213_p2), %v1426_v4  ;;  %1358 = vmatprep.subr.bf16.mxu1 (!%p213_p2), %v1428_v5 }
   0xd   : > { %s1653_s22 = smov (!%p242_p3, %s1206_s22), 1 }
   0xe   : > { %s1406_s7 = smul.u32 24, %s1653_s22 }
  0x10   : > { %s1527_s14 = scalar_lea.vmem %s1645_s0, %s1406_s7  ;;  %s1407_s7 = smul.u32 12, %s1653_s22 }
  0x11   : > { %v253_v6 = vld [vmem:[%s1527_s14] sm:$0xf]  ;;  %v254_v7 = vld [vmem:[%s1527_s14 + $0x4] sm:$0xf]  ;;  %v255_v8 = vld [vmem:[%s1527_s14 + $0x8] sm:$0xf] }
  0x12   : > { %v1533_v9 = vld [vmem:[%s1527_s14 + $0xc] sm:$0xf]  ;;  %v1217_v10 = vcombine.low %v253_v6, %v254_v7  ;;  %v1223_v11 = vcombine.low %v255_v8, %v255_v8  ;;  %v1550_v25 = vcombine.low %v254_v7, %v255_v8  ;;  %v257_v41 = vld [vmem:[%s1527_s14 + $0x10] sm:$0xf]  ;;  %s251_s10 = scalar_lea.vmem %s1651_s6, %s1407_s7 }
  0x13   : > { %v1536_v12 = vcombine.low %v255_v8, %v1533_v9  ;;  %v1266_v43 = vcombine.low %v1533_v9, %v257_v41  ;;  %v1257_v49 = vcombine.low %v1533_v9, %v1533_v9 }
  0x14   : > { %v279_v14 = vshrl.u32 %v1217_v10, 16  ;;  %v281_v15 = vshll.u32 %v1217_v10, 16  ;;  %1346 = vmatprep.mubr.msk.bf16.mxu1 %vm305_vm0, %v1217_v10  ;;  %v510_v18 = vrot.slane %v1217_v10, 3  ;;  %v432_v20 = vrot.slane %v1217_v10, 1 }
  0x15   : > { %v286_v16 = vshll.u32 %v1536_v12, 16  ;;  %v290_v17 = vshrl.u32 %v1536_v12, 16  ;;  %1347 = vmatmul.mubr.msk.bf16.vlgmr.msra.gmra.mrb[0].mxu1 %vm305_vm0, %v1223_v11  ;;  %v433_v21 = vrot.slane %v1536_v12, 1  ;;  %v511_v22 = vrot.slane %v1536_v12, 3 }
  0x16   : > { %v283_v19 = vrot.slane %v281_v15, 1  ;;  %1359 = vmatpush3.bf16.msra.mxu1 %v1428_v5  ;;  %v588_v29 = vrot.slane %v279_v14, 3  ;;  %v589_v31 = vrot.slane %v281_v15, 4  ;;  %v827_v36 = vshrl.u32 %v1550_v25, 16 }
  0x17   : > { %v288_v23 = vrot.slane %v286_v16, 1  ;;  %1360 = vmatprep.subr.bf16.mxu1 %v1430_v13  ;;  %v512_v27 = vsel %vm509_vm3, %v510_v18, %v511_v22  ;;  %v592_v33 = vrot.slane %v286_v16, 4  ;;  %v434_v34 = vsel %vm431_vm1, %v432_v20, %v433_v21 }
  0x18   : > { %v284_v26 = vor.u32 %v283_v19, %v279_v14  ;;  %1362 = vmatprep.mubr.msk.bf16.mxu1 %vm305_vm0, %v512_v27  ;;  %v591_v35 = vrot.slane %v290_v17, 3  ;;  %v830_v38 = vshll.u32 %v1550_v25, 16  ;;  %v590_v40 = vor.u32 %v589_v31, %v588_v29 }
  0x19   : > { %v292_v28 = vor.u32 %v290_v17, %v288_v23  ;;  %v829_v44 = vrot.slane %v827_v36, 2  ;;  %v835_v47 = vshrl.u32 %v1266_v43, 16  ;;  %v838_v48 = vshll.u32 %v1266_v43, 16 }
  0x1a   : > { %v289_v32 = vsel %vm277_vm2, %v284_v26, %v288_v23  ;;  %1361 = vmatpush3.bf16.msra.mxu1 %v1430_v13  ;;  %v593_v42 = vor.u32 %v592_v33, %v591_v35  ;;  %v832_v45 = vrot.slane %v830_v38, 3  ;;  %v749_v58 = vrot.slane %v1550_v25, 2 }
  0x1b   : > { %1338 = vmatprep.mubr.msk.bf16.mxu0 %vm305_vm0, %v289_v32  ;;  %1374 = vmatprep.subr.bf16.mxu1 %v1432_v24  ;;  %v837_v53 = vrot.slane %v835_v47, 2  ;;  %v840_v54 = vrot.slane %v838_v48, 3  ;;  %v750_v59 = vrot.slane %v1266_v43, 2  ;;  %v917_v0 = vrot.slane %v1550_v25, 3 }
  0x1c   : > { %1339 = vmatmul.mubr.msk.bf16.vlgmr.msra.gmra.mrb[0].mxu0 %vm305_vm0, %v292_v28  ;;  %v594_v51 = vsel %vm587_vm4, %v590_v40, %v593_v42  ;;  %v833_v52 = vor.u32 %v832_v45, %v829_v44  ;;  %v918_v1 = vrot.slane %v1266_v43, 3 }
  0x1d   : > { %1351 = vmatpush3.bf16.msra.mxu0 %v1426_v4  ;;  %1354 = vmatprep.mubr.msk.bf16.mxu0 %vm305_vm0, %v434_v34  ;;  %v841_v56 = vor.u32 %v840_v54, %v837_v53  ;;  %v751_v62 = vsel %vm748_vm6, %v749_v58, %v750_v59  ;;  %v1287_v58 = vld [vmem:[%s1647_s2] ss:$0 sm:$0xff] }
  0x1e   : > { %1352 = vmatprep.subr.bf16.mxu0 %v1429_v30  ;;  %1363 = vmatmul.mubr.msk.bf16.vlgmr.msra.gmra.mrb[4].mxu1 %vm305_vm0, %v511_v22  ;;  %v919_v3 = vsel %vm509_vm3, %v917_v0, %v918_v1 }
  0x1f   : > { %1375 = vmatpush3.bf16.msra.mxu1 %v1432_v24  ;;  %1378 = vmatprep.mubr.msk.bf16.mxu1 %vm305_vm0, %v1550_v25  ;;  %v842_v60 = vsel %vm826_vm5, %v833_v52, %v841_v56 }
  0x20   : > { %1376 = vmatprep.subr.bf16.mxu1 %v1434_v37 }
  0x21   : > { %1353 = vmatpush3.bf16.msra.mxu0 %v1429_v30 }
  0x22   : > { %1366 = vmatprep.subr.bf16.mxu0 %v1431_v39 }
  0x23   : > { %1377 = vmatpush3.bf16.msra.mxu1 %v1434_v37 }
  0x24   : > { %1355 = vmatmul.mubr.msk.bf16.vlgmr.msra.gmra.mrb[4].mxu0 %vm305_vm0, %v433_v21  ;;  %1390 = vmatprep.subr.bf16.mxu1 %v1438_v46 }
  0x25   : > { %1367 = vmatpush3.bf16.msra.mxu0 %v1431_v39  ;;  %1370 = vmatprep.mubr.msk.bf16.mxu0 %vm305_vm0, %v594_v51 }
  0x26   : > { %1368 = vmatprep.subr.bf16.mxu0 %v1433_v50  ;;  %1379 = vmatmul.mubr.msk.bf16.vlgmr.msra.gmra.mrb[8].mxu1 %vm305_vm0, %v1257_v49 }
  0x27   : > { %1391 = vmatpush3.bf16.msra.mxu1 %v1438_v46  ;;  %1394 = vmatprep.mubr.msk.bf16.mxu1 %vm305_vm0, %v842_v60 }
  0x28   : > { %1392 = vmatprep.subr.bf16.mxu1 %v1440_v55 }
  0x29   : > { %1369 = vmatpush3.bf16.msra.mxu0 %v1433_v50 }
  0x2a   : > { %1382 = vmatprep.subr.bf16.mxu0 %v1435_v57 }
  0x2b   : > { %1393 = vmatpush3.bf16.msra.mxu1 %v1440_v55 }
  0x2c   : > { %1371 = vmatmul.mubr.msk.bf16.vlgmr.msra.gmra.mrb[8].mxu0 %vm305_vm0, %v593_v42 }
  0x2d   : > { %1383 = vmatpush3.bf16.msra.mxu0 %v1435_v57  ;;  %1386 = vmatprep.mubr.msk.bf16.mxu0 %vm305_vm0, %v751_v62 }
  0x2e   : > { %1384 = vmatprep.subr.bf16.mxu0 %v1439_v61  ;;  %1395 = vmatmul.mubr.msk.bf16.vlgmr.msra.gmra.mrb[12].mxu1 %vm305_vm0, %v841_v56 }
  0x31   : > { %1385 = vmatpush3.bf16.msra.mxu0 %v1439_v61 }
  0x32   : > { %1398 = vmatprep.subr.bf16.mxu0 %v1442_v63 }
  0x34   : > { %1387 = vmatmul.mubr.msk.bf16.vlgmr.msra.gmra.mrb[12].mxu0 %vm305_vm0, %v750_v59 }
  0x35   : > { %1399 = vmatpush3.bf16.msra.mxu0 %v1442_v63  ;;  %1402 = vmatprep.mubr.msk.bf16.mxu0 %vm305_vm0, %v919_v3 }
  0x36   : > { %1400 = vmatprep.subr.bf16.mxu0 %v1443_v2 }
  0x39   : > { %1401 = vmatpush3.bf16.msra.mxu0 %v1443_v2 }
  0x3c   : > { %1403 = vmatmul.mubr.msk.bf16.vlgmr.msra.gmra.mrb[16].mxu0 %vm305_vm0, %v918_v1 }
  0xe8   : > { %v1348_v4 = vpop.f32.mrb[0].mxu1 }
  0xe9   : > { %v412_v5 = vpop.f32.mrb[1].mxu1 }
  0xea   : > { %v1349_v6 = vpop.f32.mrb[2].mxu1 }
  0xeb   : > { %v415_v7 = vpop.f32.mrb[3].mxu1 }
  0xef   : > { %v1340_v8 = vpop.f32.mrb[0].mxu0 }
  0xf0   : > { %v421_v9 = vadd.f32 %v1348_v4, %v1340_v8  ;;  %v346_v10 = vpop.f32.mrb[1].mxu0 }
  0xf1   : > { %v413_v11 = vadd.f32 %v412_v5, %v346_v10  ;;  %v1341_v12 = vpop.f32.mrb[2].mxu0  ;;  %v1364_v13 = vpop.f32.mrb[4].mxu1 }
  0xf2   : > { %v349_v14 = vpop.f32.mrb[3].mxu0  ;;  %v565_v15 = vpop.f32.mrb[5].mxu1 }
  0xf3   : > { %v416_v16 = vadd.f32 %v415_v7, %v349_v14  ;;  %v1365_v17 = vpop.f32.mrb[6].mxu1  ;;  %v1458_v7 = vmov 0  }
  0xf4   : > { %v568_v18 = vpop.f32.mrb[7].mxu1  ;;  %1419 = vset.pattern.permute.xlu1 %v1458_v7  ;;  %1418 = vset.pattern.permute.xlu0 %v1458_v7 }
  0xf7   : > { %v1356_v19 = vpop.f32.mrb[4].mxu0 }
  0xf8   : > { %v503_v20 = vadd.f32 %v1356_v19, %v421_v9  ;;  %v487_v21 = vpop.f32.mrb[5].mxu0 }
  0xf9   : > { %v501_v22 = vadd.f32 %v487_v21, %v413_v11  ;;  %v1357_v23 = vpop.f32.mrb[6].mxu0  ;;  %v1380_v24 = vpop.f32.mrb[8].mxu1 }
  0xfa   : > { %v581_v25 = vadd.f32 %v1364_v13, %v503_v20  ;;  %v490_v26 = vpop.f32.mrb[7].mxu0  ;;  %v723_v27 = vpop.f32.mrb[9].mxu1  ;;  %v1061_v23 = vld [vmem:[%s1650_s5 + $0x8] sm:$0xff] }
  0xfb   : > { %v502_v28 = vadd.f32 %v490_v26, %v416_v16  ;;  %v579_v29 = vadd.f32 %v565_v15, %v501_v22  ;;  %v1381_v30 = vpop.f32.mrb[10].mxu1  ;;  %v1459_v26 = vmov -1e+30  }
  0xfc   : > { %v726_v31 = vpop.f32.mrb[11].mxu1  ;;  %1083 = vst.msk [vmem:[#allocation2 + $0x1f] sm:$0x7f] %vm1081_vm8, %v1459_v26  ;;  %1082 = vst.msk [vmem:[#allocation2] sm:$0x7f] %vm1081_vm8, %v1459_v26 }
  0xfd   : > { %v580_v32 = vadd.f32 %v568_v18, %v502_v28 }
  0xff   : > { %v1372_v33 = vpop.f32.mrb[8].mxu0 }
 0x100   : > { %v663_v34 = vadd.f32 %v1372_v33, %v581_v25  ;;  %v647_v35 = vpop.f32.mrb[9].mxu0  ;;  %v1060_v25 = vld [vmem:[%s1650_s5] sm:$0xff] }
 0x101   : > { %v661_v36 = vadd.f32 %v647_v35, %v579_v29  ;;  %v1373_v37 = vpop.f32.mrb[10].mxu0  ;;  %v1396_v38 = vpop.f32.mrb[12].mxu1 }
 0x102   : > { %v739_v39 = vadd.f32 %v1380_v24, %v663_v34  ;;  %v650_v40 = vpop.f32.mrb[11].mxu0  ;;  %v895_v41 = vpop.f32.mrb[13].mxu1  ;;  %v1062_v24 = vld [vmem:[%s1650_s5 + $0x10] sm:$0xff] }
 0x103   : > { %v662_v42 = vadd.f32 %v650_v40, %v580_v32  ;;  %v737_v43 = vadd.f32 %v723_v27, %v661_v36  ;;  %v1397_v44 = vpop.f32.mrb[14].mxu1  ;;  %v1289_v40 = vld [vmem:[%s1649_s4] ss:$0 sm:$0xff] }
 0x104   : > { %v898_v45 = vpop.f32.mrb[15].mxu1 }
 0x105   : > { %v738_v46 = vadd.f32 %v726_v31, %v662_v42 }
 0x107   : > { %v1388_v47 = vpop.f32.mrb[12].mxu0 }
 0x108   : > { %v820_v48 = vadd.f32 %v1388_v47, %v739_v39  ;;  %v804_v49 = vpop.f32.mrb[13].mxu0 }
 0x109   : > { %v818_v50 = vadd.f32 %v804_v49, %v737_v43  ;;  %v1389_v51 = vpop.f32.mrb[14].mxu0 }
 0x10a   : > { %v911_v52 = vadd.f32 %v1396_v38, %v820_v48  ;;  %v807_v53 = vpop.f32.mrb[15].mxu0  ;;  %v1288_v38 = vld [vmem:[%s1648_s3] ss:$0 sm:$0xff] }
 0x10b   : > { %v819_v54 = vadd.f32 %v807_v53, %v738_v46  ;;  %v909_v55 = vadd.f32 %v895_v41, %v818_v50 }
 0x10d   : > { %v910_v56 = vadd.f32 %v898_v45, %v819_v54 }
 0x10f   : > { %v1404_v57 = vpop.f32.mrb[16].mxu0 }
 0x110   : > { %v988_v59 = vadd.f32 %v1404_v57, %v911_v52  ;;  %v972_v60 = vpop.f32.mrb[17].mxu0 }
 0x111   : > { %v986_v61 = vadd.f32 %v972_v60, %v909_v55  ;;  %v1405_v62 = vpop.f32.mrb[18].mxu0 }
 0x112   : > { %v975_v63 = vpop.f32.mrb[19].mxu0  ;;  %v998_v0 = vadd.f32 %v1287_v58, %v988_v59 }
 0x113   : > { %v987_v1 = vadd.f32 %v975_v63, %v910_v56  ;;  %v996_v2 = vadd.f32 %v1287_v58, %v986_v61 }
 0x114   : > { %v1008_v3 = vsel %vm1001_vm7, %v998_v0, 0.0 }
 0x115   : > { %1009 = vadd.xlane.f32.xlu1 %v1008_v3  ;;  %v1002_v4 = vsel %vm1001_vm7, %v996_v2, 0.0  ;;  %v997_v5 = vadd.f32 %v1287_v58, %v987_v1 }
 0x116   : > { %1003 = vadd.xlane.f32.xlu0 %v1002_v4 }
 0x117   : > { %v1005_v6 = vsel %vm1001_vm7, %v997_v5, 0.0 }
 0x11a   : > { %1006 = vadd.xlane.f32.xlu0 %v1005_v6 }
 0x1a2   : > { %v1010_v8 = vpop.xlane.xlu1 %1009 }
 0x1a3   : > { %v1014_v9 = vmul.f32 0.015625, %v1010_v8  ;;  %v1004_v10 = vpop.xlane.xlu0 %1003 }
 0x1a4   : > { %v1012_v11 = vmul.f32 0.015625, %v1004_v10 }
 0x1a5   : > { %v1017_v12 = vsub.f32 %v998_v0, %v1014_v9 }
 0x1a6   : > { %v1015_v13 = vsub.f32 %v996_v2, %v1012_v11 }
 0x1a7   : > { %v1007_v14 = vpop.xlane.xlu0 %1006  ;;  %v1020_v15 = vmul.f32 %v1017_v12, %v1017_v12 }
 0x1a8   : > { %v1013_v16 = vmul.f32 0.015625, %v1007_v14  ;;  %v1018_v18 = vmul.f32 %v1015_v13, %v1015_v13 }
 0x1a9   : > { %v1027_v17 = vsel %vm1001_vm7, %v1020_v15, 0.0 }
 0x1aa   : > { %v1016_v19 = vsub.f32 %v997_v5, %v1013_v16  ;;  %1028 = vadd.xlane.f32.xlu1 %v1027_v17  ;;  %v1021_v21 = vsel %vm1001_vm7, %v1018_v18, 0.0 }
 0x1ac   : > { %v1019_v20 = vmul.f32 %v1016_v19, %v1016_v19 }
 0x1ae   : > { %1022 = vadd.xlane.f32.xlu1 %v1021_v21  ;;  %v1024_v22 = vsel %vm1001_vm7, %v1019_v20, 0.0 }
 0x1af   : > { %1025 = vadd.xlane.f32.xlu0 %v1024_v22 }
 0x1bf   : > { %1070 = vperm.xlu1 %1419, %v1061_v23  }
 0x1c3   : > { %1075 = vperm.xlu1 %1419, %v1062_v24  }
 0x1c5   : > { %1065 = vperm.xlu0 %1418, %v1060_v25  }
 0x237   : > { %v1029_v27 = vpop.xlane.xlu1 %1028 }
 0x238   : > { %v1032_v28 = vmul.f32 0.015625, %v1029_v27 }
 0x23a   : > { %v1035_v29 = vadd.f32 1e-05, %v1032_v28 }
 0x23b   : > { %v1023_v30 = vpop.xlane.xlu1 %1022 }
 0x23c   : > { %1444 = vrsqrt.f32 %v1035_v29  ;;  %v1030_v31 = vmul.f32 0.015625, %v1023_v30  ;;  %v1026_v32 = vpop.xlane.xlu0 %1025 }
 0x23d   : > { %v1031_v33 = vmul.f32 0.015625, %v1026_v32 }
 0x23e   : > { %v1033_v34 = vadd.f32 1e-05, %v1030_v31 }
 0x23f   : > { %v1034_v35 = vadd.f32 1e-05, %v1031_v33  ;;  %v1071_v36 = vpop.permute.xlu1 %1070 }
 0x240   : > { %1446 = vrsqrt.f32 %v1033_v34 }
 0x241   : > { %1448 = vrsqrt.f32 %v1034_v35 }
 0x243   : > { %v1076_v43 = vpop.permute.xlu1 %1075 }
 0x244   : > { %v1066_v51 = vpop.permute.xlu0 %1065 }
 0x246   : > { %v1445_v37 = vpop.eup %1444 }
 0x247   : > { %v1041_v39 = vmul.f32 %v1445_v37, %v1017_v12 }
 0x249   : > { %v1050_v41 = vmul.f32 %v1288_v38, %v1041_v39 }
 0x24a   : > { %v1447_v42 = vpop.eup %1446 }
 0x24b   : > { %v1449_v44 = vpop.eup %1448  ;;  %v1059_v45 = vadd.f32 %v1289_v40, %v1050_v41  ;;  %v1039_v46 = vmul.f32 %v1447_v42, %v1015_v13 }
 0x24c   : > { %v1040_v47 = vmul.f32 %v1449_v44, %v1016_v19 }
 0x24d   : > { %v1080_v48 = vadd.f32 %v1076_v43, %v1059_v45  ;;  %v1048_v49 = vmul.f32 %v1288_v38, %v1039_v46 }
 0x24e   : > { %v1049_v50 = vmul.f32 %v1288_v38, %v1040_v47 }
 0x24f   : > { %1086 = vst.msk [vmem:[#allocation2 + $0x17] sm:$0xff] %vm1001_vm7, %v1080_v48  ;;  %v1057_v52 = vadd.f32 %v1289_v40, %v1048_v49 }
 0x250   : > { %v1058_v53 = vadd.f32 %v1289_v40, %v1049_v50 }
 0x251   : > { %v1078_v54 = vadd.f32 %v1066_v51, %v1057_v52 }
 0x252   : > { %v1079_v55 = vadd.f32 %v1071_v36, %v1058_v53 }
 0x253   : > { %1084 = vst.msk [vmem:[#allocation2 + $0x7] sm:$0xff] %vm1001_vm7, %v1078_v54 }
 0x254   : > { %1085 = vst.msk [vmem:[#allocation2 + $0xf] sm:$0xff] %vm1001_vm7, %v1079_v55 }
 0x256   : > { %v1110_v12 = vld [vmem:[#allocation2 + $0x17] sm:$0xff] }
 0x257   : > { %v1114_v18 = vld [vmem:[#allocation2 + $0x18] sm:$0xff] }
 0x258   : > { %v1120_v23 = vld [vmem:[#allocation2 + $0x1c] sm:$0xff] }
 0x259   : > { %v1126_v29 = vld [vmem:[#allocation2 + $0x1d] sm:$0xff] }
 0x25a   : > { %v1087_v56 = vld [vmem:[#allocation2] sm:$0xff] }
 0x25b   : > { %v1090_v57 = vld [vmem:[#allocation2 + $0x1] sm:$0xff]  ;;  %v1089_v58 = vld [vmem:[#allocation2 + $0x10] sm:$0xff] }
 0x25c   : > { %v1092_v59 = vld [vmem:[#allocation2 + $0x11] sm:$0xff]  ;;  %v1093_v60 = vmax.f32 %v1087_v56, %v1090_v57  ;;  %v1096_v62 = vld [vmem:[#allocation2 + $0x2] sm:$0xff] }
 0x25d   : > { %v1095_v61 = vmax.f32 %v1089_v58, %v1092_v59  ;;  %v1098_v63 = vld [vmem:[#allocation2 + $0x12] sm:$0xff]  ;;  %v1088_v0 = vld [vmem:[#allocation2 + $0x8] sm:$0xff]  ;;  %v1130_v34 = vld [vmem:[#allocation2 + $0x1e] sm:$0xff] }
 0x25e   : > { %v1091_v1 = vld [vmem:[#allocation2 + $0x9] sm:$0xff]  ;;  %v1099_v2 = vmax.f32 %v1093_v60, %v1096_v62  ;;  %v1104_v6 = vld [vmem:[#allocation2 + $0x16] sm:$0xff] }
 0x25f   : > { %v1101_v3 = vmax.f32 %v1095_v61, %v1098_v63  ;;  %v1094_v4 = vmax.f32 %v1088_v0, %v1091_v1  ;;  %v1102_v5 = vld [vmem:[#allocation2 + $0x6] sm:$0xff]  ;;  %v1103_v13 = vld [vmem:[#allocation2 + $0xe] sm:$0xff] }
 0x260   : > { %v1097_v7 = vld [vmem:[#allocation2 + $0xa] sm:$0xff]  ;;  %v1105_v8 = vmax.f32 %v1099_v2, %v1102_v5  ;;  %v1119_v28 = vld [vmem:[#allocation2 + $0x14] sm:$0xff] }
 0x261   : > { %v1107_v9 = vmax.f32 %v1101_v3, %v1104_v6  ;;  %v1100_v10 = vmax.f32 %v1094_v4, %v1097_v7  ;;  %v1108_v11 = vld [vmem:[#allocation2 + $0x7] sm:$0xff]  ;;  %v1109_v17 = vld [vmem:[#allocation2 + $0xf] sm:$0xff] }
 0x262   : > { %v1111_v14 = vmax.f32 %v1105_v8, %v1108_v11  ;;  %v1118_v22 = vld [vmem:[#allocation2 + $0xc] sm:$0xff]  ;;  %v1125_v33 = vld [vmem:[#allocation2 + $0x15] sm:$0xff] }
 0x263   : > { %v1113_v15 = vmax.f32 %v1107_v9, %v1110_v12  ;;  %v1106_v16 = vmax.f32 %v1100_v10, %v1103_v13  ;;  %v1124_v27 = vld [vmem:[#allocation2 + $0xd] sm:$0xff] }
 0x264   : > { %v1115_v19 = vmax.f32 %v1111_v14, %v1088_v0 }
 0x265   : > { %v1117_v20 = vmax.f32 %v1113_v15, %v1114_v18  ;;  %v1112_v21 = vmax.f32 %v1106_v16, %v1109_v17 }
 0x266   : > { %v1121_v24 = vmax.f32 %v1115_v19, %v1118_v22 }
 0x267   : > { %v1123_v25 = vmax.f32 %v1117_v20, %v1120_v23  ;;  %v1116_v26 = vmax.f32 %v1112_v21, %v1089_v58 }
 0x268   : > { %v1127_v30 = vmax.f32 %v1121_v24, %v1124_v27 }
 0x269   : > { %v1129_v31 = vmax.f32 %v1123_v25, %v1126_v29  ;;  %v1122_v32 = vmax.f32 %v1116_v26, %v1119_v28 }
 0x26a   : > { %v1131_v35 = vmax.f32 %v1127_v30, %v1103_v13 }
 0x26b   : > { %v1133_v36 = vmax.f32 %v1129_v31, %v1130_v34  ;;  %v1128_v37 = vmax.f32 %v1122_v32, %v1125_v33 }
 0x26c   : > { %v1295_v38 = vpack.c.bf16 %v1131_v35, %v1131_v35 }
 0x26d   : > { %v1297_v39 = vpack.c.bf16 %v1133_v36, %v1133_v36  ;;  %v1132_v40 = vmax.f32 %v1128_v37, %v1104_v6 }
 0x26e   : > { %1148 = vst.msk [vmem:[%s251_s10] sm:$0xf] %vm1147_vm9, %v1295_v38 }
 0x26f   : > { %1150 = vst.msk [vmem:[%s251_s10 + $0x8] sm:$0xf] %vm1147_vm9, %v1297_v39  ;;  %v1296_v41 = vpack.c.bf16 %v1132_v40, %v1132_v40 }
 0x271   : > { %1149 = vst.msk [vmem:[%s251_s10 + $0x4] sm:$0xf] %vm1147_vm9, %v1296_v41 }
 0x272 PF: > { %s16_s21 = sadd.s32 1, %s1456_s21  }
 0x273   : > { %p13_p4 = scmp.ge.s32.totalorder %s16_s21, 4  }
 0x275   :  { %15 = sbr.rel (!%p13_p4) target bundleno = 1 (0x1), region = 82 }

// kernel: htnet_forward.6
= control target key start
LH: loop header
LB: loop body
LE: loop exit
PB: predicated region body
PF: predicated region fallthrough
CT: control target
= control target key end

     0   :  { %s2390_s29 = smov 0   ;;  %s2724_s0 = inlined_call_operand.vmem [shape: bf16[32,32], index: 0, kind: input, shape index: {}]   ;;  %s2725_s1 = inlined_call_operand.vmem [shape: f32[16,1], index: 1, kind: input, shape index: {}]   ;;  %s2726_s2 = inlined_call_operand.vmem [shape: f32[16,16], index: 2, kind: input, shape index: {}]   ;;  %s2727_s3 = inlined_call_operand.vmem [shape: f32[2,1,32], index: 3, kind: input, shape index: {}]   ;;  %s2728_s4 = inlined_call_operand.vmem [shape: f32[2,1,32], index: 4, kind: input, shape index: {}]   ;;  %s2729_s5 = inlined_call_operand.vmem [shape: bf16[2,32,96], index: 5, kind: input, shape index: {}]   ;;  %s2730_s6 = inlined_call_operand.vmem [shape: bf16[2,32,32], index: 6, kind: input, shape index: {}]   ;;  %s2731_s7 = inlined_call_operand.vmem [shape: f32[2,1,32], index: 7, kind: input, shape index: {}]   ;;  %s2732_s8 = inlined_call_operand.vmem [shape: f32[2,1,32], index: 8, kind: input, shape index: {}]   ;;  %s2733_s9 = inlined_call_operand.vmem [shape: f32[2,1,32], index: 9, kind: input, shape index: {}]   ;;  %s2734_s10 = inlined_call_operand.vmem [shape: bf16[2,32,64], index: 10, kind: input, shape index: {}]   ;;  %s2735_s11 = inlined_call_operand.vmem [shape: f32[2,1,64], index: 11, kind: input, shape index: {}]   ;;  %s2736_s12 = inlined_call_operand.vmem [shape: bf16[2,64,32], index: 12, kind: input, shape index: {}]   ;;  %s2737_s13 = inlined_call_operand.vmem [shape: f32[2,1,32], index: 13, kind: input, shape index: {}]   ;;  %s2738_s14 = inlined_call_operand.vmem [shape: bf16[32,32], index: 14, kind: output, shape index: {}]  }
   0x1 LB: > { %s1934_s30 = sadd.s32 4294967295, %s2305_s29   ;;  %p1938_p0 = scmp.ge.s32.totalorder %s2305_s29, 1  ;;  %s2305_s29 = sphi %s2390_s29, %s24_s29  }
   0x2   : > { %p413_p1 = scmp.lt.s32.totalorder %s2305_s29, 3 }
   0x4   : > { %p414_p2 = pnand %p1938_p0, %p413_p1 }
   0x5   : > { %v476_v0 = vld [vmem:[%s2725_s1] sm:$0xff] (!%p414_p2)  ;;  %v2307_v1 = vmov (!%p414_p2), 0   ;;  %v477_v2 = vld [vmem:[%s2725_s1 + $0x8] sm:$0xff] (!%p414_p2)  ;;  %s1939_s19 = sshll.u32 (!%p414_p2), %s1934_s30, 1  ;;  %vm494_vm0 = vcmask (!%p414_p2), 261120   ;;  %v2308_v23 = vmov (!%p414_p2), 0.0  }
   0x6   : > { %417 = sbr.rel (%p414_p2) target bundleno = 4960 (0x1360), region = 76  ;;  %2222 = vset.pattern.permute.xlu0 (!%p414_p2), %v2307_v1  ;;  %p460_p3 = scmp.lt.s32.totalorder (!%p414_p2), %s1939_s19, 3  ;;  %v2223_v22 = vld [vmem:[%s2729_s5] sm:$0xff] (!%p414_p2)   ;;  %2078 = vmatprep.subr.bf16.mxu1 (!%p414_p2), %v2308_v23  ;;  %v2224_v24 = vld [vmem:[%s2729_s5 + $0x8] sm:$0xff] (!%p414_p2)   ;;  %vm2309_vm1 = vmmov (!%p414_p2), 0   ;;  %vm607_vm2 = vcmask (!%p414_p2), 130048  }
   0x7   : > { %480 = vperm.xlu0 (!%p414_p2), %2222, %v476_v0   ;;  %2092 = vmatprep.subr.bf16.mxu0 (!%p414_p2), %v2308_v23  ;;  %v1943_v33 = vld [vmem:[%s2727_s3] ss:$0 sm:$0xff] (!%p414_p2)  ;;  %s2310_s17 = smov (!%p414_p2), 96   ;;  %s2311_s18 = smov (!%p414_p2), 80   ;;  %v2474_v54 = vld [vmem:[%s2726_s2 + $0x8] sm:$0xff] (!%p414_p2)  ;;  %vm1129_vm3 = vcmask (!%p414_p2), 523264  }
   0x8   : > { %2079 = vmatpush3.bf16.msra.mxu1 (!%p414_p2), %v2223_v22  ;;  %2082 = vmatprep.mubr.msk.bf16.mxu1 (!%p414_p2), %vm2309_vm1, %v2308_v23  ;;  %v1944_v37 = vld [vmem:[%s2728_s4] ss:$0 sm:$0xff] (!%p414_p2)  ;;  %s2312_s21 = smov (!%p414_p2), 112   ;;  %s2313_s26 = smov (!%p414_p2), 48   ;;  %vm1875_vm4 = vcmask (!%p414_p2), 257024  }
   0x9   : > { %2080 = vmatprep.subr.bf16.mxu1 (!%p414_p2), %v2308_v23  ;;  %2094 = vmatprep.mubr.msk.bf16.mxu0 (!%p414_p2), %vm2309_vm1, %v2308_v23  ;;  %v2469_v52 = vld [vmem:[%s2726_s2] sm:$0xff] (!%p414_p2)  ;;  %s2314_s27 = smov (!%p414_p2), 64  }
   0xb   : > { %485 = vperm.xlu0 (!%p414_p2), %2222, %v477_v2  }
   0xc   : > { %2081 = vmatpush3.bf16.msra.mxu1 (!%p414_p2), %v2224_v24 }
   0xd   : > { %s2740_s19 = smov (!%p460_p3, %s1939_s19), 3  ;;  %2086 = vmatprep.subr.bf16.mxu1 %v2308_v23 }
   0xe   : > { %s1940_s20 = sshll.u32 %s2740_s19, 2 }
   0xf   : > { %s463_s23 = scalar_lea.vmem %s2724_s0, %s1940_s20 }
  0x10   : > { %v2029_v3 = vld [vmem:[%s463_s23] sm:$0xff]  }
  0x11   : > { %v2030_v4 = vunpack.c.l.bf16 %v2029_v3  ;;  %v2031_v7 = vunpack.c.h.bf16 %v2029_v3 }
  0x86   : > { %v481_v5 = vpop.permute.xlu0 %480 }
  0x87   : > { %v2412_v6 = vadd.f32 %v2030_v4, %v481_v5 }
  0x89   : > { %v495_v8 = vsel %vm494_vm0, %v2412_v6, 0.0 }
  0x8a   : > { %v486_v9 = vpop.permute.xlu0 %485  ;;  %496 = vadd.xlane.f32.xlu1 %v495_v8 }
  0x8b   : > { %v2416_v10 = vadd.f32 %v2031_v7, %v486_v9 }
  0x8d   : > { %v498_v11 = vsel %vm494_vm0, %v2416_v10, 0.0 }
  0x8e   : > { %499 = vadd.xlane.f32.xlu1 %v498_v11 }
 0x117   : > { %v497_v12 = vpop.xlane.xlu1 %496 }
 0x118   : > { %v502_v13 = vmul.f32 0.03125, %v497_v12 }
 0x11a   : > { %v504_v14 = vsub.f32 %v2412_v6, %v502_v13 }
 0x11b   : > { %v500_v15 = vpop.xlane.xlu1 %499 }
 0x11c   : > { %v503_v16 = vmul.f32 0.03125, %v500_v15  ;;  %v506_v17 = vmul.f32 %v504_v14, %v504_v14 }
 0x11e   : > { %v505_v18 = vsub.f32 %v2416_v10, %v503_v16  ;;  %v508_v19 = vsel %vm494_vm0, %v506_v17, 0.0 }
 0x11f   : > { %509 = vadd.xlane.f32.xlu0 %v508_v19 }
 0x120   : > { %v507_v20 = vmul.f32 %v505_v18, %v505_v18 }
 0x122   : > { %v511_v21 = vsel %vm494_vm0, %v507_v20, 0.0 }
 0x123   : > { %512 = vadd.xlane.f32.xlu1 %v511_v21 }
 0x1ac   : > { %v510_v25 = vpop.xlane.xlu0 %509 }
 0x1ad   : > { %v514_v26 = vmul.f32 0.03125, %v510_v25 }
 0x1af   : > { %v516_v27 = vadd.f32 1e-05, %v514_v26 }
 0x1b0   : > { %v513_v28 = vpop.xlane.xlu1 %512 }
 0x1b1   : > { %2243 = vrsqrt.f32 %v516_v27  ;;  %v515_v29 = vmul.f32 0.03125, %v513_v28 }
 0x1b3   : > { %v517_v30 = vadd.f32 1e-05, %v515_v29 }
 0x1b5   : > { %2245 = vrsqrt.f32 %v517_v30 }
 0x1bb   : > { %v2244_v31 = vpop.eup %2243 }
 0x1bc   : > { %v520_v32 = vmul.f32 %v2244_v31, %v504_v14 }
 0x1be   : > { %v528_v36 = vmul.f32 %v1943_v33, %v520_v32 }
 0x1bf   : > { %v2246_v34 = vpop.eup %2245 }
 0x1c0   : > { %v521_v35 = vmul.f32 %v2246_v34, %v505_v18  ;;  %v536_v39 = vadd.f32 %v1944_v37, %v528_v36 }
 0x1c2   : > { %v529_v38 = vmul.f32 %v1943_v33, %v521_v35 }
 0x1c4   : > { %v537_v40 = vadd.f32 %v1944_v37, %v529_v38 }
 0x1c6   : > { %v538_v41 = vpack.c.bf16 %v537_v40, %v536_v39 }
 0x1c8   : > { %2083 = vmatmul.mubr.msk.bf16.vlgmr.msra.gmra.mrb[0].mxu1 %vm494_vm0, %v538_v41 }
 0x1c9   : > { %2088 = vmatprep.mubr.msk.bf16.mxu1 %vm2309_vm1, %v2308_v23 }
 0x29b   : > { %v592_v42 = vpop.f32.mrb[0].mxu1 }
 0x29c   : > { %v2084_v43 = vpop.f32.mrb[1].mxu1 }
 0x29d   : > { %v595_v44 = vpop.f32.mrb[2].mxu1 }
 0x29e   : > { %v2447_v45 = vpack.c.bf16 %v595_v44, %v592_v42  ;;  %v2085_v46 = vpop.f32.mrb[3].mxu1 }
 0x29f   : > { %v2226_v46 = vld [vmem:[%s2730_s6 + $0x8] sm:$0xff]  }
 0x2a0   : > { %605 = vrot.lane.b32.xlu1 %v2447_v45, %s2310_s17 }
 0x2a4   : > { %728 = vrot.lane.b32.xlu1 %v2447_v45, %s2311_s18 }
 0x2a8   : > { %726 = vrot.lane.b32.xlu1 %v2447_v45, %s2312_s21 }
 0x312   : > { %v606_v47 = vpop.permute.xlu1 %605 }
 0x313   : > { %v612_v48 = vsel %vm607_vm2, %v606_v47, 0 }
 0x314   : > { %2087 = vmatpush3.bf16.xpose.msra.mxu1 %v612_v48 }
 0x315   : > { %2098 = vmatprep.subr.bf16.mxu1 %v2308_v23 }
 0x316   : > { %v729_v49 = vpop.permute.xlu1 %728 }
 0x317   : > { %v734_v50 = vsel %vm607_vm2, %v729_v49, 0 }
 0x31a   : > { %v727_v51 = vpop.permute.xlu1 %726 }
 0x31b   : > { %2089 = vmatmul.mubr.msk.bf16.vlgmr.msra.gmra.mrb[4].mxu1 %vm607_vm2, %v2447_v45 }
 0x31c   : > { %2099 = vmatpush3.bf16.xpose.msra.mxu1 %v734_v50  ;;  %2100 = vmatprep.mubr.msk.bf16.mxu1 %vm2309_vm1, %v2308_v23 }
 0x31d   : > { %2110 = vmatprep.subr.bf16.mxu1 %v2308_v23 }
 0x323   : > { %2101 = vmatmul.mubr.msk.bf16.vlgmr.msra.gmra.mrb[8].mxu1 %vm607_vm2, %v727_v51 }
 0x324   : > { %2112 = vmatprep.mubr.msk.bf16.mxu1 %vm2309_vm1, %v2308_v23  ;;  %2111 = vmatpush3.bf16.msra.mxu1 %v2226_v46  ;;  %v1959_v46 = vld [vmem:[%s2735_s11] ss:$0 sm:$0xff] }
 0x325   : > { %2122 = vmatprep.subr.bf16.mxu1 %v2308_v23 }
 0x3ee   : > { %v648_v53 = vpop.f32.mrb[4].mxu1 }
 0x3ef   : > { %v649_v55 = vadd.f32 %v648_v53, %v2469_v52  ;;  %v2090_v56 = vpop.f32.mrb[5].mxu1 }
 0x3f0   : > { %v651_v57 = vpop.f32.mrb[6].mxu1 }
 0x3f1   : > { %v652_v58 = vadd.f32 %v651_v57, %v2474_v54  ;;  %v2091_v59 = vpop.f32.mrb[7].mxu1  ;;  %v655_v60 = vsel %vm607_vm2, %v649_v55, -inf }
 0x3f2   : > { %656 = vmax.xlane.f32.xlu1 %v655_v60 }
 0x3f3   : > { %v658_v61 = vsel %vm607_vm2, %v652_v58, -inf }
 0x3f4   : > { %659 = vmax.xlane.f32.xlu0 %v658_v61 }
 0x3f6   : > { %v770_v62 = vpop.f32.mrb[8].mxu1 }
 0x3f7   : > { %v771_v63 = vadd.f32 %v770_v62, %v2469_v52  ;;  %v2102_v0 = vpop.f32.mrb[9].mxu1 }
 0x3f8   : > { %v773_v1 = vpop.f32.mrb[10].mxu1 }
 0x3f9   : > { %v774_v2 = vadd.f32 %v773_v1, %v2474_v54  ;;  %v2103_v3 = vpop.f32.mrb[11].mxu1  ;;  %v777_v4 = vsel %vm607_vm2, %v771_v63, -inf }
 0x3fa   : > { %778 = vmax.xlane.f32.xlu0 %v777_v4 }
 0x3fb   : > { %v780_v5 = vsel %vm607_vm2, %v774_v2, -inf }
 0x3fe   : > { %781 = vmax.xlane.f32.xlu0 %v780_v5 }
 0x403   : > { %800 = vrot.lane.b32.xlu1 %v2447_v45, %s2313_s26 }
 0x47f   : > { %v657_v7 = vpop.xlane.xlu1 %656 }
 0x480   : > { %v661_v8 = vsub.f32 %v649_v55, %v657_v7 }
 0x481   : > { %v660_v9 = vpop.xlane.xlu0 %659 }
 0x482   : > { %v663_v11 = vmul.f32 1.442695, %v661_v8  ;;  %v662_v12 = vsub.f32 %v652_v58, %v660_v9 }
 0x483   : > { %v801_v39 = vpop.permute.xlu1 %800 }
 0x484   : > { %2247 = vpow2.f32 %v663_v11  ;;  %v665_v13 = vmul.f32 1.442695, %v662_v12 }
 0x486   : > { %2249 = vpow2.f32 %v665_v13 }
 0x487   : > { %v779_v14 = vpop.xlane.xlu0 %778 }
 0x488   : > { %v783_v15 = vsub.f32 %v771_v63, %v779_v14 }
 0x48a   : > { %v785_v16 = vmul.f32 1.442695, %v783_v15 }
 0x48b   : > { %v782_v17 = vpop.xlane.xlu0 %781 }
 0x48c   : > { %2251 = vpow2.f32 %v785_v16  ;;  %v784_v18 = vsub.f32 %v774_v2, %v782_v17  ;;  %v1956_v2 = vld [vmem:[%s2731_s7] ss:$0 sm:$0xff] }
 0x48e   : > { %v2248_v19 = vpop.eup %2247  ;;  %v787_v20 = vmul.f32 1.442695, %v784_v18 }
 0x48f   : > { %v667_v21 = vsel %vm607_vm2, %v2248_v19, 0.0 }
 0x490   : > { %v2250_v22 = vpop.eup %2249  ;;  %2253 = vpow2.f32 %v787_v20  ;;  %668 = vadd.xlane.f32.xlu0 %v667_v21 }
 0x491   : > { %v670_v24 = vsel %vm607_vm2, %v2250_v22, 0.0 }
 0x494   : > { %671 = vadd.xlane.f32.xlu0 %v670_v24  ;;  %v2228_v24 = vld [vmem:[%s2734_s10 + $0x8] sm:$0xff]  }
 0x496   : > { %v2252_v25 = vpop.eup %2251 }
 0x497   : > { %v789_v26 = vsel %vm607_vm2, %v2252_v25, 0.0 }
 0x498   : > { %790 = vadd.xlane.f32.xlu0 %v789_v26 }
 0x49a   : > { %v2254_v27 = vpop.eup %2253 }
 0x49b   : > { %v792_v28 = vsel %vm607_vm2, %v2254_v27, 0.0 }
 0x49c   : > { %793 = vadd.xlane.f32.xlu0 %v792_v28 }
 0x4b2   : > { %678 = vrot.lane.b32.xlu0 %v2447_v45, %s2314_s27  ;;  %v2225_v45 = vld [vmem:[%s2730_s6] sm:$0xff]  }
 0x51d   : > { %v669_v29 = vpop.xlane.xlu0 %668 }
 0x51e   : > { %2255 = vrcp.f32 %v669_v29 }
 0x521   : > { %v672_v30 = vpop.xlane.xlu0 %671 }
 0x522   : > { %2257 = vrcp.f32 %v672_v30 }
 0x525   : > { %v791_v31 = vpop.xlane.xlu0 %790 }
 0x526   : > { %2259 = vrcp.f32 %v791_v31 }
 0x528   : > { %v2256_v33 = vpop.eup %2255 }
 0x529   : > { %v794_v32 = vpop.xlane.xlu0 %793  ;;  %v675_v36 = vmul.f32 %v2256_v33, %v2248_v19  ;;  %v1957_v33 = vld [vmem:[%s2732_s8] ss:$0 sm:$0xff] }
 0x52a   : > { %2261 = vrcp.f32 %v794_v32 }
 0x52c   : > { %v2258_v34 = vpop.eup %2257 }
 0x52d   : > { %v679_v35 = vpop.permute.xlu0 %678  ;;  %v676_v37 = vmul.f32 %v2258_v34, %v2250_v22  ;;  %v2227_v22 = vld [vmem:[%s2734_s10] sm:$0xff]  }
 0x52e   : > { %2093 = vmatpush3.bf16.msra.mxu0 %v679_v35 }
 0x52f   : > { %v677_v38 = vpack.c.bf16 %v676_v37, %v675_v36  ;;  %2104 = vmatprep.subr.bf16.mxu0 %v2308_v23  ;;  %v1958_v37 = vld [vmem:[%s2733_s9] ss:$0 sm:$0xff] }
 0x530   : > { %v2260_v40 = vpop.eup %2259 }
 0x531   : > { %2095 = vmatmul.mubr.msk.bf16.vlgmr.msra.gmra.mrb[0].mxu0 %vm607_vm2, %v677_v38  ;;  %v797_v42 = vmul.f32 %v2260_v40, %v2252_v25 }
 0x532   : > { %2105 = vmatpush3.bf16.msra.mxu0 %v801_v39  ;;  %2106 = vmatprep.mubr.msk.bf16.mxu0 %vm2309_vm1, %v2308_v23 }
 0x533   : > { %2116 = vmatprep.subr.bf16.mxu0 %v2308_v23 }
 0x534   : > { %v2262_v41 = vpop.eup %2261 }
 0x535   : > { %v798_v43 = vmul.f32 %v2262_v41, %v2254_v27 }
 0x537   : > { %v799_v44 = vpack.c.bf16 %v798_v43, %v797_v42  ;;  %v2229_v42 = vld [vmem:[%s2736_s12] sm:$0xff]   ;;  %v2230_v43 = vld [vmem:[%s2736_s12 + $0x8] sm:$0xff]  }
 0x539   : > { %2107 = vmatmul.mubr.msk.bf16.vlgmr.msra.gmra.mrb[4].mxu0 %vm607_vm2, %v799_v44  ;;  %v2231_v44 = vld [vmem:[%s2736_s12 + $0x10] sm:$0xff]  }
 0x53a   : > { %2118 = vmatprep.mubr.msk.bf16.mxu0 %vm2309_vm1, %v2308_v23  ;;  %2117 = vmatpush3.bf16.msra.mxu0 %v2225_v45  ;;  %v2232_v45 = vld [vmem:[%s2736_s12 + $0x18] sm:$0xff]  }
 0x53b   : > { %2130 = vmatprep.subr.bf16.mxu0 %v2308_v23 }
 0x604   : > { %v718_v47 = vpop.f32.mrb[0].mxu0 }
 0x605   : > { %v2096_v48 = vpop.f32.mrb[1].mxu0 }
 0x606   : > { %v721_v49 = vpop.f32.mrb[2].mxu0 }
 0x607   : > { %v725_v50 = vpack.c.bf16 %v721_v49, %v718_v47  ;;  %v2097_v51 = vpop.f32.mrb[3].mxu0 }
 0x609   : > { %2119 = vmatmul.mubr.msk.bf16.vlgmr.msra.gmra.mrb[8].mxu0 %vm607_vm2, %v725_v50 }
 0x60a   : > { %2138 = vmatprep.mubr.msk.bf16.mxu0 %vm2309_vm1, %v2308_v23  ;;  %2131 = vmatpush3.bf16.msra.mxu0 %v2229_v42 }
 0x60b   : > { %2132 = vmatprep.subr.bf16.mxu0 %v2308_v23 }
 0x60c   : > { %v840_v53 = vpop.f32.mrb[4].mxu0 }
 0x60d   : > { %v2108_v55 = vpop.f32.mrb[5].mxu0 }
 0x60e   : > { %v843_v56 = vpop.f32.mrb[6].mxu0  ;;  %2133 = vmatpush3.bf16.msra.mxu0 %v2230_v43 }
 0x60f   : > { %v847_v57 = vpack.c.bf16 %v843_v56, %v840_v53  ;;  %v2109_v58 = vpop.f32.mrb[7].mxu0  ;;  %2134 = vmatprep.subr.bf16.mxu0 %v2308_v23 }
 0x611   : > { %2113 = vmatmul.mubr.msk.bf16.vlgmr.msra.gmra.mrb[12].mxu1 %vm607_vm2, %v847_v57 }
 0x612   : > { %2126 = vmatprep.mubr.msk.bf16.mxu1 %vm2309_vm1, %v2308_v23  ;;  %2123 = vmatpush3.bf16.msra.mxu1 %v2227_v22 }
 0x613   : > { %2124 = vmatprep.subr.bf16.mxu1 %v2308_v23  ;;  %2135 = vmatpush3.bf16.msra.mxu0 %v2231_v44 }
 0x614   : > { %2136 = vmatprep.subr.bf16.mxu0 %v2308_v23 }
 0x616   : > { %2125 = vmatpush3.bf16.msra.mxu1 %v2228_v24 }
 0x617   : > { %2142 = vmatprep.subr.bf16.mxu1 %v2308_v23  ;;  %2137 = vmatpush3.bf16.msra.mxu0 %v2232_v45 }
 0x618   : > { %2156 = vmatprep.subr.bf16.mxu0 %v2308_v23 }
 0x6dc   : > { %v941_v59 = vpop.f32.mrb[8].mxu0 }
 0x6dd   : > { %v2120_v60 = vpop.f32.mrb[9].mxu0 }
 0x6de   : > { %v944_v61 = vpop.f32.mrb[10].mxu0 }
 0x6df   : > { %v2121_v62 = vpop.f32.mrb[11].mxu0 }
 0x6e4   : > { %v891_v63 = vpop.f32.mrb[12].mxu1 }
 0x6e5   : > { %v942_v0 = vadd.f32 %v941_v59, %v891_v63  ;;  %v2114_v1 = vpop.f32.mrb[13].mxu1 }
 0x6e6   : > { %v894_v3 = vpop.f32.mrb[14].mxu1 }
 0x6e7   : > { %v948_v4 = vadd.f32 %v942_v0, %v2412_v6  ;;  %v945_v5 = vadd.f32 %v944_v61, %v894_v3  ;;  %v2115_v7 = vpop.f32.mrb[15].mxu1 }
 0x6e9   : > { %v2518_v8 = vadd.f32 %v1956_v2, %v948_v4  ;;  %v949_v9 = vadd.f32 %v945_v5, %v2416_v10 }
 0x6eb   : > { %v2521_v11 = vadd.f32 %v1956_v2, %v949_v9  ;;  %v961_v12 = vsel %vm494_vm0, %v2518_v8, 0.0 }
 0x6ec   : > { %962 = vadd.xlane.f32.xlu0 %v961_v12 }
 0x6ed   : > { %v964_v13 = vsel %vm494_vm0, %v2521_v11, 0.0 }
 0x6ee   : > { %965 = vadd.xlane.f32.xlu1 %v964_v13 }
 0x779   : > { %v963_v14 = vpop.xlane.xlu0 %962 }
 0x77a   : > { %v967_v15 = vmul.f32 0.03125, %v963_v14  ;;  %v1963_v14 = vld [vmem:[%s2737_s13] ss:$0 sm:$0xff] }
 0x77b   : > { %v966_v16 = vpop.xlane.xlu1 %965 }
 0x77c   : > { %v969_v6 = vsub.f32 %v2518_v8, %v967_v15  ;;  %v968_v17 = vmul.f32 0.03125, %v966_v16 }
 0x77e   : > { %v970_v18 = vsub.f32 %v2521_v11, %v968_v17  ;;  %v971_v19 = vmul.f32 %v969_v6, %v969_v6 }
 0x780   : > { %v973_v10 = vsel %vm494_vm0, %v971_v19, 0.0  ;;  %v972_v20 = vmul.f32 %v970_v18, %v970_v18 }
 0x781   : > { %974 = vadd.xlane.f32.xlu0 %v973_v10 }
 0x782   : > { %v976_v21 = vsel %vm494_vm0, %v972_v20, 0.0 }
 0x785   : > { %977 = vadd.xlane.f32.xlu0 %v976_v21 }
 0x80e   : > { %v975_v25 = vpop.xlane.xlu0 %974 }
 0x80f   : > { %v979_v26 = vmul.f32 0.03125, %v975_v25 }
 0x811   : > { %v981_v27 = vadd.f32 1e-05, %v979_v26 }
 0x812   : > { %v978_v28 = vpop.xlane.xlu0 %977 }
 0x813   : > { %2263 = vrsqrt.f32 %v981_v27  ;;  %v980_v29 = vmul.f32 0.03125, %v978_v28 }
 0x815   : > { %v982_v30 = vadd.f32 1e-05, %v980_v29 }
 0x817   : > { %2265 = vrsqrt.f32 %v982_v30 }
 0x81d   : > { %v2264_v31 = vpop.eup %2263 }
 0x81e   : > { %v985_v32 = vmul.f32 %v2264_v31, %v969_v6 }
 0x820   : > { %v993_v35 = vmul.f32 %v1957_v33, %v985_v32  ;;  %v2233_v32 = vld [vmem:[%s2729_s5 + $0x10] sm:$0xff]  }
 0x821   : > { %v2266_v34 = vpop.eup %2265 }
 0x822   : > { %v986_v36 = vmul.f32 %v2266_v34, %v970_v18  ;;  %v1001_v39 = vadd.f32 %v1958_v37, %v993_v35 }
 0x824   : > { %v994_v38 = vmul.f32 %v1957_v33, %v986_v36  ;;  %v2234_v33 = vld [vmem:[%s2729_s5 + $0x18] sm:$0xff]  }
 0x826   : > { %v1002_v40 = vadd.f32 %v1958_v37, %v994_v38 }
 0x828   : > { %v1003_v41 = vpack.c.bf16 %v1002_v40, %v1001_v39 }
 0x82a   : > { %2127 = vmatmul.mubr.msk.bf16.vlgmr.msra.gmra.mrb[16].mxu1 %vm494_vm0, %v1003_v41  ;;  %v1971_v41 = vld [vmem:[%s2727_s3 + $0x1] ss:$0 sm:$0xff] }
 0x82b   : > { %2146 = vmatprep.mubr.msk.bf16.mxu1 %vm2309_vm1, %v2308_v23  ;;  %2143 = vmatpush3.bf16.msra.mxu1 %v2233_v32 }
 0x82c   : > { %2144 = vmatprep.subr.bf16.mxu1 %v2308_v23 }
 0x82f   : > { %2145 = vmatpush3.bf16.msra.mxu1 %v2234_v33 }
 0x830   : > { %2150 = vmatprep.subr.bf16.mxu1 %v2308_v23 }
 0x8fd   : > { %v1064_v47 = vpop.f32.mrb[16].mxu1 }
 0x8fe   : > { %v1065_v48 = vadd.f32 %v1959_v46, %v1064_v47  ;;  %v2128_v49 = vpop.f32.mrb[17].mxu1 }
 0x8ff   : > { %v1067_v50 = vpop.f32.mrb[18].mxu1 }
 0x900   : > { %v1073_v51 = vmul.f32 0.044715, %v1065_v48  ;;  %v1068_v53 = vadd.f32 %v1959_v46, %v1067_v50  ;;  %v2129_v55 = vpop.f32.mrb[19].mxu1  ;;  %v1071_v4 = vmul.f32 0.5, %v1065_v48  ;;  %v1972_v46 = vld [vmem:[%s2728_s4 + $0x1] ss:$0 sm:$0xff] }
 0x902   : > { %v1075_v56 = vmul.f32 %v1073_v51, %v1065_v48  ;;  %v1074_v57 = vmul.f32 0.044715, %v1068_v53  ;;  %v1072_v5 = vmul.f32 0.5, %v1068_v53 }
 0x904   : > { %v1077_v58 = vmul.f32 %v1075_v56, %v1065_v48  ;;  %v1076_v59 = vmul.f32 %v1074_v57, %v1068_v53 }
 0x906   : > { %v1079_v60 = vadd.f32 %v1077_v58, %v1065_v48  ;;  %v1078_v61 = vmul.f32 %v1076_v59, %v1068_v53 }
 0x908   : > { %v1081_v62 = vmul.f32 0.7978846, %v1079_v60  ;;  %v1080_v63 = vadd.f32 %v1078_v61, %v1068_v53 }
 0x90a   : > { %2267 = vtanh.f32 %v1081_v62  ;;  %v1082_v0 = vmul.f32 0.7978846, %v1080_v63 }
 0x90c   : > { %2269 = vtanh.f32 %v1082_v0 }
 0x914   : > { %v2268_v1 = vpop.eup %2267 }
 0x915   : > { %v1085_v2 = vadd.f32 1.0, %v2268_v1 }
 0x916   : > { %v2270_v3 = vpop.eup %2269 }
 0x917   : > { %v1086_v7 = vadd.f32 1.0, %v2270_v3  ;;  %v1087_v9 = vmul.f32 %v1085_v2, %v1071_v4 }
 0x919   : > { %v1088_v12 = vmul.f32 %v1086_v7, %v1072_v5 }
 0x91b   : > { %v1089_v13 = vpack.c.bf16 %v1088_v12, %v1087_v9 }
 0x91d   : > { %2139 = vmatmul.mubr.msk.bf16.vlgmr.msra.gmra.mrb[12].mxu0 %vm1129_vm3, %v1089_v13 }
 0x91e   : > { %2158 = vmatprep.mubr.msk.bf16.mxu0 %vm2309_vm1, %v2308_v23 }
 0x9f0   : > { %v1167_v15 = vpop.f32.mrb[12].mxu0 }
 0x9f1   : > { %v1168_v16 = vadd.f32 %v1963_v14, %v1167_v15  ;;  %v2140_v6 = vpop.f32.mrb[13].mxu0 }
 0x9f2   : > { %v1170_v17 = vpop.f32.mrb[14].mxu0 }
 0x9f3   : > { %v2574_v18 = vadd.f32 %v1168_v16, %v2518_v8  ;;  %v1171_v19 = vadd.f32 %v1963_v14, %v1170_v17  ;;  %v2141_v10 = vpop.f32.mrb[15].mxu0 }
 0x9f5   : > { %v2577_v20 = vadd.f32 %v1171_v19, %v2521_v11  ;;  %v1180_v21 = vsel %vm494_vm0, %v2574_v18, 0.0 }
 0x9f6   : > { %1181 = vadd.xlane.f32.xlu1 %v1180_v21 }
 0x9f7   : > { %v1183_v22 = vsel %vm494_vm0, %v2577_v20, 0.0 }
 0x9f8   : > { %1184 = vadd.xlane.f32.xlu0 %v1183_v22 }
 0xa83   : > { %v1182_v24 = vpop.xlane.xlu1 %1181 }
 0xa84   : > { %v1186_v25 = vmul.f32 0.03125, %v1182_v24 }
 0xa85   : > { %v1185_v26 = vpop.xlane.xlu0 %1184 }
 0xa86   : > { %v1188_v27 = vsub.f32 %v2574_v18, %v1186_v25  ;;  %v1187_v8 = vmul.f32 0.03125, %v1185_v26 }
 0xa88   : > { %v1189_v28 = vsub.f32 %v2577_v20, %v1187_v8  ;;  %v1190_v29 = vmul.f32 %v1188_v27, %v1188_v27 }
 0xa8a   : > { %v1192_v11 = vsel %vm494_vm0, %v1190_v29, 0.0  ;;  %v1191_v30 = vmul.f32 %v1189_v28, %v1189_v28 }
 0xa8b   : > { %1193 = vadd.xlane.f32.xlu1 %v1192_v11 }
 0xa8c   : > { %v1195_v31 = vsel %vm494_vm0, %v1191_v30, 0.0 }
 0xa8d   : > { %1196 = vadd.xlane.f32.xlu0 %v1195_v31 }
 0xb18   : > { %v1194_v34 = vpop.xlane.xlu1 %1193 }
 0xb19   : > { %v1198_v35 = vmul.f32 0.03125, %v1194_v34 }
 0xb1a   : > { %v1197_v36 = vpop.xlane.xlu0 %1196 }
 0xb1b   : > { %v1200_v37 = vadd.f32 1e-05, %v1198_v35  ;;  %v1199_v38 = vmul.f32 0.03125, %v1197_v36 }
 0xb1d   : > { %2271 = vrsqrt.f32 %v1200_v37  ;;  %v1201_v39 = vadd.f32 1e-05, %v1199_v38 }
 0xb1f   : > { %2273 = vrsqrt.f32 %v1201_v39 }
 0xb27   : > { %v2272_v40 = vpop.eup %2271 }
 0xb28   : > { %v1204_v42 = vmul.f32 %v2272_v40, %v1188_v27 }
 0xb29   : > { %v2274_v43 = vpop.eup %2273 }
 0xb2a   : > { %v1212_v44 = vmul.f32 %v1971_v41, %v1204_v42  ;;  %v1205_v45 = vmul.f32 %v2274_v43, %v1189_v28 }
 0xb2c   : > { %v1213_v47 = vmul.f32 %v1971_v41, %v1205_v45  ;;  %v1220_v48 = vadd.f32 %v1972_v46, %v1212_v44 }
 0xb2e   : > { %v1221_v49 = vadd.f32 %v1972_v46, %v1213_v47 }
 0xb30   : > { %v1222_v50 = vpack.c.bf16 %v1221_v49, %v1220_v48 }
 0xb32   : > { %2147 = vmatmul.mubr.msk.bf16.vlgmr.msra.gmra.mrb[20].mxu1 %vm494_vm0, %v1222_v50 }
 0xb33   : > { %2152 = vmatprep.mubr.msk.bf16.mxu1 %vm2309_vm1, %v2308_v23 }
 0xc05   : > { %v1277_v51 = vpop.f32.mrb[20].mxu1 }
 0xc06   : > { %v2148_v53 = vpop.f32.mrb[21].mxu1 }
 0xc07   : > { %v1280_v55 = vpop.f32.mrb[22].mxu1  ;;  %v2235_v53 = vld [vmem:[%s2730_s6 + $0x10] sm:$0xff]  }
 0xc08   : > { %v2604_v56 = vpack.c.bf16 %v1280_v55, %v1277_v51  ;;  %v2149_v57 = vpop.f32.mrb[23].mxu1  ;;  %v2236_v55 = vld [vmem:[%s2730_s6 + $0x18] sm:$0xff]  }
 0xc0a   : > { %1413 = vrot.lane.b32.xlu0 %v2604_v56, %s2311_s18  ;;  %1291 = vrot.lane.b32.xlu1 %v2604_v56, %s2310_s17 }
 0xc0e   : > { %1411 = vrot.lane.b32.xlu1 %v2604_v56, %s2312_s21  ;;  %s469_s21 = scalar_lea.vmem %s2738_s14, %s1940_s20 }
 0xc7c   : > { %v1292_v58 = vpop.permute.xlu1 %1291  ;;  %v1414_v60 = vpop.permute.xlu0 %1413 }
 0xc7d   : > { %v1297_v59 = vsel %vm607_vm2, %v1292_v58, 0  ;;  %v1419_v61 = vsel %vm607_vm2, %v1414_v60, 0 }
 0xc7e   : > { %2151 = vmatpush3.bf16.xpose.msra.mxu1 %v1297_v59 }
 0xc7f   : > { %2162 = vmatprep.subr.bf16.mxu1 %v2308_v23 }
 0xc80   : > { %v1412_v62 = vpop.permute.xlu1 %1411 }
 0xc85   : > { %2153 = vmatmul.mubr.msk.bf16.vlgmr.msra.gmra.mrb[24].mxu1 %vm607_vm2, %v2604_v56 }
 0xc86   : > { %2163 = vmatpush3.bf16.xpose.msra.mxu1 %v1419_v61  ;;  %2164 = vmatprep.mubr.msk.bf16.mxu1 %vm2309_vm1, %v2308_v23 }
 0xc87   : > { %2174 = vmatprep.subr.bf16.mxu1 %v2308_v23 }
 0xc8d   : > { %2165 = vmatmul.mubr.msk.bf16.vlgmr.msra.gmra.mrb[28].mxu1 %vm607_vm2, %v1412_v62 }
 0xc8e   : > { %2176 = vmatprep.mubr.msk.bf16.mxu1 %vm2309_vm1, %v2308_v23  ;;  %2175 = vmatpush3.bf16.msra.mxu1 %v2236_v55 }
 0xc8f   : > { %2186 = vmatprep.subr.bf16.mxu1 %v2308_v23 }
 0xd58   : > { %v1333_v63 = vpop.f32.mrb[24].mxu1 }
 0xd59   : > { %v1334_v0 = vadd.f32 %v1333_v63, %v2469_v52  ;;  %v2154_v1 = vpop.f32.mrb[25].mxu1 }
 0xd5a   : > { %v1336_v2 = vpop.f32.mrb[26].mxu1 }
 0xd5b   : > { %v1337_v3 = vadd.f32 %v1336_v2, %v2474_v54  ;;  %v2155_v4 = vpop.f32.mrb[27].mxu1  ;;  %v1340_v5 = vsel %vm607_vm2, %v1334_v0, -inf }
 0xd5c   : > { %1341 = vmax.xlane.f32.xlu1 %v1340_v5 }
 0xd5d   : > { %v1343_v7 = vsel %vm607_vm2, %v1337_v3, -inf }
 0xd5e   : > { %1344 = vmax.xlane.f32.xlu0 %v1343_v7 }
 0xd60   : > { %v1455_v9 = vpop.f32.mrb[28].mxu1 }
 0xd61   : > { %v1456_v12 = vadd.f32 %v1455_v9, %v2469_v52  ;;  %v2166_v13 = vpop.f32.mrb[29].mxu1 }
 0xd62   : > { %v1458_v14 = vpop.f32.mrb[30].mxu1  ;;  %v1993_v13 = vld [vmem:[%s2731_s7 + $0x1] ss:$0 sm:$0xff] }
 0xd63   : > { %v1459_v15 = vadd.f32 %v1458_v14, %v2474_v54  ;;  %v2167_v16 = vpop.f32.mrb[31].mxu1  ;;  %v1462_v6 = vsel %vm607_vm2, %v1456_v12, -inf }
 0xd64   : > { %1463 = vmax.xlane.f32.xlu0 %v1462_v6 }
 0xd65   : > { %v1465_v17 = vsel %vm607_vm2, %v1459_v15, -inf }
 0xd66   : > { %1466 = vmax.xlane.f32.xlu1 %v1465_v17 }
 0xde9   : > { %v1342_v19 = vpop.xlane.xlu1 %1341 }
 0xdea   : > { %v1346_v10 = vsub.f32 %v1334_v0, %v1342_v19 }
 0xdeb   : > { %v1345_v21 = vpop.xlane.xlu0 %1344 }
 0xdec   : > { %v1348_v22 = vmul.f32 1.442695, %v1346_v10  ;;  %v1347_v24 = vsub.f32 %v1337_v3, %v1345_v21 }
 0xdee   : > { %2275 = vpow2.f32 %v1348_v22  ;;  %v1350_v25 = vmul.f32 1.442695, %v1347_v24 }
 0xdf0   : > { %2277 = vpow2.f32 %v1350_v25 }
 0xdf1   : > { %v1464_v52 = vpop.xlane.xlu0 %1463 }
 0xdf2   : > { %v1468_v26 = vsub.f32 %v1456_v12, %v1464_v52 }
 0xdf3   : > { %v1467_v27 = vpop.xlane.xlu1 %1466 }
 0xdf4   : > { %v1470_v8 = vmul.f32 1.442695, %v1468_v26  ;;  %v1469_v54 = vsub.f32 %v1459_v15, %v1467_v27 }
 0xdf6   : > { %2279 = vpow2.f32 %v1470_v8  ;;  %v1472_v28 = vmul.f32 1.442695, %v1469_v54 }
 0xdf8   : > { %v2276_v29 = vpop.eup %2275  ;;  %2281 = vpow2.f32 %v1472_v28 }
 0xdf9   : > { %v1352_v11 = vsel %vm607_vm2, %v2276_v29, 0.0 }
 0xdfa   : > { %v2278_v30 = vpop.eup %2277  ;;  %1353 = vadd.xlane.f32.xlu0 %v1352_v11  ;;  %v2238_v11 = vld [vmem:[%s2734_s10 + $0x18] sm:$0xff]  }
 0xdfb   : > { %v1355_v31 = vsel %vm607_vm2, %v2278_v30, 0.0 }
 0xdfc   : > { %1356 = vadd.xlane.f32.xlu1 %v1355_v31 }
 0xe00   : > { %v2280_v32 = vpop.eup %2279 }
 0xe01   : > { %v1474_v33 = vsel %vm607_vm2, %v2280_v32, 0.0 }
 0xe02   : > { %v2282_v34 = vpop.eup %2281  ;;  %1475 = vadd.xlane.f32.xlu0 %v1474_v33 }
 0xe03   : > { %v1477_v35 = vsel %vm607_vm2, %v2282_v34, 0.0 }
 0xe04   : > { %1478 = vadd.xlane.f32.xlu1 %v1477_v35 }
 0xe15   : > { %1485 = vrot.lane.b32.xlu1 %v2604_v56, %s2313_s26 }
 0xe18   : > { %1363 = vrot.lane.b32.xlu0 %v2604_v56, %s2314_s27 }
 0xe87   : > { %v1354_v36 = vpop.xlane.xlu0 %1353 }
 0xe88   : > { %2283 = vrcp.f32 %v1354_v36 }
 0xe89   : > { %v1357_v37 = vpop.xlane.xlu1 %1356 }
 0xe8a   : > { %2285 = vrcp.f32 %v1357_v37  ;;  %v1996_v37 = vld [vmem:[%s2732_s8 + $0x1] ss:$0 sm:$0xff] }
 0xe8f   : > { %v1476_v38 = vpop.xlane.xlu0 %1475 }
 0xe90   : > { %2287 = vrcp.f32 %v1476_v38 }
 0xe91   : > { %v1479_v39 = vpop.xlane.xlu1 %1478 }
 0xe92   : > { %v2284_v40 = vpop.eup %2283  ;;  %2289 = vrcp.f32 %v1479_v39 }
 0xe93   : > { %v1364_v41 = vpop.permute.xlu0 %1363  ;;  %v1360_v43 = vmul.f32 %v2284_v40, %v2276_v29  ;;  %v2237_v29 = vld [vmem:[%s2734_s10 + $0x10] sm:$0xff]  }
 0xe94   : > { %v2286_v42 = vpop.eup %2285  ;;  %2157 = vmatpush3.bf16.msra.mxu0 %v1364_v41 }
 0xe95   : > { %v1361_v44 = vmul.f32 %v2286_v42, %v2278_v30  ;;  %2168 = vmatprep.subr.bf16.mxu0 %v2308_v23  ;;  %v1486_v46 = vpop.permute.xlu1 %1485  ;;  %v1997_v42 = vld [vmem:[%s2733_s9 + $0x1] ss:$0 sm:$0xff] }
 0xe97   : > { %v1362_v45 = vpack.c.bf16 %v1361_v44, %v1360_v43 }
 0xe99   : > { %2159 = vmatmul.mubr.msk.bf16.vlgmr.msra.gmra.mrb[16].mxu0 %vm607_vm2, %v1362_v45 }
 0xe9a   : > { %v2288_v47 = vpop.eup %2287  ;;  %2169 = vmatpush3.bf16.msra.mxu0 %v1486_v46  ;;  %2170 = vmatprep.mubr.msk.bf16.mxu0 %vm2309_vm1, %v2308_v23 }
 0xe9b   : > { %2180 = vmatprep.subr.bf16.mxu0 %v2308_v23  ;;  %v1482_v49 = vmul.f32 %v2288_v47, %v2280_v32  ;;  %v2239_v47 = vld [vmem:[%s2736_s12 + $0x20] sm:$0xff]  }
 0xe9c   : > { %v2290_v48 = vpop.eup %2289 }
 0xe9d   : > { %v1483_v50 = vmul.f32 %v2290_v48, %v2282_v34  ;;  %v2240_v48 = vld [vmem:[%s2736_s12 + $0x28] sm:$0xff]  }
 0xe9f   : > { %v1484_v51 = vpack.c.bf16 %v1483_v50, %v1482_v49  ;;  %v2241_v49 = vld [vmem:[%s2736_s12 + $0x30] sm:$0xff]   ;;  %v2242_v50 = vld [vmem:[%s2736_s12 + $0x38] sm:$0xff]  }
 0xea1   : > { %2171 = vmatmul.mubr.msk.bf16.vlgmr.msra.gmra.mrb[20].mxu0 %vm607_vm2, %v1484_v51  ;;  %v2003_v51 = vld [vmem:[%s2735_s11 + $0x1] ss:$0 sm:$0xff] }
 0xea2   : > { %2182 = vmatprep.mubr.msk.bf16.mxu0 %vm2309_vm1, %v2308_v23  ;;  %2181 = vmatpush3.bf16.msra.mxu0 %v2235_v53 }
 0xea3   : > { %2194 = vmatprep.subr.bf16.mxu0 %v2308_v23 }
 0xf6c   : > { %v1403_v56 = vpop.f32.mrb[16].mxu0 }
 0xf6d   : > { %v2160_v57 = vpop.f32.mrb[17].mxu0 }
 0xf6e   : > { %v1406_v58 = vpop.f32.mrb[18].mxu0 }
 0xf6f   : > { %v1410_v59 = vpack.c.bf16 %v1406_v58, %v1403_v56  ;;  %v2161_v60 = vpop.f32.mrb[19].mxu0 }
 0xf71   : > { %2183 = vmatmul.mubr.msk.bf16.vlgmr.msra.gmra.mrb[24].mxu0 %vm607_vm2, %v1410_v59 }
 0xf72   : > { %2202 = vmatprep.mubr.msk.bf16.mxu0 %vm2309_vm1, %v2308_v23  ;;  %2195 = vmatpush3.bf16.msra.mxu0 %v2239_v47 }
 0xf73   : > { %2196 = vmatprep.subr.bf16.mxu0 %v2308_v23 }
 0xf74   : > { %v1525_v61 = vpop.f32.mrb[20].mxu0 }
 0xf75   : > { %v2172_v62 = vpop.f32.mrb[21].mxu0 }
 0xf76   : > { %v1528_v63 = vpop.f32.mrb[22].mxu0  ;;  %2197 = vmatpush3.bf16.msra.mxu0 %v2240_v48 }
 0xf77   : > { %v1532_v0 = vpack.c.bf16 %v1528_v63, %v1525_v61  ;;  %v2173_v1 = vpop.f32.mrb[23].mxu0  ;;  %2198 = vmatprep.subr.bf16.mxu0 %v2308_v23 }
 0xf79   : > { %2177 = vmatmul.mubr.msk.bf16.vlgmr.msra.gmra.mrb[32].mxu1 %vm607_vm2, %v1532_v0 }
 0xf7a   : > { %2190 = vmatprep.mubr.msk.bf16.mxu1 %vm2309_vm1, %v2308_v23  ;;  %2187 = vmatpush3.bf16.msra.mxu1 %v2237_v29 }
 0xf7b   : > { %2188 = vmatprep.subr.bf16.mxu1 %v2308_v23  ;;  %2199 = vmatpush3.bf16.msra.mxu0 %v2241_v49 }
 0xf7c   : > { %2200 = vmatprep.subr.bf16.mxu0 %v2308_v23 }
 0xf7e   : > { %2189 = vmatpush3.bf16.msra.mxu1 %v2238_v11 }
 0xf7f   : > { %2201 = vmatpush3.bf16.msra.mxu0 %v2242_v50 }
0x1044   : > { %v1626_v2 = vpop.f32.mrb[24].mxu0 }
0x1045   : > { %v2184_v3 = vpop.f32.mrb[25].mxu0 }
0x1046   : > { %v1629_v4 = vpop.f32.mrb[26].mxu0 }
0x1047   : > { %v2185_v5 = vpop.f32.mrb[27].mxu0 }
0x104c   : > { %v1576_v7 = vpop.f32.mrb[32].mxu1 }
0x104d   : > { %v1627_v9 = vadd.f32 %v1626_v2, %v1576_v7  ;;  %v2178_v12 = vpop.f32.mrb[33].mxu1 }
0x104e   : > { %v1579_v14 = vpop.f32.mrb[34].mxu1 }
0x104f   : > { %v1633_v15 = vadd.f32 %v1627_v9, %v2574_v18  ;;  %v1630_v16 = vadd.f32 %v1629_v4, %v1579_v14  ;;  %v2179_v6 = vpop.f32.mrb[35].mxu1 }
0x1051   : > { %v2665_v17 = vadd.f32 %v1993_v13, %v1633_v15  ;;  %v1634_v19 = vadd.f32 %v1630_v16, %v2577_v20 }
0x1053   : > { %v2668_v10 = vadd.f32 %v1993_v13, %v1634_v19  ;;  %v1649_v21 = vsel %vm494_vm0, %v2665_v17, 0.0  ;;  %v2016_v19 = vld [vmem:[%s2737_s13 + $0x1] ss:$0 sm:$0xff] }
0x1054   : > { %1650 = vadd.xlane.f32.xlu1 %v1649_v21 }
0x1055   : > { %v1652_v22 = vsel %vm494_vm0, %v2668_v10, 0.0 }
0x1056   : > { %1653 = vadd.xlane.f32.xlu0 %v1652_v22 }
0x10e1   : > { %v1651_v24 = vpop.xlane.xlu1 %1650 }
0x10e2   : > { %v1655_v25 = vmul.f32 0.03125, %v1651_v24 }
0x10e3   : > { %v1654_v52 = vpop.xlane.xlu0 %1653 }
0x10e4   : > { %v1657_v18 = vsub.f32 %v2665_v17, %v1655_v25  ;;  %v1656_v26 = vmul.f32 0.03125, %v1654_v52 }
0x10e6   : > { %v1658_v27 = vsub.f32 %v2668_v10, %v1656_v26  ;;  %v1659_v8 = vmul.f32 %v1657_v18, %v1657_v18 }
0x10e8   : > { %v1661_v20 = vsel %vm494_vm0, %v1659_v8, 0.0  ;;  %v1660_v54 = vmul.f32 %v1658_v27, %v1658_v27 }
0x10e9   : > { %1662 = vadd.xlane.f32.xlu0 %v1661_v20 }
0x10ea   : > { %v1664_v28 = vsel %vm494_vm0, %v1660_v54, 0.0 }
0x10eb   : > { %1665 = vadd.xlane.f32.xlu1 %v1664_v28 }
0x1176   : > { %v1663_v30 = vpop.xlane.xlu0 %1662 }
0x1177   : > { %v1667_v31 = vmul.f32 0.03125, %v1663_v30 }
0x1178   : > { %v1666_v32 = vpop.xlane.xlu1 %1665 }
0x1179   : > { %v1669_v33 = vadd.f32 1e-05, %v1667_v31  ;;  %v1668_v34 = vmul.f32 0.03125, %v1666_v32 }
0x117b   : > { %2291 = vrsqrt.f32 %v1669_v33  ;;  %v1670_v35 = vadd.f32 1e-05, %v1668_v34 }
0x117d   : > { %2293 = vrsqrt.f32 %v1670_v35 }
0x1185   : > { %v2292_v36 = vpop.eup %2291 }
0x1186   : > { %v1673_v38 = vmul.f32 %v2292_v36, %v1657_v18 }
0x1187   : > { %v2294_v39 = vpop.eup %2293 }
0x1188   : > { %v1681_v40 = vmul.f32 %v1996_v37, %v1673_v38  ;;  %v1674_v41 = vmul.f32 %v2294_v39, %v1658_v27 }
0x118a   : > { %v1682_v43 = vmul.f32 %v1996_v37, %v1674_v41  ;;  %v1689_v44 = vadd.f32 %v1997_v42, %v1681_v40 }
0x118c   : > { %v1690_v45 = vadd.f32 %v1997_v42, %v1682_v43 }
0x118e   : > { %v1691_v46 = vpack.c.bf16 %v1690_v45, %v1689_v44 }
0x1190   : > { %2191 = vmatmul.mubr.msk.bf16.vlgmr.msra.gmra.mrb[36].mxu1 %vm494_vm0, %v1691_v46 }
0x1263   : > { %v1754_v53 = vpop.f32.mrb[36].mxu1 }
0x1264   : > { %v1755_v55 = vadd.f32 %v2003_v51, %v1754_v53  ;;  %v2192_v56 = vpop.f32.mrb[37].mxu1 }
0x1265   : > { %v1757_v57 = vpop.f32.mrb[38].mxu1 }
0x1266   : > { %v1763_v58 = vmul.f32 0.044715, %v1755_v55  ;;  %v1758_v59 = vadd.f32 %v2003_v51, %v1757_v57  ;;  %v2193_v60 = vpop.f32.mrb[39].mxu1  ;;  %v1761_v12 = vmul.f32 0.5, %v1755_v55 }
0x1268   : > { %v1765_v61 = vmul.f32 %v1763_v58, %v1755_v55  ;;  %v1764_v62 = vmul.f32 0.044715, %v1758_v59  ;;  %v1762_v13 = vmul.f32 0.5, %v1758_v59 }
0x126a   : > { %v1767_v63 = vmul.f32 %v1765_v61, %v1755_v55  ;;  %v1766_v0 = vmul.f32 %v1764_v62, %v1758_v59 }
0x126c   : > { %v1769_v1 = vadd.f32 %v1767_v63, %v1755_v55  ;;  %v1768_v2 = vmul.f32 %v1766_v0, %v1758_v59 }
0x126e   : > { %v1771_v3 = vmul.f32 0.7978846, %v1769_v1  ;;  %v1770_v23 = vadd.f32 %v1768_v2, %v1758_v59 }
0x1270   : > { %2295 = vtanh.f32 %v1771_v3  ;;  %v1772_v4 = vmul.f32 0.7978846, %v1770_v23 }
0x1272   : > { %2297 = vtanh.f32 %v1772_v4 }
0x127a   : > { %v2296_v5 = vpop.eup %2295 }
0x127b   : > { %v1775_v7 = vadd.f32 1.0, %v2296_v5 }
0x127c   : > { %v2298_v9 = vpop.eup %2297 }
0x127d   : > { %v1776_v14 = vadd.f32 1.0, %v2298_v9  ;;  %v1777_v15 = vmul.f32 %v1775_v7, %v1761_v12 }
0x127f   : > { %v1778_v16 = vmul.f32 %v1776_v14, %v1762_v13 }
0x1281   : > { %v1779_v6 = vpack.c.bf16 %v1778_v16, %v1777_v15 }
0x1283   : > { %2203 = vmatmul.mubr.msk.bf16.vlgmr.msra.gmra.mrb[28].mxu0 %vm1129_vm3, %v1779_v6 }
0x1356   : > { %v1858_v21 = vpop.f32.mrb[28].mxu0 }
0x1357   : > { %v1859_v22 = vadd.f32 %v2016_v19, %v1858_v21  ;;  %v2204_v24 = vpop.f32.mrb[29].mxu0 }
0x1358   : > { %v1861_v25 = vpop.f32.mrb[30].mxu0 }
0x1359   : > { %v1865_v52 = vadd.f32 %v1859_v22, %v2665_v17  ;;  %v1862_v18 = vadd.f32 %v2016_v19, %v1861_v25  ;;  %v2205_v26 = vpop.f32.mrb[31].mxu0 }
0x135b   : > { %v2026_v27 = vpack.c.bf16 %v1865_v52, %v1865_v52  ;;  %v1866_v8 = vadd.f32 %v1862_v18, %v2668_v10 }
0x135d   : > { %1876 = vst.msk [vmem:[%s469_s21] sm:$0xf] %vm1875_vm4, %v2026_v27  ;;  %v2027_v20 = vpack.c.bf16 %v1866_v8, %v1866_v8 }
0x135f   : > { %1877 = vst.msk [vmem:[%s469_s21 + $0x4] sm:$0xf] %vm1875_vm4, %v2027_v20 }
0x1360 PF: > { %s24_s29 = sadd.s32 1, %s2305_s29  }
0x1361   : > { %p21_p4 = scmp.ge.s32.totalorder %s24_s29, 4  }
0x1363   :  { %23 = sbr.rel (!%p21_p4) target bundleno = 1 (0x1), region = 117 }

// kernel: htnet_forward.8
= control target key start
LH: loop header
LB: loop body
LE: loop exit
PB: predicated region body
PF: predicated region fallthrough
CT: control target
= control target key end

     0   :  { %v1333_v0 = vmov 0   ;;  %vm60_vm0 = vcmask 523264   ;;  %v1334_v30 = vmov 0.0   ;;  %vm1335_vm1 = vmmov 0   ;;  %s1340_s19 = smov 96   ;;  %s1341_s24 = smov 80   ;;  %s1650_s1 = inlined_call_operand.vmem [shape: f32[8,1], index: 1, kind: input, shape index: {}]   ;;  %s1651_s0 = inlined_call_operand.vmem [shape: bf16[8,64], index: 0, kind: input, shape index: {}]   ;;  %s1652_s5 = inlined_call_operand.vmem [shape: bf16[1,64,192], index: 5, kind: input, shape index: {}]   ;;  %s1653_s3 = inlined_call_operand.vmem [shape: f32[1,1,64], index: 3, kind: input, shape index: {}]   ;;  %s1654_s4 = inlined_call_operand.vmem [shape: f32[1,1,64], index: 4, kind: input, shape index: {}]   ;;  %s1655_s2 = inlined_call_operand.vmem [shape: f32[8,8], index: 2, kind: input, shape index: {}]   ;;  %s1656_s6 = inlined_call_operand.vmem [shape: bf16[1,64,64], index: 6, kind: input, shape index: {}]   ;;  %s1657_s7 = inlined_call_operand.vmem [shape: f32[1,1,64], index: 7, kind: input, shape index: {}]   ;;  %s1658_s10 = inlined_call_operand.vmem [shape: bf16[1,64,128], index: 10, kind: input, shape index: {}]   ;;  %s1659_s12 = inlined_call_operand.vmem [shape: bf16[1,128,64], index: 12, kind: input, shape index: {}]   ;;  %s1660_s8 = inlined_call_operand.vmem [shape: f32[1,1,64], index: 8, kind: input, shape index: {}]   ;;  %s1661_s9 = inlined_call_operand.vmem [shape: f32[1,1,64], index: 9, kind: input, shape index: {}]   ;;  %s1662_s11 = inlined_call_operand.vmem [shape: f32[1,1,128], index: 11, kind: input, shape index: {}]   ;;  %s1663_s13 = inlined_call_operand.vmem [shape: f32[1,1,64], index: 13, kind: input, shape index: {}]   ;;  %s1664_s14 = inlined_call_operand.vmem [shape: bf16[8,64], index: 14, kind: output, shape index: {}]  }
   0x1   :  { %1282 = vset.pattern.permute.xlu0 %v1333_v0  ;;  %v50_v1 = vld [vmem:[%s1650_s1] sm:$0xff]  ;;  %173 = vmatprep.mubr.bf16.mxu0 %v1333_v0  ;;  %v1286_v14 = vld [vmem:[%s1652_s5 + $0x14] ss:$8 sps:$4 sm:$0xff]   ;;  %v1288_v15 = vld [vmem:[%s1652_s5 + $0x10] ss:$8 sps:$4 sm:$0xff]   ;;  %vm258_vm2 = vcmask 1043456  }
   0x2   :  { %53 = vperm.xlu0 %1282, %v50_v1   ;;  %v48_v2 = vld [vmem:[%s1651_s0] sm:$0xf]  ;;  %v1283_v12 = vld [vmem:[%s1652_s5 + $0x4] ss:$8 sps:$4 sm:$0xff]   ;;  %v1292_v18 = vld [vmem:[%s1652_s5 + $0x34] ss:$8 sps:$4 sm:$0xff]   ;;  %1174 = vmatprep.subr.bf16.mxu1 %v1334_v30 }
   0x3   :  { %v49_v3 = vunpack.c.l.bf16 %v48_v2  ;;  %v1285_v13 = vld [vmem:[%s1652_s5] ss:$8 sps:$4 sm:$0xff]   ;;  %141 = vmatprep.subr.bf16.mxu0 %v1283_v12  ;;  %v1289_v16 = vld [vmem:[%s1652_s5 + $0x24] ss:$8 sps:$4 sm:$0xff]   ;;  %v1294_v19 = vld [vmem:[%s1652_s5 + $0x30] ss:$8 sps:$4 sm:$0xff]   ;;  %1176 = vmatprep.mubr.msk.bf16.mxu1 %vm1335_vm1, %v1334_v30 }
   0x4   :  { %142 = vmatpush1.bf16.msra.mxu0 %v1285_v13  ;;  %v1291_v17 = vld [vmem:[%s1652_s5 + $0x20] ss:$8 sps:$4 sm:$0xff]   ;;  %s1338_s5 = smov 112   ;;  %vm195_vm3 = vcmask 130048   ;;  %vm242_vm4 = vcmask 64512   ;;  %s1342_s25 = smov 16  }
   0x5   :  { %143 = vmatprep.subr.bf16.mxu0 %v1286_v14  ;;  %v1085_v24 = vld [vmem:[%s1653_s3] ss:$0 sm:$0xff]  ;;  %s1336_s3 = smov 64   ;;  %v1296_v14 = vld [vmem:[%s1656_s6 + $0x8] sm:$0xff]   ;;  %vm1079_vm5 = vcmask 519168  }
   0x6   :  { %v1086_v26 = vld [vmem:[%s1654_s4] ss:$0 sm:$0xff]  ;;  %s1337_s4 = smov 48  }
   0x7   :  { %v1492_v43 = vld [vmem:[%s1655_s2] sm:$0xff]  ;;  %s1339_s2 = smov 32  }
   0x8   :  { %144 = vmatpush1.bf16.msra.mxu0 %v1288_v15  ;;  %v1295_v13 = vld [vmem:[%s1656_s6] sm:$0xff]  }
   0x9   :  { %145 = vmatprep.subr.bf16.mxu0 %v1289_v16 }
   0xc   :  { %146 = vmatpush1.bf16.msra.mxu0 %v1291_v17 }
   0xd   :  { %147 = vmatprep.subr.bf16.mxu0 %v1292_v18 }
  0x10   :  { %148 = vmatpush1.bf16.msra.mxu0 %v1294_v19 }
  0x11   :  { %1168 = vmatprep.subr.bf16.mxu0 %v1334_v30 }
  0x81   :  { %v54_v4 = vpop.permute.xlu0 %53 }
  0x82   :  { %v1424_v5 = vadd.f32 %v54_v4, %v49_v3 }
  0x84   :  { %v61_v6 = vsel %vm60_vm0, %v1424_v5, 0.0 }
  0x85   :  { %62 = vadd.xlane.f32.xlu0 %v61_v6 }
 0x112   :  { %v63_v7 = vpop.xlane.xlu0 %62 }
 0x113   :  { %v65_v8 = vmul.f32 0.015625, %v63_v7 }
 0x115   :  { %v66_v9 = vsub.f32 %v1424_v5, %v65_v8 }
 0x117   :  { %v67_v10 = vmul.f32 %v66_v9, %v66_v9 }
 0x119   :  { %v68_v11 = vsel %vm60_vm0, %v67_v10, 0.0 }
 0x11a   :  { %69 = vadd.xlane.f32.xlu1 %v68_v11 }
 0x1a7   :  { %v70_v20 = vpop.xlane.xlu1 %69 }
 0x1a8   :  { %v71_v21 = vmul.f32 0.015625, %v70_v20 }
 0x1aa   :  { %v72_v22 = vadd.f32 1e-05, %v71_v21 }
 0x1ac   :  { %1311 = vrsqrt.f32 %v72_v22 }
 0x1b6   :  { %v1312_v23 = vpop.eup %1311 }
 0x1b7   :  { %v74_v25 = vmul.f32 %v1312_v23, %v66_v9 }
 0x1b9   :  { %v81_v27 = vmul.f32 %v1085_v24, %v74_v25 }
 0x1bb   :  { %v88_v28 = vadd.f32 %v1086_v26, %v81_v27 }
 0x1bd   :  { %v89_v29 = vpack.c.bf16 %v88_v28, %v88_v28 }
 0x1bf   :  { %1095 = vmatmul.mubr.msk.bf16.vlgmr.msra.gmra.mrb[0].mxu0 %vm60_vm0, %v89_v29 }
 0x1c0   :  { %1170 = vmatprep.mubr.msk.bf16.mxu0 %vm1335_vm1, %v1334_v30 }
 0x292   :  { %v175_v31 = vpop.f32.mrb[0].mxu0 }
 0x293   :  { %v1467_v32 = vpack.c.bf16 %v175_v31, %v175_v31  ;;  %v177_v33 = vpop.f32.mrb[1].mxu0 }
 0x294   :  { %v1469_v34 = vpack.c.bf16 %v177_v33, %v177_v33  ;;  %v179_v35 = vpop.f32.mrb[2].mxu0 }
 0x295   :  { %193 = vrot.lane.b32.xlu1 %v1467_v32, %s1336_s3  ;;  %v180_v36 = vpop.f32.mrb[3].mxu0 }
 0x296   :  { %v260_v37 = vsel %vm258_vm2, %v1469_v34, 0 }
 0x297   :  { %1175 = vmatpush3.bf16.msra.mxu1 %v260_v37 }
 0x298   :  { %1186 = vmatprep.subr.bf16.mxu1 %v1334_v30 }
 0x299   :  { %305 = vrot.lane.b32.xlu1 %v1467_v32, %s1337_s4 }
 0x29d   :  { %303 = vrot.lane.b32.xlu1 %v1467_v32, %s1338_s5 }
 0x307   :  { %v194_v38 = vpop.permute.xlu1 %193 }
 0x308   :  { %v200_v39 = vsel %vm195_vm3, %v194_v38, 0 }
 0x309   :  { %1169 = vmatpush3.bf16.xpose.msra.mxu0 %v200_v39 }
 0x30a   :  { %1180 = vmatprep.subr.bf16.mxu0 %v1334_v30 }
 0x30b   :  { %v306_v40 = vpop.permute.xlu1 %305 }
 0x30c   :  { %v311_v41 = vsel %vm195_vm3, %v306_v40, 0 }
 0x30f   :  { %v304_v42 = vpop.permute.xlu1 %303 }
 0x310   :  { %1171 = vmatmul.mubr.msk.bf16.vlgmr.msra.gmra.mrb[4].mxu0 %vm195_vm3, %v1467_v32 }
 0x311   :  { %1181 = vmatpush3.bf16.xpose.msra.mxu0 %v311_v41  ;;  %1182 = vmatprep.mubr.msk.bf16.mxu0 %vm1335_vm1, %v1334_v30 }
 0x312   :  { %1192 = vmatprep.subr.bf16.mxu0 %v1334_v30 }
 0x318   :  { %1183 = vmatmul.mubr.msk.bf16.vlgmr.msra.gmra.mrb[8].mxu0 %vm195_vm3, %v304_v42 }
 0x319   :  { %1194 = vmatprep.mubr.msk.bf16.mxu0 %vm1335_vm1, %v1334_v30  ;;  %1193 = vmatpush3.bf16.msra.mxu0 %v1296_v14 }
 0x31a   :  { %1204 = vmatprep.subr.bf16.mxu0 %v1334_v30 }
 0x3e3   :  { %v236_v44 = vpop.f32.mrb[4].mxu0 }
 0x3e4   :  { %v237_v45 = vadd.f32 %v236_v44, %v1492_v43  ;;  %v1172_v46 = vpop.f32.mrb[5].mxu0 }
 0x3e5   :  { %v239_v47 = vpop.f32.mrb[6].mxu0 }
 0x3e6   :  { %v1173_v48 = vpop.f32.mrb[7].mxu0  ;;  %v243_v49 = vsel %vm242_vm4, %v237_v45, -inf }
 0x3e7   :  { %244 = vmax.xlane.f32.xlu1 %v243_v49 }
 0x3eb   :  { %v347_v50 = vpop.f32.mrb[8].mxu0 }
 0x3ec   :  { %v348_v51 = vadd.f32 %v347_v50, %v1492_v43  ;;  %v1184_v52 = vpop.f32.mrb[9].mxu0 }
 0x3ed   :  { %v350_v53 = vpop.f32.mrb[10].mxu0 }
 0x3ee   :  { %v1185_v54 = vpop.f32.mrb[11].mxu0  ;;  %v353_v55 = vsel %vm242_vm4, %v348_v51, -inf }
 0x3ef   :  { %354 = vmax.xlane.f32.xlu0 %v353_v55 }
 0x3f8   :  { %515 = vrot.lane.b32.xlu1 %v1467_v32, %s1339_s2 }
 0x474   :  { %v245_v56 = vpop.xlane.xlu1 %244 }
 0x475   :  { %v246_v57 = vsub.f32 %v237_v45, %v245_v56 }
 0x477   :  { %v247_v58 = vmul.f32 1.442695, %v246_v57 }
 0x478   :  { %v516_v20 = vpop.permute.xlu1 %515 }
 0x479   :  { %1313 = vpow2.f32 %v247_v58  ;;  %v521_v25 = vsel %vm195_vm3, %v516_v20, 0 }
 0x47c   :  { %v355_v59 = vpop.xlane.xlu0 %354 }
 0x47d   :  { %v356_v60 = vsub.f32 %v348_v51, %v355_v59 }
 0x47f   :  { %v357_v61 = vmul.f32 1.442695, %v356_v60 }
 0x481   :  { %1315 = vpow2.f32 %v357_v61 }
 0x483   :  { %v1314_v62 = vpop.eup %1313 }
 0x484   :  { %v249_v63 = vsel %vm242_vm4, %v1314_v62, 0.0 }
 0x485   :  { %250 = vadd.xlane.f32.xlu0 %v249_v63 }
 0x48b   :  { %v1316_v0 = vpop.eup %1315 }
 0x48c   :  { %v359_v1 = vsel %vm242_vm4, %v1316_v0, 0.0 }
 0x48d   :  { %360 = vadd.xlane.f32.xlu0 %v359_v1 }
 0x4a3   :  { %366 = vrot.lane.b32.xlu0 %v1469_v34, %s1338_s5 }
 0x4a7   :  { %513 = vrot.lane.b32.xlu0 %v1467_v32, %s1340_s19 }
 0x512   :  { %v251_v2 = vpop.xlane.xlu0 %250 }
 0x513   :  { %1317 = vrcp.f32 %v251_v2 }
 0x51a   :  { %v361_v3 = vpop.xlane.xlu0 %360 }
 0x51b   :  { %1319 = vrcp.f32 %v361_v3 }
 0x51d   :  { %v1318_v4 = vpop.eup %1317 }
 0x51e   :  { %v253_v6 = vmul.f32 %v1318_v4, %v1314_v62  ;;  %v367_v7 = vpop.permute.xlu0 %366 }
 0x51f   :  { %v372_v9 = vsel %vm258_vm2, %v367_v7, 0 }
 0x520   :  { %v254_v8 = vpack.c.bf16 %v253_v6, %v253_v6 }
 0x522   :  { %1177 = vmatmul.mubr.msk.bf16.vlgmr.msra.gmra.mrb[0].mxu1 %vm242_vm4, %v254_v8  ;;  %v514_v27 = vpop.permute.xlu0 %513 }
 0x523   :  { %1187 = vmatpush3.bf16.msra.mxu1 %v372_v9  ;;  %1188 = vmatprep.mubr.msk.bf16.mxu1 %vm1335_vm1, %v1334_v30 }
 0x524   :  { %1198 = vmatprep.subr.bf16.mxu1 %v1334_v30 }
 0x525   :  { %v1320_v10 = vpop.eup %1319 }
 0x526   :  { %v363_v11 = vmul.f32 %v1320_v10, %v1316_v0 }
 0x528   :  { %v364_v12 = vpack.c.bf16 %v363_v11, %v363_v11 }
 0x52a   :  { %1189 = vmatmul.mubr.msk.bf16.vlgmr.msra.gmra.mrb[4].mxu1 %vm242_vm4, %v364_v12 }
 0x52b   :  { %1200 = vmatprep.mubr.msk.bf16.mxu1 %vm1335_vm1, %v1334_v30  ;;  %1199 = vmatpush3.bf16.msra.mxu1 %v1295_v13 }
 0x52c   :  { %1210 = vmatprep.subr.bf16.mxu1 %v1334_v30 }
 0x5f5   :  { %v296_v15 = vpop.f32.mrb[0].mxu1 }
 0x5f6   :  { %v302_v16 = vpack.c.bf16 %v296_v15, %v296_v15  ;;  %v1178_v17 = vpop.f32.mrb[1].mxu1  ;;  %v1298_v15 = vld [vmem:[%s1656_s6 + $0x18] sm:$0xff]  }
 0x5f7   :  { %v299_v18 = vpop.f32.mrb[2].mxu1 }
 0x5f8   :  { %v1179_v19 = vpop.f32.mrb[3].mxu1  ;;  %1201 = vmatmul.mubr.msk.bf16.vlgmr.msra.gmra.mrb[8].mxu1 %vm195_vm3, %v302_v16 }
 0x5f9   :  { %1212 = vmatprep.mubr.msk.bf16.mxu1 %vm1335_vm1, %v1334_v30 }
 0x5fd   :  { %v408_v21 = vpop.f32.mrb[4].mxu1 }
 0x5fe   :  { %v414_v22 = vpack.c.bf16 %v408_v21, %v408_v21  ;;  %v1190_v23 = vpop.f32.mrb[5].mxu1 }
 0x5ff   :  { %v411_v24 = vpop.f32.mrb[6].mxu1 }
 0x600   :  { %v1191_v26 = vpop.f32.mrb[7].mxu1  ;;  %1195 = vmatmul.mubr.msk.bf16.vlgmr.msra.gmra.mrb[12].mxu0 %vm195_vm3, %v414_v22 }
 0x601   :  { %1205 = vmatpush3.bf16.xpose.msra.mxu0 %v521_v25  ;;  %1206 = vmatprep.mubr.msk.bf16.mxu0 %vm1335_vm1, %v1334_v30 }
 0x602   :  { %1216 = vmatprep.subr.bf16.mxu0 %v1334_v30 }
 0x608   :  { %1207 = vmatmul.mubr.msk.bf16.vlgmr.msra.gmra.mrb[16].mxu0 %vm195_vm3, %v514_v27 }
 0x609   :  { %1218 = vmatprep.mubr.msk.bf16.mxu0 %vm1335_vm1, %v1334_v30 }
 0x6cb   :  { %v507_v28 = vpop.f32.mrb[8].mxu1 }
 0x6cc   :  { %v1202_v29 = vpop.f32.mrb[9].mxu1 }
 0x6cd   :  { %v510_v31 = vpop.f32.mrb[10].mxu1 }
 0x6ce   :  { %v1203_v33 = vpop.f32.mrb[11].mxu1 }
 0x6d3   :  { %v458_v35 = vpop.f32.mrb[12].mxu0 }
 0x6d4   :  { %v1532_v36 = vadd.f32 %v507_v28, %v458_v35  ;;  %v1196_v37 = vpop.f32.mrb[13].mxu0  ;;  %v1112_v35 = vld [vmem:[%s1657_s7] ss:$0 sm:$0xff] }
 0x6d5   :  { %v461_v38 = vpop.f32.mrb[14].mxu0 }
 0x6d6   :  { %v1197_v39 = vpop.f32.mrb[15].mxu0 }
 0x6db   :  { %v557_v40 = vpop.f32.mrb[16].mxu0 }
 0x6dc   :  { %v558_v41 = vadd.f32 %v557_v40, %v1492_v43  ;;  %v1208_v42 = vpop.f32.mrb[17].mxu0 }
 0x6dd   :  { %v560_v44 = vpop.f32.mrb[18].mxu0 }
 0x6de   :  { %v1209_v45 = vpop.f32.mrb[19].mxu0  ;;  %v563_v46 = vsel %vm242_vm4, %v558_v41, -inf }
 0x6df   :  { %564 = vmax.xlane.f32.xlu0 %v563_v46 }
 0x6f5   :  { %575 = vrot.lane.b32.xlu0 %v1469_v34, %s1340_s19 }
 0x6f9   :  { %674 = vrot.lane.b32.xlu0 %v1467_v32, %s1341_s24 }
 0x76c   :  { %v565_v47 = vpop.xlane.xlu0 %564 }
 0x76d   :  { %v566_v48 = vsub.f32 %v558_v41, %v565_v47  ;;  %v1299_v47 = vld [vmem:[%s1658_s10] sm:$0xff]  }
 0x76f   :  { %v567_v49 = vmul.f32 1.442695, %v566_v48  ;;  %v1301_v48 = vld [vmem:[%s1658_s10 + $0x10] sm:$0xff]  }
 0x770   :  { %v576_v50 = vpop.permute.xlu0 %575 }
 0x771   :  { %1321 = vpow2.f32 %v567_v49  ;;  %v581_v51 = vsel %vm258_vm2, %v576_v50, 0  ;;  %v1302_v49 = vld [vmem:[%s1658_s10 + $0x18] sm:$0xff]   ;;  %v1303_v50 = vld [vmem:[%s1659_s12] sm:$0xff]  }
 0x772   :  { %1211 = vmatpush3.bf16.msra.mxu1 %v581_v51 }
 0x773   :  { %1222 = vmatprep.subr.bf16.mxu1 %v1334_v30 }
 0x774   :  { %v675_v60 = vpop.permute.xlu0 %674 }
 0x77b   :  { %v1322_v52 = vpop.eup %1321 }
 0x77c   :  { %v569_v53 = vsel %vm242_vm4, %v1322_v52, 0.0 }
 0x77d   :  { %570 = vadd.xlane.f32.xlu1 %v569_v53 }
 0x78e   :  { %676 = vrot.lane.b32.xlu1 %v1467_v32, %s1342_s25  ;;  %v1297_v32 = vld [vmem:[%s1656_s6 + $0x10] sm:$0xff]  }
 0x78f   :  { %1217 = vmatpush3.bf16.msra.mxu0 %v1297_v32  ;;  %v1304_v32 = vld [vmem:[%s1659_s12 + $0x8] sm:$0xff]  }
 0x790   :  { %1228 = vmatprep.subr.bf16.mxu0 %v1334_v30 }
 0x80a   :  { %v571_v54 = vpop.xlane.xlu1 %570 }
 0x80b   :  { %1323 = vrcp.f32 %v571_v54 }
 0x80e   :  { %v677_v57 = vpop.permute.xlu1 %676 }
 0x80f   :  { %v682_v59 = vsel %vm195_vm3, %v677_v57, 0  ;;  %v1114_v57 = vld [vmem:[%s1661_s9] ss:$0 sm:$0xff] }
 0x815   :  { %v1324_v55 = vpop.eup %1323 }
 0x816   :  { %v573_v56 = vmul.f32 %v1324_v55, %v1322_v52  ;;  %v1113_v55 = vld [vmem:[%s1660_s8] ss:$0 sm:$0xff] }
 0x818   :  { %v574_v58 = vpack.c.bf16 %v573_v56, %v573_v56 }
 0x81a   :  { %1213 = vmatmul.mubr.msk.bf16.vlgmr.msra.gmra.mrb[12].mxu1 %vm242_vm4, %v574_v58 }
 0x81b   :  { %1223 = vmatpush3.bf16.xpose.msra.mxu1 %v682_v59  ;;  %1224 = vmatprep.mubr.msk.bf16.mxu1 %vm1335_vm1, %v1334_v30 }
 0x81c   :  { %1234 = vmatprep.subr.bf16.mxu1 %v1334_v30 }
 0x822   :  { %1225 = vmatmul.mubr.msk.bf16.vlgmr.msra.gmra.mrb[16].mxu1 %vm195_vm3, %v675_v60 }
 0x823   :  { %1236 = vmatprep.mubr.msk.bf16.mxu1 %vm1335_vm1, %v1334_v30  ;;  %1235 = vmatpush3.bf16.msra.mxu1 %v1298_v15 }
 0x824   :  { %1252 = vmatprep.subr.bf16.mxu1 %v1334_v30 }
 0x8ed   :  { %v617_v61 = vpop.f32.mrb[12].mxu1 }
 0x8ee   :  { %v623_v62 = vpack.c.bf16 %v617_v61, %v617_v61  ;;  %v1214_v63 = vpop.f32.mrb[13].mxu1  ;;  %v1305_v61 = vld [vmem:[%s1659_s12 + $0x10] sm:$0xff]  }
 0x8ef   :  { %v620_v0 = vpop.f32.mrb[14].mxu1  ;;  %v1307_v63 = vld [vmem:[%s1659_s12 + $0x20] sm:$0xff]  }
 0x8f0   :  { %v1215_v1 = vpop.f32.mrb[15].mxu1  ;;  %1219 = vmatmul.mubr.msk.bf16.vlgmr.msra.gmra.mrb[20].mxu0 %vm195_vm3, %v623_v62  ;;  %v1306_v62 = vld [vmem:[%s1659_s12 + $0x18] sm:$0xff]   ;;  %v1308_v0 = vld [vmem:[%s1659_s12 + $0x28] sm:$0xff]  }
 0x8f1   :  { %1230 = vmatprep.mubr.msk.bf16.mxu0 %vm1335_vm1, %v1334_v30  ;;  %v1309_v1 = vld [vmem:[%s1659_s12 + $0x30] sm:$0xff]  }
 0x8f5   :  { %v718_v2 = vpop.f32.mrb[16].mxu1 }
 0x8f6   :  { %v719_v3 = vadd.f32 %v718_v2, %v1492_v43  ;;  %v1226_v4 = vpop.f32.mrb[17].mxu1  ;;  %v1310_v2 = vld [vmem:[%s1659_s12 + $0x38] sm:$0xff]  }
 0x8f7   :  { %v721_v6 = vpop.f32.mrb[18].mxu1 }
 0x8f8   :  { %v1227_v7 = vpop.f32.mrb[19].mxu1  ;;  %v724_v8 = vsel %vm242_vm4, %v719_v3, -inf }
 0x8f9   :  { %725 = vmax.xlane.f32.xlu0 %v724_v8 }
 0x90f   :  { %736 = vrot.lane.b32.xlu0 %v1469_v34, %s1341_s24 }
 0x986   :  { %v726_v9 = vpop.xlane.xlu0 %725 }
 0x987   :  { %v727_v10 = vsub.f32 %v719_v3, %v726_v9  ;;  %v1115_v3 = vld [vmem:[%s1662_s11] ss:$0 sm:$0xff] }
 0x989   :  { %v728_v11 = vmul.f32 1.442695, %v727_v10 }
 0x98a   :  { %v737_v12 = vpop.permute.xlu0 %736 }
 0x98b   :  { %1325 = vpow2.f32 %v728_v11  ;;  %v742_v13 = vsel %vm258_vm2, %v737_v12, 0 }
 0x98c   :  { %1229 = vmatpush3.bf16.msra.mxu0 %v742_v13 }
 0x98d   :  { %1240 = vmatprep.subr.bf16.mxu0 %v1334_v30 }
 0x995   :  { %v1326_v43 = vpop.eup %1325 }
 0x996   :  { %v730_v14 = vsel %vm242_vm4, %v1326_v43, 0.0 }
 0x997   :  { %731 = vadd.xlane.f32.xlu1 %v730_v14 }
 0x9c3   :  { %v667_v34 = vpop.f32.mrb[20].mxu0 }
 0x9c4   :  { %v673_v16 = vadd.f32 %v667_v34, %v1532_v36  ;;  %v1220_v17 = vpop.f32.mrb[21].mxu0 }
 0x9c5   :  { %v670_v18 = vpop.f32.mrb[22].mxu0  ;;  %v1121_v17 = vld [vmem:[%s1663_s13] ss:$0 sm:$0xff] }
 0x9c6   :  { %v1221_v19 = vpop.f32.mrb[23].mxu0 }
 0xa24   :  { %v732_v20 = vpop.xlane.xlu1 %731 }
 0xa25   :  { %1327 = vrcp.f32 %v732_v20 }
 0xa2f   :  { %v1328_v21 = vpop.eup %1327 }
 0xa30   :  { %v734_v22 = vmul.f32 %v1328_v21, %v1326_v43 }
 0xa32   :  { %v735_v23 = vpack.c.bf16 %v734_v22, %v734_v22 }
 0xa34   :  { %1231 = vmatmul.mubr.msk.bf16.vlgmr.msra.gmra.mrb[24].mxu0 %vm242_vm4, %v735_v23 }
 0xa35   :  { %1248 = vmatprep.mubr.msk.bf16.mxu0 %vm1335_vm1, %v1334_v30  ;;  %1241 = vmatpush3.bf16.msra.mxu0 %v1299_v47 }
 0xa36   :  { %1242 = vmatprep.subr.bf16.mxu0 %v1334_v30 }
 0xb07   :  { %v778_v24 = vpop.f32.mrb[24].mxu0 }
 0xb08   :  { %v784_v25 = vpack.c.bf16 %v778_v24, %v778_v24  ;;  %v1232_v26 = vpop.f32.mrb[25].mxu0 }
 0xb09   :  { %v781_v27 = vpop.f32.mrb[26].mxu0 }
 0xb0a   :  { %v1233_v28 = vpop.f32.mrb[27].mxu0  ;;  %1237 = vmatmul.mubr.msk.bf16.vlgmr.msra.gmra.mrb[20].mxu1 %vm195_vm3, %v784_v25 }
 0xb0b   :  { %1268 = vmatprep.mubr.msk.bf16.mxu1 %vm1335_vm1, %v1334_v30  ;;  %1253 = vmatpush3.bf16.msra.mxu1 %v1303_v50 }
 0xb0c   :  { %1254 = vmatprep.subr.bf16.mxu1 %v1334_v30 }
 0xb0f   :  { %1255 = vmatpush3.bf16.msra.mxu1 %v1304_v32 }
 0xb10   :  { %1256 = vmatprep.subr.bf16.mxu1 %v1334_v30 }
 0xb13   :  { %1257 = vmatpush3.bf16.msra.mxu1 %v1305_v61 }
 0xb14   :  { %1258 = vmatprep.subr.bf16.mxu1 %v1334_v30 }
 0xb17   :  { %1259 = vmatpush3.bf16.msra.mxu1 %v1306_v62 }
 0xb18   :  { %1260 = vmatprep.subr.bf16.mxu1 %v1334_v30 }
 0xb1b   :  { %1261 = vmatpush3.bf16.msra.mxu1 %v1307_v63 }
 0xb1c   :  { %1262 = vmatprep.subr.bf16.mxu1 %v1334_v30 }
 0xb1f   :  { %1263 = vmatpush3.bf16.msra.mxu1 %v1308_v0 }
 0xb20   :  { %1264 = vmatprep.subr.bf16.mxu1 %v1334_v30 }
 0xb23   :  { %1265 = vmatpush3.bf16.msra.mxu1 %v1309_v1 }
 0xb24   :  { %1266 = vmatprep.subr.bf16.mxu1 %v1334_v30 }
 0xb27   :  { %1267 = vmatpush3.bf16.msra.mxu1 %v1310_v2 }
 0xbdd   :  { %v828_v29 = vpop.f32.mrb[20].mxu1 }
 0xbde   :  { %v834_v31 = vadd.f32 %v828_v29, %v673_v16  ;;  %v1238_v33 = vpop.f32.mrb[21].mxu1 }
 0xbdf   :  { %v831_v36 = vpop.f32.mrb[22].mxu1 }
 0xbe0   :  { %v835_v37 = vadd.f32 %v834_v31, %v1424_v5  ;;  %v1239_v38 = vpop.f32.mrb[23].mxu1  ;;  %v1300_v5 = vld [vmem:[%s1658_s10 + $0x8] sm:$0xff]  }
 0xbe1   :  { %1243 = vmatpush3.bf16.msra.mxu0 %v1300_v5 }
 0xbe2   :  { %v1581_v39 = vadd.f32 %v1112_v35, %v835_v37  ;;  %1244 = vmatprep.subr.bf16.mxu0 %v1334_v30 }
 0xbe4   :  { %v846_v40 = vsel %vm60_vm0, %v1581_v39, 0.0 }
 0xbe5   :  { %847 = vadd.xlane.f32.xlu1 %v846_v40  ;;  %1245 = vmatpush3.bf16.msra.mxu0 %v1301_v48 }
 0xbe6   :  { %1246 = vmatprep.subr.bf16.mxu0 %v1334_v30 }
 0xbe9   :  { %1247 = vmatpush3.bf16.msra.mxu0 %v1302_v49 }
 0xc72   :  { %v848_v41 = vpop.xlane.xlu1 %847 }
 0xc73   :  { %v849_v42 = vmul.f32 0.015625, %v848_v41 }
 0xc75   :  { %v850_v44 = vsub.f32 %v1581_v39, %v849_v42 }
 0xc77   :  { %v851_v45 = vmul.f32 %v850_v44, %v850_v44 }
 0xc79   :  { %v852_v46 = vsel %vm60_vm0, %v851_v45, 0.0 }
 0xc7a   :  { %853 = vadd.xlane.f32.xlu1 %v852_v46 }
 0xd07   :  { %v854_v51 = vpop.xlane.xlu1 %853 }
 0xd08   :  { %v855_v52 = vmul.f32 0.015625, %v854_v51 }
 0xd0a   :  { %v856_v53 = vadd.f32 1e-05, %v855_v52 }
 0xd0c   :  { %1329 = vrsqrt.f32 %v856_v53 }
 0xd16   :  { %v1330_v54 = vpop.eup %1329 }
 0xd17   :  { %v858_v56 = vmul.f32 %v1330_v54, %v850_v44 }
 0xd19   :  { %v865_v58 = vmul.f32 %v1113_v55, %v858_v56 }
 0xd1b   :  { %v872_v59 = vadd.f32 %v1114_v57, %v865_v58 }
 0xd1d   :  { %v873_v60 = vpack.c.bf16 %v872_v59, %v872_v59 }
 0xd1f   :  { %1249 = vmatmul.mubr.msk.bf16.vlgmr.msra.gmra.mrb[28].mxu0 %vm60_vm0, %v873_v60 }
 0xdf2   :  { %v950_v4 = vpop.f32.mrb[28].mxu0 }
 0xdf3   :  { %v951_v6 = vadd.f32 %v1115_v3, %v950_v4  ;;  %v1250_v7 = vpop.f32.mrb[29].mxu0 }
 0xdf4   :  { %v953_v8 = vpop.f32.mrb[30].mxu0 }
 0xdf5   :  { %v957_v9 = vmul.f32 0.044715, %v951_v6  ;;  %v1251_v10 = vpop.f32.mrb[31].mxu0  ;;  %v956_v15 = vmul.f32 0.5, %v951_v6 }
 0xdf7   :  { %v958_v11 = vmul.f32 %v957_v9, %v951_v6 }
 0xdf9   :  { %v959_v12 = vmul.f32 %v958_v11, %v951_v6 }
 0xdfb   :  { %v960_v13 = vadd.f32 %v959_v12, %v951_v6 }
 0xdfd   :  { %v961_v43 = vmul.f32 0.7978846, %v960_v13 }
 0xdff   :  { %1331 = vtanh.f32 %v961_v43 }
 0xe09   :  { %v1332_v14 = vpop.eup %1331 }
 0xe0a   :  { %v963_v34 = vadd.f32 1.0, %v1332_v14 }
 0xe0c   :  { %v964_v30 = vmul.f32 %v963_v34, %v956_v15 }
 0xe0e   :  { %v965_v16 = vpack.c.bf16 %v964_v30, %v964_v30 }
 0xe10   :  { %1269 = vmatmul.mubr.bf16.vlgmr.msra.gmra.mrb[24].mxu1 %v965_v16 }
 0xee3   :  { %v1071_v18 = vpop.f32.mrb[24].mxu1 }
 0xee4   :  { %v1072_v19 = vadd.f32 %v1121_v17, %v1071_v18  ;;  %v1270_v20 = vpop.f32.mrb[25].mxu1 }
 0xee5   :  { %v1074_v21 = vpop.f32.mrb[26].mxu1 }
 0xee6   :  { %v1077_v22 = vadd.f32 %v1072_v19, %v1581_v39  ;;  %v1271_v23 = vpop.f32.mrb[27].mxu1 }
 0xee8   :  { %v1078_v24 = vpack.c.bf16 %v1077_v22, %v1077_v22 }
 0xeea   :  { %1080 = vst.msk [vmem:[%s1664_s14] sm:$0xf] %vm1079_vm5, %v1078_v24 }

// kernel: htnet_forward.9
= control target key start
LH: loop header
LB: loop body
LE: loop exit
PB: predicated region body
PF: predicated region fallthrough
CT: control target
= control target key end

     0   :  { %vm28_vm0 = vcmask 519168   ;;  %s335_s0 = inlined_call_operand.vmem [shape: bf16[2,4,64], index: 0, kind: input, shape index: {}]   ;;  %s336_s1 = inlined_call_operand.vmem [shape: f32[1,64], index: 1, kind: input, shape index: {}]   ;;  %s337_s2 = inlined_call_operand.vmem [shape: f32[1,64], index: 2, kind: input, shape index: {}]   ;;  %s338_s3 = inlined_call_operand.vmem [shape: bf16[64,5], index: 3, kind: input, shape index: {}]   ;;  %s339_s4 = inlined_call_operand.vmem [shape: f32[1,5], index: 4, kind: input, shape index: {}]   ;;  %s340_s5 = inlined_call_operand.hbm [shape: f32[2,5], index: 5, kind: output, shape index: {}]  }
   0x1   :  { %v22_v0 = vld [vmem:[%s335_s0] sm:$0x3]  ;;  %v23_v1 = vld [vmem:[%s335_s0 + $0x2] sm:$0x3] }
   0x2   :  { %v24_v2 = vunpack.c.l.bf16 %v22_v0  ;;  %v25_v3 = vunpack.c.l.bf16 %v23_v1 }
   0x4   :  { %v29_v4 = vsel %vm28_vm0, %v24_v2, 0.0 }
   0x5   :  { %30 = vadd.xlane.f32.xlu0 %v29_v4 }
   0x6   :  { %10 = vsyncpa [#allocation3], 0  ;;  %v32_v5 = vsel %vm28_vm0, %v25_v3, 0.0  ;;  %v225_v16 = vld [vmem:[%s338_s3] sm:$0xff]   ;;  %v257_v17 = vmov 0.0   ;;  %vm258_vm1 = vmmov 0  }
   0x7   :  { %210 = vmatprep.subr.bf16.mxu0 %v257_v17  ;;  %218 = vmatprep.mubr.msk.bf16.mxu0 %vm258_vm1, %v257_v17  ;;  %v226_v18 = vld [vmem:[%s338_s3 + $0x8] sm:$0xff]   ;;  %v227_v19 = vld [vmem:[%s338_s3 + $0x10] sm:$0xff]   ;;  %v228_v20 = vld [vmem:[%s338_s3 + $0x18] sm:$0xff]   ;;  %vm110_vm2 = vcmask 1041409   ;;  %vm137_vm3 = vcmask 523264   ;;  %s259_s3 = smov [#allocation2]  }
   0x8   :  { %211 = vmatpush3.bf16.msra.mxu0 %v225_v16  ;;  %v197_v28 = vld [vmem:[%s336_s1] ss:$0 sm:$0xff]  ;;  %s189_s8 = sshll.u32 %s259_s3, 4  ;;  %vm181_vm4 = vcmask 33792   ;;  %s190_s8 = int_to_ptr.vmem [resolvable:$true] %s189_s8 }
   0x9   :  { %33 = vadd.xlane.f32.xlu0 %v32_v5  ;;  %212 = vmatprep.subr.bf16.mxu0 %v257_v17  ;;  %v198_v30 = vld [vmem:[%s337_s2] ss:$0 sm:$0xff]  ;;  %s233_s9 = scalar_lea.vmem %s190_s8, 32  ;;  %p238_p1 = scmp.lt.s32.totalorder %s190_s8, %s190_s8 }
   0xa   :  { %v199_v59 = vld [vmem:[%s339_s4] ss:$0 sm:$0xff]  ;;  %p234_p0 = scmp.ne.s32.totalorder %s190_s8, %s233_s9  ;;  %p239_p2 = scmp.lt.s32.totalorder %s233_s9, %s233_s9 }
   0xc   :  { %213 = vmatpush3.bf16.msra.mxu0 %v226_v18  ;;  %p240_p3 = por %p239_p2, %p238_p1 }
   0xd   :  { %214 = vmatprep.subr.bf16.mxu0 %v257_v17 }
   0xe   :  { %p241_p4 = pnand %p240_p3, %p234_p0 }
  0x10   :  { %215 = vmatpush3.bf16.msra.mxu0 %v227_v19 }
  0x11   :  { %216 = vmatprep.subr.bf16.mxu0 %v257_v17 }
  0x14   :  { %217 = vmatpush3.bf16.msra.mxu0 %v228_v20 }
  0x92   :  { %v31_v6 = vpop.xlane.xlu0 %30 }
  0x93   :  { %v36_v7 = vmul.f32 0.015625, %v31_v6 }
  0x95   :  { %v38_v8 = vsub.f32 %v24_v2, %v36_v7 }
  0x96   :  { %v34_v9 = vpop.xlane.xlu0 %33 }
  0x97   :  { %v37_v10 = vmul.f32 0.015625, %v34_v9  ;;  %v40_v11 = vmul.f32 %v38_v8, %v38_v8 }
  0x99   :  { %v39_v12 = vsub.f32 %v25_v3, %v37_v10  ;;  %v42_v13 = vsel %vm28_vm0, %v40_v11, 0.0 }
  0x9a   :  { %43 = vadd.xlane.f32.xlu1 %v42_v13 }
  0x9b   :  { %v41_v14 = vmul.f32 %v39_v12, %v39_v12 }
  0x9d   :  { %v45_v15 = vsel %vm28_vm0, %v41_v14, 0.0 }
  0x9e   :  { %46 = vadd.xlane.f32.xlu1 %v45_v15 }
 0x127   :  { %v44_v21 = vpop.xlane.xlu1 %43 }
 0x128   :  { %v48_v22 = vmul.f32 0.015625, %v44_v21 }
 0x12a   :  { %v50_v23 = vadd.f32 1e-05, %v48_v22 }
 0x12b   :  { %v47_v24 = vpop.xlane.xlu1 %46 }
 0x12c   :  { %229 = vrsqrt.f32 %v50_v23  ;;  %v49_v25 = vmul.f32 0.015625, %v47_v24 }
 0x12e   :  { %v51_v26 = vadd.f32 1e-05, %v49_v25 }
 0x130   :  { %231 = vrsqrt.f32 %v51_v26 }
 0x136   :  { %v230_v27 = vpop.eup %229 }
 0x137   :  { %v54_v29 = vmul.f32 %v230_v27, %v38_v8 }
 0x139   :  { %v62_v31 = vmul.f32 %v197_v28, %v54_v29 }
 0x13a   :  { %v232_v32 = vpop.eup %231 }
 0x13b   :  { %v70_v33 = vadd.f32 %v198_v30, %v62_v31  ;;  %v55_v34 = vmul.f32 %v232_v32, %v39_v12 }
 0x13d   :  { %v72_v35 = vsel %vm28_vm0, %v70_v33, 0.0  ;;  %v63_v36 = vmul.f32 %v197_v28, %v55_v34 }
 0x13e   :  { %v73_v37 = vrot.slane %v72_v35, 4 }
 0x13f   :  { %v71_v38 = vadd.f32 %v198_v30, %v63_v36 }
 0x140   :  { %v74_v39 = vadd.f32 %v73_v37, %v72_v35 }
 0x141   :  { %v79_v40 = vsel %vm28_vm0, %v71_v38, 0.0 }
 0x142   :  { %v80_v41 = vrot.slane %v79_v40, 4  ;;  %v75_v42 = vrot.slane %v74_v39, 2 }
 0x144   :  { %v76_v43 = vadd.f32 %v75_v42, %v74_v39  ;;  %v81_v44 = vadd.f32 %v80_v41, %v79_v40 }
 0x146   :  { %v77_v45 = vrot.slane %v76_v43, 1  ;;  %v82_v46 = vrot.slane %v81_v44, 2 }
 0x148   :  { %v78_v47 = vadd.f32 %v77_v45, %v76_v43  ;;  %v83_v48 = vadd.f32 %v82_v46, %v81_v44 }
 0x14a   :  { %v84_v49 = vrot.slane %v83_v48, 1  ;;  %v87_v50 = vmul.f32 0.25, %v78_v47 }
 0x14c   :  { %v85_v51 = vadd.f32 %v84_v49, %v83_v48  ;;  %v89_v53 = vpack.c.bf16 %v87_v50, %v87_v50 }
 0x14e   :  { %v88_v52 = vmul.f32 0.25, %v85_v51  ;;  %v108_v55 = vunpack.c.l.b16 %v89_v53 }
 0x150   :  { %v90_v54 = vpack.c.bf16 %v88_v52, %v88_v52 }
 0x152   :  { %v109_v56 = vunpack.c.l.b16 %v90_v54 }
 0x154   :  { %v111_v57 = vsel %vm110_vm2, %v109_v56, %v108_v55 }
 0x155   :  { %v112_v58 = vpack.c.b16 %v111_v57, %v111_v57 }
 0x157   :  { %219 = vmatmul.mubr.msk.bf16.vlgmr.msra.gmra.mrb[0].mxu0 %vm137_vm3, %v112_v58 }
 0x22a   :  { %v175_v60 = vpop.f32.mrb[0].mxu0 }
 0x22b   :  { %v176_v61 = vadd.f32 %v199_v59, %v175_v60  ;;  %v220_v62 = vpop.f32.mrb[1].mxu0 }
 0x22c   :  { %v178_v63 = vpop.f32.mrb[2].mxu0 }
 0x22d   :  { %v221_v0 = vpop.f32.mrb[3].mxu0  ;;  %182 = vst.msk [vmem:[#allocation2] sm:$0x3] %vm181_vm4, %v176_v61 }
 0x22e   :  { %244 = shalt.err (!%p241_p4)
}
 0x22f   :  { %s245_s4 = scalar_lea.hbm %s340_s5, 32 }
 0x230   :  { %p246_p5 = scmp.ne.s32.totalorder %s340_s5, %s245_s4  ;;  %p249_p6 = scmp.lt.u32.totalorder %s245_s4, %s340_s5 }
 0x232   :  { %p251_p7 = pnand %p249_p6, %p246_p5 }
 0x234   :  { %254 = shalt.err (!%p251_p7)
}
 0x235   :  { %192 = dma.vmem_to_hbm [thread:$0]  %s190_s8, 32, %s340_s5, [#allocation3]  }
 0x236   :  { %255 = dma.done.wait [#allocation3], 32  }
 0x237   :  { %256 = vsyncadd [#allocation3], 4294967264 }
 0x238   :  { %196 = vsyncpa [#allocation3], 1 }

</bundles_post_ra>
